<compile_context>
chip_gen: v7x
topology: tpu7x:2x2x1
jax: 0.10.0
libtpu: 0.0.40
codegen_flags: <defaults>
</compile_context>

<pallas_src>
import functools

import jax
import jax.numpy as jnp
from jax.experimental import pallas as pl
from jax.experimental.pallas import tpu as pltpu

LANE = 128
HID1, HID2, HID3 = 64, 32, 16        # HyperNetwork hidden widths (fc1/fc2/fc3)


# ----------------------------- Pallas kernel --------------------------------


def mixing_kernel(n_ext, state_ref, qs_ref,
                  w1_ref, b1_ref, w2_ref, b2_ref,
                  w3_ref, b3_ref, w4_ref, b4_ref,
                  out_ref):
    x = state_ref[...]                                            # (TB, S)

    # 4 fused hypernet layers (all 4 heads in one matmul each).
    h = jnp.dot(x, w1_ref[...], preferred_element_type=jnp.float32) + b1_ref[...]
    h = jnp.dot(h, w2_ref[...], preferred_element_type=jnp.float32) + b2_ref[...]
    h = jnp.dot(h, w3_ref[...], preferred_element_type=jnp.float32) + b3_ref[...]
    h4 = jnp.dot(h, w4_ref[...], preferred_element_type=jnp.float32) + b4_ref[...]
    h4 = jnp.maximum(h4, 0.0)              # relu(fc4) for all four heads

    qs = qs_ref[...]                                              # (TB, n_ext)

    w2_off = n_ext * LANE                  # hyper_w2 slot
    b1_off = (n_ext + 1) * LANE            # hyper_b1 slot
    b2_off = (n_ext + 2) * LANE            # hyper_b2 slot

    # q1 = bmm(agent_qs[:,None,:], w1) + b1   (each slot: lanes >= 32 are zero)
    q1 = h4[:, b1_off:b1_off + LANE]
    for a in range(n_ext):
        q1 = q1 + qs[:, a:a + 1] * h4[:, a * LANE:(a + 1) * LANE]
    q1 = jnp.maximum(q1, 0.0)              # relu(q_tot)

    # q_tot = bmm(relu(q1), w2) + b2 : single lane reduction.  The b2 slot is
    # zero everywhere except lane 0, so it folds into the same reduce.
    w2s = h4[:, w2_off:w2_off + LANE]
    b2s = h4[:, b2_off:b2_off + LANE]
    out_ref[...] = jnp.sum(q1 * w2s + b2s, axis=-1, keepdims=True)


def mixing_forward(agent_qs, state, packed, n_ext, tile_b=128):
    B, S = state.shape
    assert B % tile_b == 0, "demo keeps batch a multiple of the tile"
    w1p, b1p, w2p, b2p, w3p, b3p, w4p, b4p = packed
    out_width = w4p.shape[1]

    def const_spec(shape):
        return pl.BlockSpec(shape, lambda i: (0, 0))   # VMEM-resident params

    flops = 2 * B * (S * w1p.shape[1] + w2p.shape[0] * w2p.shape[1]
                     + w3p.shape[0] * w3p.shape[1] + w4p.shape[0] * out_width) \
            + B * (2 * n_ext + 4) * LANE
    bytes_accessed = 4 * (B * S + B * n_ext + B) \
        + sum(int(p.size) * 4 for p in packed)

    kernel = functools.partial(mixing_kernel, n_ext)
    return pl.pallas_call(
        kernel,
        out_shape=jax.ShapeDtypeStruct((B, 1), jnp.float32),
        grid_spec=pltpu.PrefetchScalarGridSpec(
            num_scalar_prefetch=0,
            grid=(B // tile_b,),
            in_specs=[
                pl.BlockSpec((tile_b, S), lambda i: (i, 0)),       # state
                pl.BlockSpec((tile_b, n_ext), lambda i: (i, 0)),   # agent_qs
                const_spec(w1p.shape), const_spec(b1p.shape),
                const_spec(w2p.shape), const_spec(b2p.shape),
                const_spec(w3p.shape), const_spec(b3p.shape),
                const_spec(w4p.shape), const_spec(b4p.shape),
            ],
            out_specs=pl.BlockSpec((tile_b, 1), lambda i: (i, 0)),
        ),
        compiler_params=pltpu.CompilerParams(
            dimension_semantics=("parallel",)),
        cost_estimate=pl.CostEstimate(flops=flops, transcendentals=0,
                                      bytes_accessed=bytes_accessed),
    )(state, agent_qs, w1p, b1p, w2p, b2p, w3p, b3p, w4p, b4p)


# --------------------------- parameter init / packing ------------------------


def init_linear(key, fan_in, fan_out):
    """Deterministic PyTorch-style uniform(-1/sqrt(fan_in), +1/sqrt(fan_in))."""
    kw, kb = jax.random.split(key)
    bound = 1.0 / float(fan_in) ** 0.5
    W = jax.random.uniform(kw, (fan_in, fan_out), jnp.float32, -bound, bound)
    b = jax.random.uniform(kb, (1, fan_out), jnp.float32, -bound, bound)
    return W, b


def init_hyper(key, in_dim, out_dim):
    dims = [(in_dim, HID1), (HID1, HID2), (HID2, HID3), (HID3, out_dim)]
    keys = jax.random.split(key, 4)
    return [init_linear(k, fi, fo) for k, (fi, fo) in zip(keys, dims)]


def _block_diag(mats):
    rows = sum(m.shape[0] for m in mats)
    cols = sum(m.shape[1] for m in mats)
    out = jnp.zeros((rows, cols), jnp.float32)
    r = c = 0
    for m in mats:
        out = out.at[r:r + m.shape[0], c:c + m.shape[1]].set(m)
        r += m.shape[0]
        c += m.shape[1]
    return out


def pack_hypernets(heads, n_ext):
    """Pack 4 HyperNetworks into 4 fused layers (heads: [w1, w2, b1, b2])."""
    # Layer 1: concat along output axis -> (S, 4*64)
    W1p = jnp.concatenate([h[0][0] for h in heads], axis=1)
    B1p = jnp.concatenate([h[0][1] for h in heads], axis=1)
    # Layer 2: block-diag (4*64, 4*32)
    W2p = _block_diag([h[1][0] for h in heads])
    B2p = jnp.concatenate([h[1][1] for h in heads], axis=1)
    # Layer 3: block-diag (4*32, 4*16), padded to a full 128-lane output
    W3p = _block_diag([h[2][0] for h in heads])
    W3p = jnp.pad(W3p, ((0, 0), (0, LANE - W3p.shape[1])))
    B3p = jnp.concatenate([h[2][1] for h in heads], axis=1)
    B3p = jnp.pad(B3p, ((0, 0), (0, LANE - B3p.shape[1])))
    # Layer 4: lane-aligned slots.  Slot a (a < n_ext) = agent a's 32 hyper_w1
    # outputs; then hyper_w2 (32), hyper_b1 (32), hyper_b2 (1); zero-padded.
    OUT = (n_ext + 3) * LANE
    W4p = jnp.zeros((LANE, OUT), jnp.float32)        # K padded 64 -> 128
    B4p = jnp.zeros((1, OUT), jnp.float32)
    W_w1, b_w1 = heads[0][3]
    for a in range(n_ext):
        W4p = W4p.at[0:HID3, a * LANE:a * LANE + 32].set(W_w1[:, a * 32:(a + 1) * 32])
        B4p = B4p.at[:, a * LANE:a * LANE + 32].set(b_w1[:, a * 32:(a + 1) * 32])
    for idx, width in ((1, 32), (2, 32), (3, 1)):     # hyper_w2, hyper_b1, hyper_b2
        W, b = heads[idx][3]
        off = (n_ext + idx - 1) * LANE
        W4p = W4p.at[idx * HID3:(idx + 1) * HID3, off:off + width].set(W)
        B4p = B4p.at[:, off:off + width].set(b)
    return (W1p, B1p, W2p, B2p, W3p, B3p, W4p, B4p)


# ---------------------------- pure-JAX reference ------------------------------


def reference_forward(agent_qs, state, heads, n_ext):
    def hyper(x, layers):
        h = x @ layers[0][0] + layers[0][1]
        h = h @ layers[1][0] + layers[1][1]
        h = h @ layers[2][0] + layers[2][1]
        return jnp.maximum(h @ layers[3][0] + layers[3][1], 0.0)

    w1 = hyper(state, heads[0]).reshape(-1, n_ext, 32)
    w2 = hyper(state, heads[1]).reshape(-1, 32, 1)
    b1 = hyper(state, heads[2]).reshape(-1, 1, 32)
    b2 = hyper(state, heads[3]).reshape(-1, 1, 1)
    q = jnp.einsum('bn,bnk->bk', agent_qs, w1)[:, None, :] + b1
    q = jnp.einsum('bik,bko->bio', jnp.maximum(q, 0.0), w2) + b2
    return q.reshape(-1, 1)


# ----------------------------------- main -------------------------------------


if __name__ == "__main__":
    key = jax.random.PRNGKey(0)

    num_agents = 4
    n_ext = num_agents + 2          # MixingNetwork: num_agents + 2
    state_dim = 16
    B = 256                         # small demo batch, 2 grid steps
    TILE_B = 128

    k1, k2, k3, k4, k5, k6 = jax.random.split(key, 6)
    heads = [init_hyper(k1, state_dim, n_ext * 32),   # hyper_w1
             init_hyper(k2, state_dim, 32),           # hyper_w2
             init_hyper(k3, state_dim, 32),           # hyper_b1
             init_hyper(k4, state_dim, 1)]            # hyper_b2
    packed = pack_hypernets(heads, n_ext)

    agent_qs = jax.random.normal(k5, (B, n_ext), jnp.float32)
    state = jax.random.normal(k6, (B, state_dim), jnp.float32)

    out = mixing_forward(agent_qs, state, packed, n_ext, tile_b=TILE_B)
    out = jax.block_until_ready(out)

    ref = reference_forward(agent_qs, state, heads, n_ext)
    assert out.shape == (B, 1)
    assert jnp.allclose(out, ref, atol=1e-4, rtol=1e-4), (
        float(jnp.max(jnp.abs(out - ref))))

    print("KERNEL_OK")
</pallas_src>

<mosaic_0001>
module attributes {stable_mosaic.version = 11 : i64} {
  func.func @mixing_kernel(%arg0: i32, %arg1: memref<128x16xf32, #tpu.memory_space<vmem>>, %arg2: memref<128x6xf32, #tpu.memory_space<vmem>>, %arg3: memref<16x256xf32, #tpu.memory_space<vmem>>, %arg4: memref<1x256xf32, #tpu.memory_space<vmem>>, %arg5: memref<256x128xf32, #tpu.memory_space<vmem>>, %arg6: memref<1x128xf32, #tpu.memory_space<vmem>>, %arg7: memref<128x128xf32, #tpu.memory_space<vmem>>, %arg8: memref<1x128xf32, #tpu.memory_space<vmem>>, %arg9: memref<128x1152xf32, #tpu.memory_space<vmem>>, %arg10: memref<1x1152xf32, #tpu.memory_space<vmem>>, %arg11: memref<128x1xf32, #tpu.memory_space<vmem>>) attributes {dimension_semantics = [#tpu.dimension_semantics<parallel>], iteration_bounds = array<i64: 2>, scalar_prefetch = 0 : i64, scratch_operands = 0 : i64, tpu.core_type = #tpu.core_type<tc>, window_params = [{transform_indices = @transform_0, window_bounds = array<i64: 128, 16>}, {transform_indices = @transform_1, window_bounds = array<i64: 128, 6>}, {pipeline_mode = #tpu.pipeline_mode<synchronous>, transform_indices = @transform_2, window_bounds = array<i64: 16, 256>}, {pipeline_mode = #tpu.pipeline_mode<synchronous>, transform_indices = @transform_3, window_bounds = array<i64: 1, 256>}, {pipeline_mode = #tpu.pipeline_mode<synchronous>, transform_indices = @transform_4, window_bounds = array<i64: 256, 128>}, {pipeline_mode = #tpu.pipeline_mode<synchronous>, transform_indices = @transform_5, window_bounds = array<i64: 1, 128>}, {pipeline_mode = #tpu.pipeline_mode<synchronous>, transform_indices = @transform_6, window_bounds = array<i64: 128, 128>}, {pipeline_mode = #tpu.pipeline_mode<synchronous>, transform_indices = @transform_7, window_bounds = array<i64: 1, 128>}, {pipeline_mode = #tpu.pipeline_mode<synchronous>, transform_indices = @transform_8, window_bounds = array<i64: 128, 1152>}, {pipeline_mode = #tpu.pipeline_mode<synchronous>, transform_indices = @transform_9, window_bounds = array<i64: 1, 1152>}, {transform_indices = @transform_10, window_bounds = array<i64: 128, 1>}]} {
    %c0 = arith.constant 0 : index
    %c0_0 = arith.constant 0 : index
    %0 = vector.load %arg1[%c0, %c0_0] : memref<128x16xf32, #tpu.memory_space<vmem>>, vector<128x16xf32>
    %c0_1 = arith.constant 0 : index
    %c0_2 = arith.constant 0 : index
    %1 = vector.load %arg3[%c0_1, %c0_2] : memref<16x256xf32, #tpu.memory_space<vmem>>, vector<16x256xf32>
    %cst = arith.constant dense<0.000000e+00> : vector<128x256xf32>
    %2 = tpu.matmul %0, %1, %cst {dimension_numbers = #tpu.dot_dimension_numbers<[1], [0], [0], [1], [0, 0, 1, 1], [], []>} : vector<128x16xf32>, vector<16x256xf32>, vector<128x256xf32> -> vector<128x256xf32>
    %c0_3 = arith.constant 0 : index
    %c0_4 = arith.constant 0 : index
    %3 = vector.load %arg4[%c0_3, %c0_4] : memref<1x256xf32, #tpu.memory_space<vmem>>, vector<1x256xf32>
    %4 = vector.broadcast %3 : vector<1x256xf32> to vector<128x256xf32>
    %5 = arith.addf %2, %4 : vector<128x256xf32>
    %c0_5 = arith.constant 0 : index
    %c0_6 = arith.constant 0 : index
    %6 = vector.load %arg5[%c0_5, %c0_6] : memref<256x128xf32, #tpu.memory_space<vmem>>, vector<256x128xf32>
    %cst_7 = arith.constant dense<0.000000e+00> : vector<128x128xf32>
    %7 = tpu.matmul %5, %6, %cst_7 {dimension_numbers = #tpu.dot_dimension_numbers<[1], [0], [0], [1], [0, 0, 1, 1], [], []>} : vector<128x256xf32>, vector<256x128xf32>, vector<128x128xf32> -> vector<128x128xf32>
    %c0_8 = arith.constant 0 : index
    %c0_9 = arith.constant 0 : index
    %8 = vector.load %arg6[%c0_8, %c0_9] : memref<1x128xf32, #tpu.memory_space<vmem>>, vector<1x128xf32>
    %9 = vector.broadcast %8 : vector<1x128xf32> to vector<128x128xf32>
    %10 = arith.addf %7, %9 : vector<128x128xf32>
    %c0_10 = arith.constant 0 : index
    %c0_11 = arith.constant 0 : index
    %11 = vector.load %arg7[%c0_10, %c0_11] : memref<128x128xf32, #tpu.memory_space<vmem>>, vector<128x128xf32>
    %cst_12 = arith.constant dense<0.000000e+00> : vector<128x128xf32>
    %12 = tpu.matmul %10, %11, %cst_12 {dimension_numbers = #tpu.dot_dimension_numbers<[1], [0], [0], [1], [0, 0, 1, 1], [], []>} : vector<128x128xf32>, vector<128x128xf32>, vector<128x128xf32> -> vector<128x128xf32>
    %c0_13 = arith.constant 0 : index
    %c0_14 = arith.constant 0 : index
    %13 = vector.load %arg8[%c0_13, %c0_14] : memref<1x128xf32, #tpu.memory_space<vmem>>, vector<1x128xf32>
    %14 = vector.broadcast %13 : vector<1x128xf32> to vector<128x128xf32>
    %15 = arith.addf %12, %14 : vector<128x128xf32>
    %c0_15 = arith.constant 0 : index
    %c0_16 = arith.constant 0 : index
    %16 = vector.load %arg9[%c0_15, %c0_16] : memref<128x1152xf32, #tpu.memory_space<vmem>>, vector<128x1152xf32>
    %cst_17 = arith.constant dense<0.000000e+00> : vector<128x1152xf32>
    %17 = tpu.matmul %15, %16, %cst_17 {dimension_numbers = #tpu.dot_dimension_numbers<[1], [0], [0], [1], [0, 0, 1, 1], [], []>} : vector<128x128xf32>, vector<128x1152xf32>, vector<128x1152xf32> -> vector<128x1152xf32>
    %c0_18 = arith.constant 0 : index
    %c0_19 = arith.constant 0 : index
    %18 = vector.load %arg10[%c0_18, %c0_19] : memref<1x1152xf32, #tpu.memory_space<vmem>>, vector<1x1152xf32>
    %19 = vector.broadcast %18 : vector<1x1152xf32> to vector<128x1152xf32>
    %20 = arith.addf %17, %19 : vector<128x1152xf32>
    %cst_20 = arith.constant 0.000000e+00 : f32
    %21 = vector.broadcast %cst_20 : f32 to vector<128x1152xf32>
    %22 = arith.maximumf %20, %21 : vector<128x1152xf32>
    %c0_21 = arith.constant 0 : index
    %c0_22 = arith.constant 0 : index
    %23 = vector.load %arg2[%c0_21, %c0_22] : memref<128x6xf32, #tpu.memory_space<vmem>>, vector<128x6xf32>
    %24 = vector.extract_strided_slice %22 {offsets = [0, 896], sizes = [128, 128], strides = [1, 1]} : vector<128x1152xf32> to vector<128x128xf32>
    %25 = vector.extract_strided_slice %23 {offsets = [0, 0], sizes = [128, 1], strides = [1, 1]} : vector<128x6xf32> to vector<128x1xf32>
    %26 = vector.extract_strided_slice %22 {offsets = [0, 0], sizes = [128, 128], strides = [1, 1]} : vector<128x1152xf32> to vector<128x128xf32>
    %27 = vector.broadcast %25 : vector<128x1xf32> to vector<128x128xf32>
    %28 = arith.mulf %27, %26 : vector<128x128xf32>
    %29 = arith.addf %24, %28 : vector<128x128xf32>
    %30 = vector.extract_strided_slice %23 {offsets = [0, 1], sizes = [128, 1], strides = [1, 1]} : vector<128x6xf32> to vector<128x1xf32>
    %31 = vector.extract_strided_slice %22 {offsets = [0, 128], sizes = [128, 128], strides = [1, 1]} : vector<128x1152xf32> to vector<128x128xf32>
    %32 = vector.broadcast %30 : vector<128x1xf32> to vector<128x128xf32>
    %33 = arith.mulf %32, %31 : vector<128x128xf32>
    %34 = arith.addf %29, %33 : vector<128x128xf32>
    %35 = vector.extract_strided_slice %23 {offsets = [0, 2], sizes = [128, 1], strides = [1, 1]} : vector<128x6xf32> to vector<128x1xf32>
    %36 = vector.extract_strided_slice %22 {offsets = [0, 256], sizes = [128, 128], strides = [1, 1]} : vector<128x1152xf32> to vector<128x128xf32>
    %37 = vector.broadcast %35 : vector<128x1xf32> to vector<128x128xf32>
    %38 = arith.mulf %37, %36 : vector<128x128xf32>
    %39 = arith.addf %34, %38 : vector<128x128xf32>
    %40 = vector.extract_strided_slice %23 {offsets = [0, 3], sizes = [128, 1], strides = [1, 1]} : vector<128x6xf32> to vector<128x1xf32>
    %41 = vector.extract_strided_slice %22 {offsets = [0, 384], sizes = [128, 128], strides = [1, 1]} : vector<128x1152xf32> to vector<128x128xf32>
    %42 = vector.broadcast %40 : vector<128x1xf32> to vector<128x128xf32>
    %43 = arith.mulf %42, %41 : vector<128x128xf32>
    %44 = arith.addf %39, %43 : vector<128x128xf32>
    %45 = vector.extract_strided_slice %23 {offsets = [0, 4], sizes = [128, 1], strides = [1, 1]} : vector<128x6xf32> to vector<128x1xf32>
    %46 = vector.extract_strided_slice %22 {offsets = [0, 512], sizes = [128, 128], strides = [1, 1]} : vector<128x1152xf32> to vector<128x128xf32>
    %47 = vector.broadcast %45 : vector<128x1xf32> to vector<128x128xf32>
    %48 = arith.mulf %47, %46 : vector<128x128xf32>
    %49 = arith.addf %44, %48 : vector<128x128xf32>
    %50 = vector.extract_strided_slice %23 {offsets = [0, 5], sizes = [128, 1], strides = [1, 1]} : vector<128x6xf32> to vector<128x1xf32>
    %51 = vector.extract_strided_slice %22 {offsets = [0, 640], sizes = [128, 128], strides = [1, 1]} : vector<128x1152xf32> to vector<128x128xf32>
    %52 = vector.broadcast %50 : vector<128x1xf32> to vector<128x128xf32>
    %53 = arith.mulf %52, %51 : vector<128x128xf32>
    %54 = arith.addf %49, %53 : vector<128x128xf32>
    %cst_23 = arith.constant 0.000000e+00 : f32
    %55 = vector.broadcast %cst_23 : f32 to vector<128x128xf32>
    %56 = arith.maximumf %54, %55 : vector<128x128xf32>
    %57 = vector.extract_strided_slice %22 {offsets = [0, 768], sizes = [128, 128], strides = [1, 1]} : vector<128x1152xf32> to vector<128x128xf32>
    %58 = vector.extract_strided_slice %22 {offsets = [0, 1024], sizes = [128, 128], strides = [1, 1]} : vector<128x1152xf32> to vector<128x128xf32>
    %59 = arith.mulf %56, %57 : vector<128x128xf32>
    %60 = arith.addf %59, %58 : vector<128x128xf32>
    %cst_24 = arith.constant dense<0.000000e+00> : vector<128xf32>
    %61 = vector.multi_reduction <add>, %60, %cst_24 [1] : vector<128x128xf32> to vector<128xf32>
    %62 = vector.shape_cast %61 : vector<128xf32> to vector<128x1xf32>
    %c0_25 = arith.constant 0 : index
    %c0_26 = arith.constant 0 : index
    %63 = vector.load %arg11[%c0_25, %c0_26] : memref<128x1xf32, #tpu.memory_space<vmem>>, vector<128x1xf32>
    tpu.vector_store %arg11[%c0_25, %c0_26], %62 {strides = array<i32>} : memref<128x1xf32, #tpu.memory_space<vmem>>, vector<128x1xf32>,
    return
  }
  func.func @transform_0(%arg0: i32) -> (i32, i32) {
    %c0_i32 = arith.constant 0 : i32
    %c0_i32_0 = arith.constant 0 : i32
    return %arg0, %c0_i32 : i32, i32
  }
  func.func @transform_1(%arg0: i32) -> (i32, i32) {
    %c0_i32 = arith.constant 0 : i32
    %c0_i32_0 = arith.constant 0 : i32
    return %arg0, %c0_i32 : i32, i32
  }
  func.func @transform_2(%arg0: i32) -> (i32, i32) {
    %c0_i32 = arith.constant 0 : i32
    %c0_i32_0 = arith.constant 0 : i32
    %c0_i32_1 = arith.constant 0 : i32
    return %c0_i32, %c0_i32_0 : i32, i32
  }
  func.func @transform_3(%arg0: i32) -> (i32, i32) {
    %c0_i32 = arith.constant 0 : i32
    %c0_i32_0 = arith.constant 0 : i32
    %c0_i32_1 = arith.constant 0 : i32
    return %c0_i32, %c0_i32_0 : i32, i32
  }
  func.func @transform_4(%arg0: i32) -> (i32, i32) {
    %c0_i32 = arith.constant 0 : i32
    %c0_i32_0 = arith.constant 0 : i32
    %c0_i32_1 = arith.constant 0 : i32
    return %c0_i32, %c0_i32_0 : i32, i32
  }
  func.func @transform_5(%arg0: i32) -> (i32, i32) {
    %c0_i32 = arith.constant 0 : i32
    %c0_i32_0 = arith.constant 0 : i32
    %c0_i32_1 = arith.constant 0 : i32
    return %c0_i32, %c0_i32_0 : i32, i32
  }
  func.func @transform_6(%arg0: i32) -> (i32, i32) {
    %c0_i32 = arith.constant 0 : i32
    %c0_i32_0 = arith.constant 0 : i32
    %c0_i32_1 = arith.constant 0 : i32
    return %c0_i32, %c0_i32_0 : i32, i32
  }
  func.func @transform_7(%arg0: i32) -> (i32, i32) {
    %c0_i32 = arith.constant 0 : i32
    %c0_i32_0 = arith.constant 0 : i32
    %c0_i32_1 = arith.constant 0 : i32
    return %c0_i32, %c0_i32_0 : i32, i32
  }
  func.func @transform_8(%arg0: i32) -> (i32, i32) {
    %c0_i32 = arith.constant 0 : i32
    %c0_i32_0 = arith.constant 0 : i32
    %c0_i32_1 = arith.constant 0 : i32
    return %c0_i32, %c0_i32_0 : i32, i32
  }
  func.func @transform_9(%arg0: i32) -> (i32, i32) {
    %c0_i32 = arith.constant 0 : i32
    %c0_i32_0 = arith.constant 0 : i32
    %c0_i32_1 = arith.constant 0 : i32
    return %c0_i32, %c0_i32_0 : i32, i32
  }
  func.func @transform_10(%arg0: i32) -> (i32, i32) {
    %c0_i32 = arith.constant 0 : i32
    %c0_i32_0 = arith.constant 0 : i32
    return %arg0, %c0_i32 : i32, i32
  }
}

</mosaic_0001>

<bundles_post_ra>
// kernel: tpu_custom_call.1
= control target key start
LH: loop header
LB: loop body
LE: loop exit
PB: predicated region body
PF: predicated region fallthrough
CT: control target
= control target key end

     0   :  { %15 = vsyncpa [#allocation3], 0  ;;  %s3587_s13 = smov 0   ;;  %s5135_s0 = inlined_call_operand.vmem [shape: f32[256,16], index: 0, kind: input, shape index: {}]   ;;  %s5136_s1 = inlined_call_operand.vmem [shape: f32[256,6], index: 1, kind: input, shape index: {}]   ;;  %s5137_s2 = inlined_call_operand.vmem [shape: f32[16,256], index: 2, kind: input, shape index: {}]   ;;  %s5138_s3 = inlined_call_operand.vmem [shape: f32[1,256], index: 3, kind: input, shape index: {}]   ;;  %s5139_s4 = inlined_call_operand.vmem [shape: f32[256,128], index: 4, kind: input, shape index: {}]   ;;  %s5140_s5 = inlined_call_operand.vmem [shape: f32[1,128], index: 5, kind: input, shape index: {}]   ;;  %s5141_s6 = inlined_call_operand.vmem [shape: f32[128,128], index: 6, kind: input, shape index: {}]   ;;  %s5142_s7 = inlined_call_operand.vmem [shape: f32[1,128], index: 7, kind: input, shape index: {}]   ;;  %s5143_s8 = inlined_call_operand.hbm [shape: f32[128,1152], index: 8, kind: input, shape index: {}]   ;;  %s5144_s9 = inlined_call_operand.vmem [shape: f32[1,1152], index: 9, kind: input, shape index: {}]   ;;  %s5145_s10 = inlined_call_operand.vmem [shape: f32[256,1], index: 10, kind: output, shape index: {}]  }
   0x1 LB: > { %s2905_s14 = sadd.s32 4294967295, %s3520_s13   ;;  %p2907_p0 = scmp.ge.s32.totalorder %s3520_s13, 1  ;;  %s3520_s13 = sphi %s3587_s13, %s21_s13  }
   0x2   : > { %p272_p1 = scmp.lt.s32.totalorder %s3520_s13, 3  ;;  %s3522_s15 = smov [#allocation2]  }
   0x3   : > { %s302_s16 = sshll.u32 %s3522_s15, 4  ;;  %p3601_p3 = scmp.eq.s32.totalorder %s2905_s14, 0  ;;  %s303_s16 = int_to_ptr.vmem [resolvable:$true] %s302_s16 }
   0x4   : > { %p3595_p2 = pnand %p2907_p0, %p272_p1  ;;  %s3482_s22 = scalar_lea.hbm %s5143_s8, 18432 }
   0x5   : > { %s5155_s18 = scalar_select %p3601_p3, 1, 0 }
   0x6   : > { %s5154_s17 = scalar_select %p3595_p2, 1, 0 }
   0x7   : > { %p3443_p4 = pneg %p3595_p2  ;;  %p3483_p6 = scmp.ne.s32.totalorder %s5143_s8, %s3482_s22 }
   0x8   : > { %p3489_p10 = scmp.lt.u32.totalorder %s3482_s22, %s5143_s8 }
   0x9   : > { %p3609_p5 = pnand %p3601_p3, %p3443_p4 }
   0xb   : > { %p3484_p7 = pneg %p3609_p5 }
   0xd   : > { %p3485_p8 = pnand %p3484_p7, %p3483_p6 }
   0xf   : > { %p3486_p9 = pneg %p3485_p8 }
  0x11   : > { %p3491_p11 = pnand %p3489_p10, %p3486_p9 }
  0x13   : > { %3494 = shalt.err (!%p3491_p11)
}
  0x14   : > { %s3495_s27 = scalar_lea.vmem %s303_s16, 18432  ;;  %p3503_p1 = scmp.lt.s32.totalorder %s303_s16, %s303_s16 }
  0x15   : > { %p3496_p12 = scmp.ne.s32.totalorder %s303_s16, %s3495_s27  ;;  %p3504_p4 = scmp.lt.s32.totalorder %s3495_s27, %s3495_s27 }
  0x17   : > { %p3498_p13 = pnand %p3496_p12, %p3484_p7  ;;  %p3505_p3 = por %p3504_p4, %p3503_p1 }
  0x19   : > { %p3499_p0 = pneg %p3498_p13 }
  0x1b   : > { %p3506_p2 = pnand %p3505_p3, %p3499_p0 }
  0x1d   : > { %3509 = shalt.err (!%p3506_p2)
}
  0x1e   : > { %s3523_s28 = smov 1152   ;;  %s3524_s29 = smov 72  }
  0x1f   : > { %3446 = dma.hbm_to_vmem [thread:$0]  (!%p3609_p5), %s5143_s8, 18432, %s303_s16, [#allocation3], %s3523_s28, %s3523_s28, %s3524_s29  }
  0x20   : > { %p5157_p6 = scmp.ne.s32.totalorder %s5154_s17, 0 }
  0x22   : > { %339 = sbr.rel (%p5157_p6) target bundleno = 1231 (0x4cf), region = 60 }
  0x29   : > { %p5158_p8 = scmp.ne.s32.totalorder %s5155_s18, 0 }
  0x2b   : > { %3515 = dma.done.wait (%p5158_p8), [#allocation3], 18432  }
  0x2c   : > { %3517 = vsyncadd (%p5158_p8), [#allocation3], 4294948864  ;;  %s2912_s12 = sshll.u32 %s2905_s14, 4  ;;  %v3525_v0 = vmov 0.0   ;;  %v417_v1 = vld [vmem:[%s5137_s2 + $0x8] sm:$0xff]  ;;  %v419_v2 = vld [vmem:[%s5137_s2 + $0x18] sm:$0xff] }
  0x2d   : > { %545 = vmatprep.mubr.f32.mxu0 %v3525_v0  ;;  %p383_p2 = scmp.lt.s32.totalorder %s2912_s12, 31  ;;  %v416_v3 = vld [vmem:[%s5137_s2] sm:$0xff]  ;;  %v3195_v4 = vpack.c.bf16 %v419_v2, %v417_v1  ;;  %v418_v5 = vld [vmem:[%s5137_s2 + $0x10] sm:$0xff]  ;;  %vm432_vm0 = vcmask 130048   ;;  %v659_v10 = vld [vmem:[%s5139_s4 + $0x88] sm:$0xff]  ;;  %vm2808_vm1 = vcmask 7168  }
  0x2e   : > { %v3197_v6 = vpack.c.bf16 %v418_v5, %v416_v3  ;;  %v658_v9 = vld [vmem:[%s5139_s4 + $0x80] sm:$0xff]  ;;  %v643_v12 = vld [vmem:[%s5139_s4 + $0x8] sm:$0xff]  ;;  %v660_v15 = vld [vmem:[%s5139_s4 + $0x90] sm:$0xff] }
  0x2f   : > { %s5370_s12 = smov (!%p383_p2, %s2912_s12), 31  ;;  %3196 = vmatprep.subr.bf16.mxu0 %v3195_v4  ;;  %v642_v11 = vld [vmem:[%s5139_s4] sm:$0xff]  ;;  %v3199_v13 = vpack.c.bf16 %v659_v10, %v658_v9  ;;  %v661_v16 = vld [vmem:[%s5139_s4 + $0x98] sm:$0xff]  ;;  %v644_v17 = vld [vmem:[%s5139_s4 + $0x10] sm:$0xff] }
  0x30   : > { %s3638_s15 = sshll.u32 %s5370_s12, 3  ;;  %3198 = vmatpush1.bf16.msra.mxu0 %v3197_v6  ;;  %v3201_v14 = vpack.c.bf16 %v643_v12, %v642_v11  ;;  %v3203_v18 = vpack.c.bf16 %v661_v16, %v660_v15  ;;  %v645_v19 = vld [vmem:[%s5139_s4 + $0x18] sm:$0xff]  ;;  %v662_v20 = vld [vmem:[%s5139_s4 + $0xa0] sm:$0xff]  ;;  %v663_v21 = vld [vmem:[%s5139_s4 + $0xa8] sm:$0xff] }
  0x31   : > { %s3656_s25 = scalar_lea.vmem %s5135_s0, %s3638_s15  ;;  %3200 = vmatprep.subr.bf16.mxu1 %v3199_v13  ;;  %v3205_v22 = vpack.c.bf16 %v645_v19, %v644_v17  ;;  %v3207_v24 = vpack.c.bf16 %v663_v21, %v662_v20  ;;  %v646_v25 = vld [vmem:[%s5139_s4 + $0x20] sm:$0xff]  ;;  %v647_v26 = vld [vmem:[%s5139_s4 + $0x28] sm:$0xff]  ;;  %v664_v27 = vld [vmem:[%s5139_s4 + $0xb0] sm:$0xff]  ;;  %s5098_s12 = scalar_lea.vmem %s5145_s10, %s3638_s15 }
  0x32   : > { %v400_v7 = vld [vmem:[%s3656_s25] sm:$0xff]  ;;  %v401_v8 = vld [vmem:[%s3656_s25 + $0x8] sm:$0xff]  ;;  %3202 = vmatpush3.bf16.msra.mxu1 %v3201_v14  ;;  %v402_v23 = vld [vmem:[%s3656_s25 + $0x10] sm:$0xff]  ;;  %v3209_v29 = vpack.c.bf16 %v647_v26, %v646_v25 }
  0x33   : > { %2918 = vmatmul.mubr.msk.f32.vlgmr.msra.gmra.mrb[0].mxu0 %vm432_vm0, %v400_v7  ;;  %3204 = vmatprep.subr.bf16.mxu1 %v3203_v18  ;;  %v665_v28 = vld [vmem:[%s5139_s4 + $0xb8] sm:$0xff]  ;;  %v648_v32 = vld [vmem:[%s5139_s4 + $0x30] sm:$0xff]  ;;  %v666_v34 = vld [vmem:[%s5139_s4 + $0xc0] sm:$0xff] }
  0x34   : > { %551 = vmatprep.mubr.f32.mxu0 %v3525_v0  ;;  %v403_v30 = vld [vmem:[%s3656_s25 + $0x18] sm:$0xff]  ;;  %v3211_v31 = vpack.c.bf16 %v665_v28, %v664_v27  ;;  %v667_v35 = vld [vmem:[%s5139_s4 + $0xc8] sm:$0xff]  ;;  %v404_v37 = vld [vmem:[%s3656_s25 + $0x20] sm:$0xff] }
  0x35   : > { %v649_v33 = vld [vmem:[%s5139_s4 + $0x38] sm:$0xff]  ;;  %v3215_v38 = vpack.c.bf16 %v667_v35, %v666_v34  ;;  %v650_v39 = vld [vmem:[%s5139_s4 + $0x40] sm:$0xff]  ;;  %v651_v40 = vld [vmem:[%s5139_s4 + $0x48] sm:$0xff] }
  0x36   : > { %3206 = vmatpush3.bf16.msra.mxu1 %v3205_v22  ;;  %v3213_v36 = vpack.c.bf16 %v649_v33, %v648_v32  ;;  %v668_v41 = vld [vmem:[%s5139_s4 + $0xd0] sm:$0xff]  ;;  %v669_v42 = vld [vmem:[%s5139_s4 + $0xd8] sm:$0xff]  ;;  %v3217_v43 = vpack.c.bf16 %v651_v40, %v650_v39  ;;  %v405_v44 = vld [vmem:[%s3656_s25 + $0x28] sm:$0xff] }
  0x37   : > { %2919 = vmatmul.mubr.msk.f32.gmra.mrb[2].mxu0 %vm432_vm0, %v401_v8  ;;  %3208 = vmatprep.subr.bf16.mxu1 %v3207_v24  ;;  %v3219_v45 = vpack.c.bf16 %v669_v42, %v668_v41  ;;  %v652_v46 = vld [vmem:[%s5139_s4 + $0x50] sm:$0xff]  ;;  %v653_v47 = vld [vmem:[%s5139_s4 + $0x58] sm:$0xff]  ;;  %v670_v48 = vld [vmem:[%s5139_s4 + $0xe0] sm:$0xff] }
  0x38   : > { %557 = vmatprep.mubr.f32.mxu0 %v3525_v0  ;;  %v671_v49 = vld [vmem:[%s5139_s4 + $0xe8] sm:$0xff]  ;;  %v3221_v50 = vpack.c.bf16 %v653_v47, %v652_v46  ;;  %v406_v51 = vld [vmem:[%s3656_s25 + $0x30] sm:$0xff]  ;;  %v654_v53 = vld [vmem:[%s5139_s4 + $0x60] sm:$0xff] }
  0x39   : > { %v3223_v52 = vpack.c.bf16 %v671_v49, %v670_v48  ;;  %v655_v54 = vld [vmem:[%s5139_s4 + $0x68] sm:$0xff]  ;;  %v407_v56 = vld [vmem:[%s3656_s25 + $0x38] sm:$0xff]  ;;  %v408_v57 = vld [vmem:[%s3656_s25 + $0x40] sm:$0xff] }
  0x3a   : > { %3210 = vmatpush3.bf16.msra.mxu1 %v3209_v29  ;;  %v3225_v55 = vpack.c.bf16 %v655_v54, %v654_v53  ;;  %v409_v58 = vld [vmem:[%s3656_s25 + $0x48] sm:$0xff]  ;;  %v410_v59 = vld [vmem:[%s3656_s25 + $0x50] sm:$0xff]  ;;  %v411_v60 = vld [vmem:[%s3656_s25 + $0x58] sm:$0xff]  ;;  %v422_v29 = vlaneseq }
  0x3b   : > { %2920 = vmatmul.mubr.msk.f32.gmra.mrb[4].mxu0 %vm432_vm0, %v402_v23  ;;  %3212 = vmatprep.subr.bf16.mxu1 %v3211_v31  ;;  %v412_v61 = vld [vmem:[%s3656_s25 + $0x60] sm:$0xff]  ;;  %v413_v62 = vld [vmem:[%s3656_s25 + $0x68] sm:$0xff]  ;;  %v414_v63 = vld [vmem:[%s3656_s25 + $0x70] sm:$0xff] }
  0x3c   : > { %563 = vmatprep.mubr.f32.mxu0 %v3525_v0  ;;  %v415_v1 = vld [vmem:[%s3656_s25 + $0x78] sm:$0xff]  ;;  %v672_v2 = vld [vmem:[%s5139_s4 + $0xf0] sm:$0xff]  ;;  %v826_v8 = vld [vmem:[%s5141_s6] sm:$0xff]  ;;  %s3901_s25 = scalar_lea.vmem %s5136_s1, %s3638_s15 }
  0x3d   : > { %v673_v3 = vld [vmem:[%s5139_s4 + $0xf8] sm:$0xff]  ;;  %v656_v5 = vld [vmem:[%s5139_s4 + $0x70] sm:$0xff]  ;;  %v827_v9 = vld [vmem:[%s5141_s6 + $0x8] sm:$0xff] }
  0x3e   : > { %3214 = vmatpush3.bf16.msra.mxu1 %v3213_v36  ;;  %v3227_v4 = vpack.c.bf16 %v673_v3, %v672_v2  ;;  %v657_v6 = vld [vmem:[%s5139_s4 + $0x78] sm:$0xff]  ;;  %v828_v10 = vld [vmem:[%s5141_s6 + $0x10] sm:$0xff]  ;;  %v3231_v11 = vpack.c.bf16 %v827_v9, %v826_v8  ;;  %v830_v14 = vld [vmem:[%s5141_s6 + $0x20] sm:$0xff] }
  0x3f   : > { %2921 = vmatmul.mubr.msk.f32.gmra.mrb[6].mxu0 %vm432_vm0, %v403_v30  ;;  %3216 = vmatprep.subr.bf16.mxu1 %v3215_v38  ;;  %v3229_v7 = vpack.c.bf16 %v657_v6, %v656_v5  ;;  %v829_v12 = vld [vmem:[%s5141_s6 + $0x18] sm:$0xff]  ;;  %v831_v15 = vld [vmem:[%s5141_s6 + $0x28] sm:$0xff]  ;;  %v832_v17 = vld [vmem:[%s5141_s6 + $0x30] sm:$0xff]  ;;  %v3843_v30 = vshrl.u32 %v422_v29, 7 }
  0x40   : > { %569 = vmatprep.mubr.f32.mxu0 %v3525_v0  ;;  %v3235_v13 = vpack.c.bf16 %v829_v12, %v828_v10  ;;  %3232 = vmatprep.subr.bf16.mxu0 %v3231_v11  ;;  %v3239_v16 = vpack.c.bf16 %v831_v15, %v830_v14  ;;  %v833_v18 = vld [vmem:[%s5141_s6 + $0x38] sm:$0xff]  ;;  %v834_v20 = vld [vmem:[%s5141_s6 + $0x40] sm:$0xff]  ;;  %v835_v21 = vld [vmem:[%s5141_s6 + $0x48] sm:$0xff] }
  0x41   : > { %3234 = vmatpush3.bf16.msra.mxu0 %v3231_v11  ;;  %v3243_v19 = vpack.c.bf16 %v833_v18, %v832_v17  ;;  %v3247_v22 = vpack.c.bf16 %v835_v21, %v834_v20  ;;  %v836_v23 = vld [vmem:[%s5141_s6 + $0x50] sm:$0xff]  ;;  %v837_v24 = vld [vmem:[%s5141_s6 + $0x58] sm:$0xff]  ;;  %v838_v26 = vld [vmem:[%s5141_s6 + $0x60] sm:$0xff]  ;;  %v5149_v31 = vsub.s32 1, %v3843_v30  ;;  %v5150_v33 = vsub.s32 0, %v3843_v30 }
  0x42   : > { %3218 = vmatpush3.bf16.msra.mxu1 %v3217_v43  ;;  %3236 = vmatprep.subr.bf16.mxu0 %v3235_v13  ;;  %v3251_v25 = vpack.c.bf16 %v837_v24, %v836_v23  ;;  %v839_v27 = vld [vmem:[%s5141_s6 + $0x68] sm:$0xff]  ;;  %v420_v32 = vld [vmem:[%s5138_s3] sm:$0x3] }
  0x43   : > { %2922 = vmatmul.mubr.msk.f32.gmra.mrb[8].mxu0 %vm432_vm0, %v404_v37  ;;  %3220 = vmatprep.subr.bf16.mxu1 %v3219_v45  ;;  %v3255_v28 = vpack.c.bf16 %v839_v27, %v838_v26  ;;  %v3852_v34 = vrot.slane %v420_v32, %v5149_v31  ;;  %v3856_v35 = vrot.slane %v420_v32, %v5150_v33 }
  0x44   : > { %575 = vmatprep.mubr.f32.mxu0 %v3525_v0 }
  0x45   : > { %3238 = vmatpush3.bf16.msra.mxu0 %v3235_v13 }
  0x46   : > { %3222 = vmatpush3.bf16.msra.mxu1 %v3221_v50  ;;  %3240 = vmatprep.subr.bf16.mxu0 %v3239_v16 }
  0x47   : > { %2923 = vmatmul.mubr.msk.f32.gmra.mrb[10].mxu0 %vm432_vm0, %v405_v44  ;;  %3224 = vmatprep.subr.bf16.mxu1 %v3223_v52 }
  0x48   : > { %581 = vmatprep.mubr.f32.mxu0 %v3525_v0 }
  0x49   : > { %3242 = vmatpush3.bf16.msra.mxu0 %v3239_v16 }
  0x4a   : > { %3226 = vmatpush3.bf16.msra.mxu1 %v3225_v55  ;;  %3244 = vmatprep.subr.bf16.mxu0 %v3243_v19 }
  0x4b   : > { %2924 = vmatmul.mubr.msk.f32.gmra.mrb[12].mxu0 %vm432_vm0, %v406_v51  ;;  %3228 = vmatprep.subr.bf16.mxu1 %v3227_v4 }
  0x4c   : > { %587 = vmatprep.mubr.f32.mxu0 %v3525_v0 }
  0x4d   : > { %3246 = vmatpush3.bf16.msra.mxu0 %v3243_v19 }
  0x4e   : > { %3230 = vmatpush3.bf16.msra.mxu1 %v3229_v7  ;;  %3248 = vmatprep.subr.bf16.mxu0 %v3247_v22 }
  0x4f   : > { %2925 = vmatmul.mubr.msk.f32.gmra.mrb[14].mxu0 %vm432_vm0, %v407_v56 }
  0x50   : > { %593 = vmatprep.mubr.f32.mxu0 %v3525_v0 }
  0x51   : > { %3250 = vmatpush3.bf16.msra.mxu0 %v3247_v22 }
  0x52   : > { %3252 = vmatprep.subr.bf16.mxu0 %v3251_v25 }
  0x53   : > { %2926 = vmatmul.mubr.msk.f32.gmra.mrb[16].mxu0 %vm432_vm0, %v408_v57 }
  0x54   : > { %599 = vmatprep.mubr.f32.mxu0 %v3525_v0 }
  0x55   : > { %3254 = vmatpush3.bf16.msra.mxu0 %v3251_v25 }
  0x56   : > { %3256 = vmatprep.subr.bf16.mxu0 %v3255_v28 }
  0x57   : > { %2927 = vmatmul.mubr.msk.f32.gmra.mrb[18].mxu0 %vm432_vm0, %v409_v58 }
  0x58   : > { %605 = vmatprep.mubr.f32.mxu0 %v3525_v0 }
  0x59   : > { %3258 = vmatpush3.bf16.msra.mxu0 %v3255_v28 }
  0x5b   : > { %2928 = vmatmul.mubr.msk.f32.gmra.mrb[20].mxu0 %vm432_vm0, %v410_v59 }
  0x5c   : > { %611 = vmatprep.mubr.f32.mxu0 %v3525_v0 }
  0x5f   : > { %2929 = vmatmul.mubr.msk.f32.gmra.mrb[22].mxu0 %vm432_vm0, %v411_v60 }
  0x60   : > { %617 = vmatprep.mubr.f32.mxu0 %v3525_v0 }
  0x63   : > { %2930 = vmatmul.mubr.msk.f32.gmra.mrb[24].mxu0 %vm432_vm0, %v412_v61 }
  0x64   : > { %623 = vmatprep.mubr.f32.mxu0 %v3525_v0 }
  0x67   : > { %2931 = vmatmul.mubr.msk.f32.gmra.mrb[26].mxu0 %vm432_vm0, %v413_v62 }
  0x68   : > { %629 = vmatprep.mubr.f32.mxu0 %v3525_v0 }
  0x6b   : > { %2932 = vmatmul.mubr.msk.f32.gmra.mrb[28].mxu0 %vm432_vm0, %v414_v63 }
  0x6c   : > { %635 = vmatprep.mubr.f32.mxu0 %v3525_v0 }
  0x6f   : > { %2933 = vmatmul.mubr.msk.f32.gmra.mrb[30].mxu0 %vm432_vm0, %v415_v1 }
 0x106   : > { %v547_v36 = vpop.f32.mrb[0].mxu0 }
 0x107   : > { %v549_v37 = vpop.f32.mrb[1].mxu0  ;;  %v548_v39 = vadd.f32 %v547_v36, %v3856_v35 }
 0x108   : > { %v550_v38 = vadd.f32 %v549_v37, %v3852_v34 }
 0x10a   : > { %v553_v40 = vpop.f32.mrb[2].mxu0  ;;  %745 = vmatprep.mubr.f32.mxu1 %v550_v38 }
 0x10b   : > { %v555_v41 = vpop.f32.mrb[3].mxu0  ;;  %746 = vmatmul.mubr.f32.vlgmr.msra.gmra.mrb[0].mxu1 %v548_v39  ;;  %v554_v43 = vadd.f32 %v553_v40, %v3856_v35 }
 0x10c   : > { %v556_v42 = vadd.f32 %v555_v41, %v3852_v34 }
 0x10e   : > { %v559_v44 = vpop.f32.mrb[4].mxu0  ;;  %750 = vmatprep.mubr.f32.mxu1 %v556_v42  ;;  %v840_v42 = vld [vmem:[%s5141_s6 + $0x70] sm:$0xff] }
 0x10f   : > { %v561_v45 = vpop.f32.mrb[5].mxu0  ;;  %751 = vmatmul.mubr.f32.gmra.mrb[2].mxu1 %v554_v43  ;;  %v560_v47 = vadd.f32 %v559_v44, %v3856_v35  ;;  %v841_v43 = vld [vmem:[%s5141_s6 + $0x78] sm:$0xff] }
 0x110   : > { %v562_v46 = vadd.f32 %v561_v45, %v3852_v34  ;;  %v3259_v44 = vpack.c.bf16 %v841_v43, %v840_v42  ;;  %v995_v45 = vld [vmem:[#allocation2 + $0x8] sm:$0xff]  ;;  %v3926_v43 = vld [vmem:[%s5140_s5] ss:$0 sm:$0xff] }
 0x112   : > { %v565_v48 = vpop.f32.mrb[6].mxu0  ;;  %755 = vmatprep.mubr.f32.mxu1 %v562_v46  ;;  %3260 = vmatprep.subr.bf16.mxu0 %v3259_v44  ;;  %v1004_v46 = vld [vmem:[#allocation2 + $0x50] sm:$0xff] }
 0x113   : > { %v567_v49 = vpop.f32.mrb[7].mxu0  ;;  %756 = vmatmul.mubr.f32.gmra.mrb[4].mxu1 %v560_v47  ;;  %v566_v51 = vadd.f32 %v565_v48, %v3856_v35  ;;  %3262 = vmatpush3.bf16.msra.mxu0 %v3259_v44  ;;  %v3263_v47 = vpack.c.bf16 %v1004_v46, %v995_v45  ;;  %v1013_v48 = vld [vmem:[#allocation2 + $0x98] sm:$0xff] }
 0x114   : > { %v568_v50 = vadd.f32 %v567_v49, %v3852_v34  ;;  %v1022_v49 = vld [vmem:[#allocation2 + $0xe0] sm:$0xff] }
 0x115   : > { %3264 = vmatprep.subr.bf16.mxu1 %v3263_v47  ;;  %v996_v47 = vld [vmem:[#allocation2 + $0x10] sm:$0xff] }
 0x116   : > { %v571_v52 = vpop.f32.mrb[8].mxu0  ;;  %760 = vmatprep.mubr.f32.mxu1 %v568_v50  ;;  %v3526_v50 = vmov 0  }
 0x117   : > { %v573_v53 = vpop.f32.mrb[9].mxu0  ;;  %761 = vmatmul.mubr.f32.gmra.mrb[6].mxu1 %v566_v51  ;;  %v572_v55 = vadd.f32 %v571_v52, %v3856_v35  ;;  %3468 = vset.pattern.permute.xlu1 %v3526_v50  ;;  %v3267_v52 = vpack.c.bf16 %v1022_v49, %v1013_v48  ;;  %v1015_v49 = vld [vmem:[#allocation2 + $0xa8] sm:$0xff] }
 0x118   : > { %v574_v54 = vadd.f32 %v573_v53, %v3852_v34  ;;  %3467 = vset.pattern.permute.xlu0 %v3526_v50  ;;  %v1012_v53 = vld [vmem:[#allocation2 + $0x90] sm:$0xff] }
 0x119   : > { %v1024_v50 = vld [vmem:[#allocation2 + $0xf0] sm:$0xff] }
 0x11a   : > { %v577_v56 = vpop.f32.mrb[10].mxu0  ;;  %765 = vmatprep.mubr.f32.mxu1 %v574_v54  ;;  %v1021_v54 = vld [vmem:[#allocation2 + $0xd8] sm:$0xff] }
 0x11b   : > { %v579_v57 = vpop.f32.mrb[11].mxu0  ;;  %766 = vmatmul.mubr.f32.gmra.mrb[8].mxu1 %v572_v55  ;;  %v578_v59 = vadd.f32 %v577_v56, %v3856_v35  ;;  %v1031_v55 = vld [vmem:[#allocation2 + $0x128] sm:$0xff]  ;;  %v1040_v56 = vld [vmem:[#allocation2 + $0x170] sm:$0xff] }
 0x11c   : > { %v580_v58 = vadd.f32 %v579_v57, %v3852_v34  ;;  %v3269_v57 = vpack.c.bf16 %v1021_v54, %v1012_v53 }
 0x11e   : > { %v583_v60 = vpop.f32.mrb[12].mxu0  ;;  %770 = vmatprep.mubr.f32.mxu1 %v580_v58  ;;  %v3271_v58 = vpack.c.bf16 %v1040_v56, %v1031_v55  ;;  %v3299_v55 = vpack.c.bf16 %v1024_v50, %v1015_v49  ;;  %v1014_v56 = vld [vmem:[#allocation2 + $0xa0] sm:$0xff] }
 0x11f   : > { %v585_v61 = vpop.f32.mrb[13].mxu0  ;;  %771 = vmatmul.mubr.f32.gmra.mrb[10].mxu1 %v578_v59  ;;  %v584_v63 = vadd.f32 %v583_v60, %v3856_v35  ;;  %v1030_v59 = vld [vmem:[#allocation2 + $0x120] sm:$0xff]  ;;  %v1039_v60 = vld [vmem:[#allocation2 + $0x168] sm:$0xff] }
 0x120   : > { %v586_v62 = vadd.f32 %v585_v61, %v3852_v34  ;;  %v1049_v61 = vld [vmem:[#allocation2 + $0x1b8] sm:$0xff] }
 0x122   : > { %v589_v1 = vpop.f32.mrb[14].mxu0  ;;  %775 = vmatprep.mubr.f32.mxu1 %v586_v62  ;;  %v1058_v62 = vld [vmem:[#allocation2 + $0x200] sm:$0xff] }
 0x123   : > { %v591_v2 = vpop.f32.mrb[15].mxu0  ;;  %776 = vmatmul.mubr.f32.gmra.mrb[12].mxu1 %v584_v63  ;;  %v590_v4 = vadd.f32 %v589_v1, %v3856_v35  ;;  %v997_v63 = vld [vmem:[#allocation2 + $0x18] sm:$0xff]  ;;  %v1006_v1 = vld [vmem:[#allocation2 + $0x60] sm:$0xff] }
 0x124   : > { %v592_v3 = vadd.f32 %v591_v2, %v3852_v34  ;;  %v3295_v2 = vpack.c.bf16 %v1006_v1, %v997_v63 }
 0x126   : > { %v595_v5 = vpop.f32.mrb[16].mxu0  ;;  %780 = vmatprep.mubr.f32.mxu1 %v592_v3  ;;  %v3273_v3 = vpack.c.bf16 %v1039_v60, %v1030_v59  ;;  %3296 = vmatprep.subr.bf16.mxu0 %v3295_v2  ;;  %v1033_v59 = vld [vmem:[#allocation2 + $0x138] sm:$0xff]  ;;  %v1042_v60 = vld [vmem:[#allocation2 + $0x180] sm:$0xff] }
 0x127   : > { %v597_v6 = vpop.f32.mrb[17].mxu0  ;;  %781 = vmatmul.mubr.f32.gmra.mrb[14].mxu1 %v590_v4  ;;  %v596_v8 = vadd.f32 %v595_v5, %v3856_v35  ;;  %v3275_v4 = vpack.c.bf16 %v1058_v62, %v1049_v61  ;;  %v1048_v5 = vld [vmem:[#allocation2 + $0x1b0] sm:$0xff]  ;;  %v3303_v2 = vpack.c.bf16 %v1042_v60, %v1033_v59 }
 0x128   : > { %v598_v7 = vadd.f32 %v597_v6, %v3852_v34  ;;  %v1057_v6 = vld [vmem:[#allocation2 + $0x1f8] sm:$0xff] }
 0x12a   : > { %v601_v9 = vpop.f32.mrb[18].mxu0  ;;  %785 = vmatprep.mubr.f32.mxu1 %v598_v7  ;;  %v1067_v7 = vld [vmem:[#allocation2 + $0x248] sm:$0xff] }
 0x12b   : > { %v603_v10 = vpop.f32.mrb[19].mxu0  ;;  %786 = vmatmul.mubr.f32.gmra.mrb[16].mxu1 %v596_v8  ;;  %v602_v12 = vadd.f32 %v601_v9, %v3856_v35  ;;  %v1076_v8 = vld [vmem:[#allocation2 + $0x290] sm:$0xff]  ;;  %v3277_v9 = vpack.c.bf16 %v1057_v6, %v1048_v5  ;;  %v1051_v6 = vld [vmem:[#allocation2 + $0x1c8] sm:$0xff] }
 0x12c   : > { %v604_v11 = vadd.f32 %v603_v10, %v3852_v34  ;;  %v3279_v10 = vpack.c.bf16 %v1076_v8, %v1067_v7  ;;  %v1060_v7 = vld [vmem:[#allocation2 + $0x210] sm:$0xff] }
 0x12e   : > { %v607_v13 = vpop.f32.mrb[20].mxu0  ;;  %790 = vmatprep.mubr.f32.mxu1 %v604_v11  ;;  %v1066_v11 = vld [vmem:[#allocation2 + $0x240] sm:$0xff] }
 0x12f   : > { %v609_v14 = vpop.f32.mrb[21].mxu0  ;;  %791 = vmatmul.mubr.f32.gmra.mrb[18].mxu1 %v602_v12  ;;  %v608_v16 = vadd.f32 %v607_v13, %v3856_v35  ;;  %v1075_v12 = vld [vmem:[#allocation2 + $0x288] sm:$0xff]  ;;  %v1085_v13 = vld [vmem:[#allocation2 + $0x2d8] sm:$0xff] }
 0x130   : > { %v610_v15 = vadd.f32 %v609_v14, %v3852_v34  ;;  %v1094_v14 = vld [vmem:[#allocation2 + $0x320] sm:$0xff] }
 0x132   : > { %v613_v17 = vpop.f32.mrb[22].mxu0  ;;  %795 = vmatprep.mubr.f32.mxu1 %v610_v15  ;;  %v3904_v15 = vld [vmem:[%s3901_s25 + $0x10] sm:$0xff] }
 0x133   : > { %v615_v18 = vpop.f32.mrb[23].mxu0  ;;  %796 = vmatmul.mubr.f32.gmra.mrb[20].mxu1 %v608_v16  ;;  %v614_v20 = vadd.f32 %v613_v17, %v3856_v35  ;;  %2148 = vperm.xlu1 %3468, %v3904_v15   ;;  %v3281_v16 = vpack.c.bf16 %v1075_v12, %v1066_v11  ;;  %v3283_v17 = vpack.c.bf16 %v1094_v14, %v1085_v13  ;;  %v1050_v13 = vld [vmem:[#allocation2 + $0x1c0] sm:$0xff]  ;;  %v1059_v14 = vld [vmem:[#allocation2 + $0x208] sm:$0xff] }
 0x134   : > { %v616_v19 = vadd.f32 %v615_v18, %v3852_v34  ;;  %v1084_v18 = vld [vmem:[#allocation2 + $0x2d0] sm:$0xff]  ;;  %v3307_v12 = vpack.c.bf16 %v1060_v7, %v1051_v6 }
 0x136   : > { %v619_v21 = vpop.f32.mrb[24].mxu0  ;;  %800 = vmatprep.mubr.f32.mxu1 %v616_v19  ;;  %v1093_v19 = vld [vmem:[#allocation2 + $0x318] sm:$0xff] }
 0x137   : > { %v621_v22 = vpop.f32.mrb[25].mxu0  ;;  %801 = vmatmul.mubr.f32.gmra.mrb[22].mxu1 %v614_v20  ;;  %v620_v24 = vadd.f32 %v619_v21, %v3856_v35  ;;  %v3908_v20 = vld [vmem:[%s3901_s25 + $0x18] sm:$0xff]  ;;  %v1103_v21 = vld [vmem:[#allocation2 + $0x368] sm:$0xff] }
 0x138   : > { %v622_v23 = vadd.f32 %v621_v22, %v3852_v34  ;;  %v1112_v22 = vld [vmem:[#allocation2 + $0x3b0] sm:$0xff]  ;;  %2153 = vperm.xlu1 %3468, %v3908_v20  }
 0x13a   : > { %v625_v25 = vpop.f32.mrb[26].mxu0  ;;  %805 = vmatprep.mubr.f32.mxu1 %v622_v23  ;;  %v3285_v23 = vpack.c.bf16 %v1093_v19, %v1084_v18  ;;  %v1078_v18 = vld [vmem:[#allocation2 + $0x2a0] sm:$0xff] }
 0x13b   : > { %v627_v26 = vpop.f32.mrb[27].mxu0  ;;  %806 = vmatmul.mubr.f32.gmra.mrb[24].mxu1 %v620_v24  ;;  %v626_v28 = vadd.f32 %v625_v25, %v3856_v35  ;;  %v3912_v24 = vld [vmem:[%s3901_s25 + $0x28] sm:$0xff]  ;;  %v3287_v25 = vpack.c.bf16 %v1112_v22, %v1103_v21  ;;  %v3309_v21 = vpack.c.bf16 %v1059_v14, %v1050_v13 }
 0x13c   : > { %v628_v27 = vadd.f32 %v627_v26, %v3852_v34  ;;  %v1102_v26 = vld [vmem:[#allocation2 + $0x360] sm:$0xff]  ;;  %2163 = vperm.xlu1 %3468, %v3912_v24  }
 0x13e   : > { %v631_v29 = vpop.f32.mrb[28].mxu0  ;;  %810 = vmatprep.mubr.f32.mxu1 %v628_v27  ;;  %v1111_v27 = vld [vmem:[#allocation2 + $0x3a8] sm:$0xff] }
 0x13f   : > { %v633_v32 = vpop.f32.mrb[29].mxu0  ;;  %811 = vmatmul.mubr.f32.gmra.mrb[26].mxu1 %v626_v28  ;;  %v632_v37 = vadd.f32 %v631_v29, %v3856_v35  ;;  %v3915_v28 = vld [vmem:[%s3901_s25] sm:$0xff]  ;;  %v1121_v29 = vld [vmem:[#allocation2 + $0x3f8] sm:$0xff] }
 0x140   : > { %v634_v36 = vadd.f32 %v633_v32, %v3852_v34  ;;  %v1130_v32 = vld [vmem:[#allocation2 + $0x440] sm:$0xff]  ;;  %2138 = vperm.xlu0 %3467, %v3915_v28  }
 0x142   : > { %v637_v38 = vpop.f32.mrb[30].mxu0  ;;  %815 = vmatprep.mubr.f32.mxu1 %v634_v36  ;;  %v3289_v36 = vpack.c.bf16 %v1111_v27, %v1102_v26  ;;  %v1068_v26 = vld [vmem:[#allocation2 + $0x250] sm:$0xff]  ;;  %v1077_v27 = vld [vmem:[#allocation2 + $0x298] sm:$0xff] }
 0x143   : > { %v639_v39 = vpop.f32.mrb[31].mxu0  ;;  %816 = vmatmul.mubr.f32.gmra.mrb[28].mxu1 %v632_v37  ;;  %v638_v41 = vadd.f32 %v637_v38, %v3856_v35  ;;  %v1003_v35 = vld [vmem:[#allocation2 + $0x48] sm:$0xff]  ;;  %v3920_v37 = vld [vmem:[%s3901_s25 + $0x38] sm:$0xff]  ;;  %v3291_v38 = vpack.c.bf16 %v1130_v32, %v1121_v29 }
 0x144   : > { %v640_v40 = vadd.f32 %v639_v39, %v3852_v34  ;;  %v994_v34 = vld [vmem:[#allocation2] sm:$0xff]  ;;  %v1120_v39 = vld [vmem:[#allocation2 + $0x3f0] sm:$0xff]  ;;  %2173 = vperm.xlu1 %3468, %v3920_v37   ;;  %v1087_v32 = vld [vmem:[#allocation2 + $0x2e8] sm:$0xff] }
 0x145   : > { %v3265_v51 = vpack.c.bf16 %v1003_v35, %v994_v34  ;;  %v1005_v35 = vld [vmem:[#allocation2 + $0x58] sm:$0xff] }
 0x146   : > { %820 = vmatprep.mubr.f32.mxu1 %v640_v40  ;;  %v1129_v40 = vld [vmem:[#allocation2 + $0x438] sm:$0xff] }
 0x147   : > { %821 = vmatmul.mubr.f32.gmra.mrb[30].mxu1 %v638_v41  ;;  %v3293_v41 = vpack.c.bf16 %v1129_v40, %v1120_v39  ;;  %v3313_v39 = vpack.c.bf16 %v1077_v27, %v1068_v26 }
 0x148   : > { %1251 = vmatprep.mubr.f32.mxu1 %v3525_v0  ;;  %3266 = vmatpush1.bf16.msra.mxu1 %v3265_v51 }
 0x149   : > { %3268 = vmatprep.subr.bf16.mxu1 %v3267_v52  ;;  %v3297_v52 = vpack.c.bf16 %v1005_v35, %v996_v47  ;;  %v1114_v47 = vld [vmem:[#allocation2 + $0x3c0] sm:$0xff] }
 0x14c   : > { %3270 = vmatpush1.bf16.msra.mxu1 %v3269_v57  ;;  %v1023_v57 = vld [vmem:[#allocation2 + $0xe8] sm:$0xff] }
 0x14d   : > { %3272 = vmatprep.subr.bf16.mxu1 %v3271_v58  ;;  %v3301_v62 = vpack.c.bf16 %v1023_v57, %v1014_v56  ;;  %v1132_v56 = vld [vmem:[#allocation2 + $0x450] sm:$0xff] }
 0x150   : > { %3274 = vmatpush1.bf16.msra.mxu1 %v3273_v3  ;;  %v1032_v3 = vld [vmem:[#allocation2 + $0x130] sm:$0xff] }
 0x151   : > { %3276 = vmatprep.subr.bf16.mxu1 %v3275_v4  ;;  %v1041_v4 = vld [vmem:[#allocation2 + $0x178] sm:$0xff] }
 0x154   : > { %3278 = vmatpush1.bf16.msra.mxu1 %v3277_v9  ;;  %v3305_v9 = vpack.c.bf16 %v1041_v4, %v1032_v3 }
 0x155   : > { %3280 = vmatprep.subr.bf16.mxu1 %v3279_v10 }
 0x158   : > { %3282 = vmatpush1.bf16.msra.mxu1 %v3281_v16 }
 0x159   : > { %3284 = vmatprep.subr.bf16.mxu1 %v3283_v17  ;;  %v1069_v17 = vld [vmem:[#allocation2 + $0x258] sm:$0xff] }
 0x15c   : > { %3286 = vmatpush1.bf16.msra.mxu1 %v3285_v23 }
 0x15d   : > { %3288 = vmatprep.subr.bf16.mxu1 %v3287_v25  ;;  %v3311_v25 = vpack.c.bf16 %v1078_v18, %v1069_v17 }
 0x160   : > { %3290 = vmatpush1.bf16.msra.mxu1 %v3289_v36  ;;  %v1096_v36 = vld [vmem:[#allocation2 + $0x330] sm:$0xff] }
 0x161   : > { %3292 = vmatprep.subr.bf16.mxu1 %v3291_v38 }
 0x164   : > { %3294 = vmatpush1.bf16.msra.mxu1 %v3293_v41 }
 0x1de   : > { %v2971_v42 = vpop.f32.mrb[0].mxu1 }
 0x1df   : > { %v2972_v44 = vpop.f32.mrb[1].mxu1 }
 0x1e0   : > { %v2973_v45 = vadd.f32 %v2972_v44, %v2971_v42  ;;  %v3315_v42 = vpack.c.bf16 %v1096_v36, %v1087_v32  ;;  %v1086_v44 = vld [vmem:[#allocation2 + $0x2e0] sm:$0xff] }
 0x1e2   : > { %v748_v46 = vadd.f32 %v2973_v45, %v3926_v43  ;;  %v2974_v34 = vpop.f32.mrb[2].mxu1  ;;  %v1095_v45 = vld [vmem:[#allocation2 + $0x328] sm:$0xff] }
 0x1e3   : > { %v2975_v48 = vpop.f32.mrb[3].mxu1 }
 0x1e4   : > { %v2976_v51 = vadd.f32 %v2975_v48, %v2974_v34  ;;  %3115 = vmatprep.mubr.f32.mxu0 %v748_v46  ;;  %v1105_v34 = vld [vmem:[#allocation2 + $0x378] sm:$0xff]  ;;  %v3317_v48 = vpack.c.bf16 %v1095_v45, %v1086_v44  ;;  %v3946_v44 = vld [vmem:[%s3901_s25 + $0x8] sm:$0xff] }
 0x1e5   : > { %2143 = vperm.xlu0 %3467, %v3946_v44   ;;  %v999_v45 = vld [vmem:[#allocation2 + $0x28] sm:$0xff] }
 0x1e6   : > { %v753_v53 = vadd.f32 %v2976_v51, %v3926_v43  ;;  %v2977_v54 = vpop.f32.mrb[4].mxu1  ;;  %v3319_v51 = vpack.c.bf16 %v1114_v47, %v1105_v34  ;;  %v1001_v34 = vld [vmem:[#allocation2 + $0x38] sm:$0xff]  ;;  %v1010_v47 = vld [vmem:[#allocation2 + $0x80] sm:$0xff] }
 0x1e7   : > { %v2978_v58 = vpop.f32.mrb[5].mxu1 }
 0x1e8   : > { %v2979_v61 = vadd.f32 %v2978_v58, %v2977_v54  ;;  %3116 = vmatmul.mubr.f32.vlgmr.msra.gmra.mrb[32].mxu0 %v753_v53  ;;  %v1113_v53 = vld [vmem:[#allocation2 + $0x3b8] sm:$0xff] }
 0x1e9   : > { %3298 = vmatpush1.bf16.msra.mxu0 %v3297_v52  ;;  %v1104_v52 = vld [vmem:[#allocation2 + $0x370] sm:$0xff] }
 0x1ea   : > { %v758_v63 = vadd.f32 %v2979_v61, %v3926_v43  ;;  %v2980_v1 = vpop.f32.mrb[6].mxu1  ;;  %3300 = vmatprep.subr.bf16.mxu0 %v3299_v55  ;;  %v1123_v55 = vld [vmem:[#allocation2 + $0x408] sm:$0xff]  ;;  %v3321_v58 = vpack.c.bf16 %v1113_v53, %v1104_v52  ;;  %v3970_v53 = vld [vmem:[%s3901_s25 + $0x40] sm:$0xff] }
 0x1eb   : > { %v2981_v5 = vpop.f32.mrb[7].mxu1  ;;  %v3323_v61 = vpack.c.bf16 %v1132_v56, %v1123_v55  ;;  %v3966_v52 = vld [vmem:[%s3901_s25 + $0x68] sm:$0xff]  ;;  %v3978_v55 = vld [vmem:[%s3901_s25 + $0x50] sm:$0xff]  ;;  %v3527_v56 = vmov 1  }
 0x1ec   : > { %v2982_v8 = vadd.f32 %v2981_v5, %v2980_v1  ;;  %3118 = vmatprep.mubr.f32.mxu0 %v758_v63 }
 0x1ed   : > { %3302 = vmatpush1.bf16.msra.mxu0 %v3301_v62 }
 0x1ee   : > { %v763_v10 = vadd.f32 %v2982_v8, %v3926_v43  ;;  %v2983_v11 = vpop.f32.mrb[8].mxu1  ;;  %3304 = vmatprep.subr.bf16.mxu0 %v3303_v2 }
 0x1ef   : > { %v2984_v16 = vpop.f32.mrb[9].mxu1 }
 0x1f0   : > { %v2985_v19 = vadd.f32 %v2984_v16, %v2983_v11  ;;  %3119 = vmatmul.mubr.f32.gmra.mrb[34].mxu0 %v763_v10 }
 0x1f1   : > { %3306 = vmatpush1.bf16.msra.mxu0 %v3305_v9 }
 0x1f2   : > { %v768_v22 = vadd.f32 %v2985_v19, %v3926_v43  ;;  %v2986_v23 = vpop.f32.mrb[10].mxu1  ;;  %3308 = vmatprep.subr.bf16.mxu0 %v3307_v12 }
 0x1f3   : > { %v2987_v29 = vpop.f32.mrb[11].mxu1 }
 0x1f4   : > { %v2988_v38 = vadd.f32 %v2987_v29, %v2986_v23  ;;  %3121 = vmatprep.mubr.f32.mxu0 %v768_v22 }
 0x1f5   : > { %3310 = vmatpush1.bf16.msra.mxu0 %v3309_v21 }
 0x1f6   : > { %v773_v40 = vadd.f32 %v2988_v38, %v3926_v43  ;;  %v2989_v41 = vpop.f32.mrb[12].mxu1  ;;  %3312 = vmatprep.subr.bf16.mxu0 %v3311_v25 }
 0x1f7   : > { %v2990_v46 = vpop.f32.mrb[13].mxu1 }
 0x1f8   : > { %v2991_v35 = vadd.f32 %v2990_v46, %v2989_v41  ;;  %3122 = vmatmul.mubr.f32.gmra.mrb[36].mxu0 %v773_v40  ;;  %v1122_v40 = vld [vmem:[#allocation2 + $0x400] sm:$0xff]  ;;  %v1131_v41 = vld [vmem:[#allocation2 + $0x448] sm:$0xff]  ;;  %v1008_v46 = vld [vmem:[#allocation2 + $0x70] sm:$0xff] }
 0x1f9   : > { %3314 = vmatpush1.bf16.msra.mxu0 %v3313_v39 }
 0x1fa   : > { %v778_v49 = vadd.f32 %v2991_v35, %v3926_v43  ;;  %v2992_v50 = vpop.f32.mrb[14].mxu1  ;;  %3316 = vmatprep.subr.bf16.mxu0 %v3315_v42  ;;  %v3325_v42 = vpack.c.bf16 %v1131_v41, %v1122_v40  ;;  %v3950_v35 = vld [vmem:[%s3901_s25 + $0x48] sm:$0xff]  ;;  %v1045_v40 = vld [vmem:[#allocation2 + $0x198] sm:$0xff] }
 0x1fb   : > { %v2993_v54 = vpop.f32.mrb[15].mxu1  ;;  %2183 = vperm.xlu1 %3468, %v3950_v35   ;;  %v1053_v41 = vld [vmem:[#allocation2 + $0x1d8] sm:$0xff] }
 0x1fc   : > { %v2994_v57 = vadd.f32 %v2993_v54, %v2992_v50  ;;  %3124 = vmatprep.mubr.f32.mxu0 %v778_v49  ;;  %v3954_v49 = vld [vmem:[%s3901_s25 + $0x20] sm:$0xff]  ;;  %v3958_v50 = vld [vmem:[%s3901_s25 + $0x58] sm:$0xff] }
 0x1fd   : > { %3318 = vmatpush1.bf16.msra.mxu0 %v3317_v48  ;;  %v3359_v48 = vpack.c.bf16 %v1010_v47, %v1001_v34  ;;  %2158 = vperm.xlu0 %3467, %v3954_v49   ;;  %v3973_v54 = vld [vmem:[%s3901_s25 + $0x78] sm:$0xff]  ;;  %v1064_v34 = vld [vmem:[#allocation2 + $0x230] sm:$0xff] }
 0x1fe   : > { %v783_v59 = vadd.f32 %v2994_v57, %v3926_v43  ;;  %v2995_v60 = vpop.f32.mrb[16].mxu1  ;;  %3320 = vmatprep.subr.bf16.mxu0 %v3319_v51  ;;  %v3962_v51 = vld [vmem:[%s3901_s25 + $0x30] sm:$0xff]  ;;  %v3983_v57 = vld [vmem:[%s3901_s25 + $0x60] sm:$0xff] }
 0x1ff   : > { %v2996_v62 = vpop.f32.mrb[17].mxu1  ;;  %2193 = vperm.xlu1 %3468, %v3958_v50  }
 0x200   : > { %v2997_v63 = vadd.f32 %v2996_v62, %v2995_v60  ;;  %3125 = vmatmul.mubr.f32.gmra.mrb[38].mxu0 %v783_v59  ;;  %v3528_v59 = vmov 2   ;;  %v3529_v60 = vmov 3   ;;  %v998_v62 = vld [vmem:[#allocation2 + $0x20] sm:$0xff] }
 0x201   : > { %3322 = vmatpush1.bf16.msra.mxu0 %v3321_v58  ;;  %2168 = vperm.xlu0 %3467, %v3962_v51   ;;  %v3988_v58 = vld [vmem:[%s3901_s25 + $0x70] sm:$0xff] }
 0x202   : > { %v788_v1 = vadd.f32 %v2997_v63, %v3926_v43  ;;  %v2998_v2 = vpop.f32.mrb[18].mxu1  ;;  %3324 = vmatprep.subr.bf16.mxu0 %v3323_v61  ;;  %v3530_v61 = vmov 4   ;;  %v1007_v63 = vld [vmem:[#allocation2 + $0x68] sm:$0xff] }
 0x203   : > { %v2999_v3 = vpop.f32.mrb[19].mxu1  ;;  %2203 = vperm.xlu1 %3468, %v3966_v52  }
 0x204   : > { %v3000_v4 = vadd.f32 %v2999_v3, %v2998_v2  ;;  %3127 = vmatprep.mubr.f32.mxu0 %v788_v1  ;;  %v1000_v1 = vld [vmem:[#allocation2 + $0x30] sm:$0xff]  ;;  %v1009_v2 = vld [vmem:[#allocation2 + $0x78] sm:$0xff]  ;;  %v4042_v3 = vld [vmem:[%s5142_s7] ss:$0 sm:$0xff] }
 0x205   : > { %3326 = vmatpush1.bf16.msra.mxu0 %v3325_v42  ;;  %2178 = vperm.xlu0 %3467, %v3970_v53  }
 0x206   : > { %v793_v5 = vadd.f32 %v3000_v4, %v3926_v43  ;;  %v3001_v6 = vpop.f32.mrb[20].mxu1  ;;  %3360 = vmatprep.subr.bf16.mxu0 %v3359_v48  ;;  %v1017_v4 = vld [vmem:[#allocation2 + $0xb8] sm:$0xff] }
 0x207   : > { %v3002_v7 = vpop.f32.mrb[21].mxu1  ;;  %2213 = vperm.xlu1 %3468, %v3973_v54  }
 0x208   : > { %v3003_v8 = vadd.f32 %v3002_v7, %v3001_v6  ;;  %3128 = vmatmul.mubr.f32.gmra.mrb[40].mxu0 %v793_v5  ;;  %v1026_v6 = vld [vmem:[#allocation2 + $0x100] sm:$0xff]  ;;  %v1019_v7 = vld [vmem:[#allocation2 + $0xc8] sm:$0xff] }
 0x209   : > { %2188 = vperm.xlu0 %3467, %v3978_v55  }
 0x20a   : > { %v798_v9 = vadd.f32 %v3003_v8, %v3926_v43  ;;  %v3004_v10 = vpop.f32.mrb[22].mxu1  ;;  %v1028_v8 = vld [vmem:[#allocation2 + $0x110] sm:$0xff] }
 0x20b   : > { %v3005_v11 = vpop.f32.mrb[23].mxu1  ;;  %3470 = vset.pattern.permute.xlu1 %v3527_v56 }
 0x20c   : > { %v3006_v12 = vadd.f32 %v3005_v11, %v3004_v10  ;;  %3130 = vmatprep.mubr.f32.mxu0 %v798_v9  ;;  %2253 = vperm.xlu1 %3470, %v3946_v44   ;;  %v3329_v10 = vpack.c.bf16 %v1007_v63, %v998_v62  ;;  %v3361_v11 = vpack.c.bf16 %v1009_v2, %v1000_v1  ;;  %v1054_v63 = vld [vmem:[#allocation2 + $0x1e0] sm:$0xff]  ;;  %v1063_v1 = vld [vmem:[#allocation2 + $0x228] sm:$0xff] }
 0x20d   : > { %2198 = vperm.xlu0 %3467, %v3983_v57   ;;  %v1071_v2 = vld [vmem:[#allocation2 + $0x268] sm:$0xff] }
 0x20e   : > { %v803_v13 = vadd.f32 %v3006_v12, %v3926_v43  ;;  %v3007_v14 = vpop.f32.mrb[24].mxu1 }
 0x20f   : > { %v3008_v16 = vpop.f32.mrb[25].mxu1 }
 0x210   : > { %v3009_v17 = vadd.f32 %v3008_v16, %v3007_v14  ;;  %3131 = vmatmul.mubr.f32.gmra.mrb[42].mxu0 %v803_v13  ;;  %2257 = vperm.xlu1 %3470, %v3904_v15   ;;  %v1016_v13 = vld [vmem:[#allocation2 + $0xb0] sm:$0xff]  ;;  %v1025_v14 = vld [vmem:[#allocation2 + $0xf8] sm:$0xff]  ;;  %v3331_v16 = vpack.c.bf16 %v1026_v6, %v1017_v4  ;;  %v1082_v6 = vld [vmem:[#allocation2 + $0x2c0] sm:$0xff] }
 0x211   : > { %2208 = vperm.xlu0 %3467, %v3988_v58   ;;  %v1080_v4 = vld [vmem:[#allocation2 + $0x2b0] sm:$0xff] }
 0x212   : > { %v808_v18 = vadd.f32 %v3009_v17, %v3926_v43  ;;  %v3010_v19 = vpop.f32.mrb[26].mxu1  ;;  %v3363_v17 = vpack.c.bf16 %v1028_v8, %v1019_v7 }
 0x213   : > { %v3011_v21 = vpop.f32.mrb[27].mxu1 }
 0x214   : > { %v3012_v22 = vadd.f32 %v3011_v21, %v3010_v19  ;;  %3133 = vmatprep.mubr.f32.mxu0 %v808_v18  ;;  %2265 = vperm.xlu1 %3470, %v3954_v49   ;;  %v1018_v18 = vld [vmem:[#allocation2 + $0xc0] sm:$0xff]  ;;  %v1027_v19 = vld [vmem:[#allocation2 + $0x108] sm:$0xff] }
 0x215   : > { %3469 = vset.pattern.permute.xlu0 %v3527_v56  ;;  %v1035_v21 = vld [vmem:[#allocation2 + $0x148] sm:$0xff] }
 0x216   : > { %v813_v23 = vadd.f32 %v3012_v22, %v3926_v43  ;;  %v3013_v25 = vpop.f32.mrb[28].mxu1  ;;  %2249 = vperm.xlu0 %3469, %v3915_v28   ;;  %v1037_v22 = vld [vmem:[#allocation2 + $0x158] sm:$0xff] }
 0x217   : > { %v3014_v26 = vpop.f32.mrb[29].mxu1 }
 0x218   : > { %v3015_v27 = vadd.f32 %v3014_v26, %v3013_v25  ;;  %3134 = vmatmul.mubr.f32.gmra.mrb[44].mxu0 %v813_v23  ;;  %2273 = vperm.xlu1 %3470, %v3962_v51   ;;  %v1046_v23 = vld [vmem:[#allocation2 + $0x1a0] sm:$0xff]  ;;  %v3333_v26 = vpack.c.bf16 %v1025_v14, %v1016_v13  ;;  %v3343_v13 = vpack.c.bf16 %v1080_v4, %v1071_v2  ;;  %v1108_v2 = vld [vmem:[#allocation2 + $0x390] sm:$0xff]  ;;  %v1117_v4 = vld [vmem:[#allocation2 + $0x3d8] sm:$0xff] }
 0x21a   : > { %v818_v29 = vadd.f32 %v3015_v27, %v3926_v43  ;;  %v3016_v32 = vpop.f32.mrb[30].mxu1  ;;  %2261 = vperm.xlu0 %3469, %v3908_v20   ;;  %v3365_v27 = vpack.c.bf16 %v1027_v19, %v1018_v18  ;;  %v1089_v18 = vld [vmem:[#allocation2 + $0x2f8] sm:$0xff] }
 0x21b   : > { %v3017_v36 = vpop.f32.mrb[31].mxu1 }
 0x21c   : > { %v3018_v38 = vadd.f32 %v3017_v36, %v3016_v32  ;;  %3136 = vmatprep.mubr.f32.mxu0 %v818_v29  ;;  %2281 = vperm.xlu1 %3470, %v3970_v53   ;;  %v1034_v29 = vld [vmem:[#allocation2 + $0x140] sm:$0xff]  ;;  %v1043_v32 = vld [vmem:[#allocation2 + $0x188] sm:$0xff] }
 0x21d   : > { %v3337_v48 = vpack.c.bf16 %v1043_v32, %v1034_v29 }
 0x21e   : > { %v823_v39 = vadd.f32 %v3018_v38, %v3926_v43  ;;  %v3327_v43 = vpack.c.bf16 %v1008_v46, %v999_v45  ;;  %2269 = vperm.xlu0 %3469, %v3912_v24   ;;  %v3367_v38 = vpack.c.bf16 %v1046_v23, %v1037_v22  ;;  %v1062_v45 = vld [vmem:[#allocation2 + $0x220] sm:$0xff]  ;;  %v1055_v46 = vld [vmem:[#allocation2 + $0x1e8] sm:$0xff]  ;;  %v1100_v22 = vld [vmem:[#allocation2 + $0x350] sm:$0xff]  ;;  %v4072_v23 = vpop.permute.xlu1 %2148 }
 0x21f   : > { %v3371_v62 = vpack.c.bf16 %v1064_v34, %v1055_v46  ;;  %v1116_v46 = vld [vmem:[#allocation2 + $0x3d0] sm:$0xff]  ;;  %v1109_v34 = vld [vmem:[#allocation2 + $0x398] sm:$0xff] }
 0x220   : > { %3137 = vmatmul.mubr.f32.gmra.mrb[46].mxu0 %v823_v39  ;;  %3328 = vmatprep.subr.bf16.mxu1 %v3327_v43  ;;  %v1036_v39 = vld [vmem:[#allocation2 + $0x150] sm:$0xff] }
 0x221   : > { %1412 = vmatprep.mubr.f32.mxu0 %v3525_v0  ;;  %2289 = vperm.xlu1 %3470, %v3978_v55   ;;  %v3369_v56 = vpack.c.bf16 %v1045_v40, %v1036_v39 }
 0x222   : > { %2277 = vperm.xlu0 %3469, %v3920_v37  }
 0x225   : > { %2297 = vperm.xlu1 %3470, %v3983_v57  }
 0x226   : > { %2285 = vperm.xlu0 %3469, %v3950_v35  }
 0x229   : > { %2305 = vperm.xlu1 %3470, %v3988_v58  }
 0x22a   : > { %2293 = vperm.xlu0 %3469, %v3958_v50  }
 0x22d   : > { %3471 = vset.pattern.permute.xlu1 %v3528_v59 }
 0x22e   : > { %2345 = vperm.xlu1 %3471, %v3915_v28   ;;  %2301 = vperm.xlu0 %3469, %v3966_v52  }
 0x232   : > { %2353 = vperm.xlu1 %3471, %v3904_v15   ;;  %2309 = vperm.xlu0 %3469, %v3973_v54  }
 0x236   : > { %2357 = vperm.xlu1 %3471, %v3908_v20   ;;  %3472 = vset.pattern.permute.xlu0 %v3528_v59  ;;  %v1052_v59 = vld [vmem:[#allocation2 + $0x1d0] sm:$0xff] }
 0x237   : > { %2349 = vperm.xlu0 %3472, %v3946_v44  }
 0x23a   : > { %2365 = vperm.xlu1 %3471, %v3912_v24  }
 0x23b   : > { %2361 = vperm.xlu0 %3472, %v3954_v49  }
 0x23e   : > { %2373 = vperm.xlu1 %3471, %v3920_v37  }
 0x23f   : > { %2369 = vperm.xlu0 %3472, %v3962_v51  }
 0x242   : > { %2381 = vperm.xlu1 %3471, %v3950_v35  }
 0x243   : > { %2377 = vperm.xlu0 %3472, %v3970_v53  }
 0x246   : > { %2389 = vperm.xlu1 %3471, %v3958_v50  }
 0x247   : > { %2385 = vperm.xlu0 %3472, %v3978_v55  }
 0x24a   : > { %2397 = vperm.xlu1 %3471, %v3966_v52  }
 0x24b   : > { %2393 = vperm.xlu0 %3472, %v3983_v57  }
 0x24e   : > { %2405 = vperm.xlu1 %3471, %v3973_v54  }
 0x24f   : > { %2401 = vperm.xlu0 %3472, %v3988_v58  }
 0x252   : > { %3474 = vset.pattern.permute.xlu1 %v3529_v60 }
 0x253   : > { %2445 = vperm.xlu1 %3474, %v3946_v44   ;;  %3473 = vset.pattern.permute.xlu0 %v3529_v60  ;;  %v1061_v60 = vld [vmem:[#allocation2 + $0x218] sm:$0xff] }
 0x254   : > { %2441 = vperm.xlu0 %3473, %v3915_v28   ;;  %v3341_v8 = vpack.c.bf16 %v1061_v60, %v1052_v59  ;;  %v1106_v60 = vld [vmem:[#allocation2 + $0x380] sm:$0xff] }
 0x257   : > { %2449 = vperm.xlu1 %3474, %v3904_v15  }
 0x258   : > { %2453 = vperm.xlu0 %3473, %v3908_v20  }
 0x25b   : > { %2457 = vperm.xlu1 %3474, %v3954_v49  }
 0x25c   : > { %2461 = vperm.xlu0 %3473, %v3912_v24  }
 0x25f   : > { %2465 = vperm.xlu1 %3474, %v3962_v51  }
 0x260   : > { %2469 = vperm.xlu0 %3473, %v3920_v37  }
 0x263   : > { %2473 = vperm.xlu1 %3474, %v3970_v53  }
 0x264   : > { %2477 = vperm.xlu0 %3473, %v3950_v35  }
 0x267   : > { %2481 = vperm.xlu1 %3474, %v3978_v55  }
 0x268   : > { %2485 = vperm.xlu0 %3473, %v3958_v50  }
 0x26b   : > { %2489 = vperm.xlu1 %3474, %v3983_v57  }
 0x26c   : > { %2493 = vperm.xlu0 %3473, %v3966_v52  }
 0x26f   : > { %2497 = vperm.xlu1 %3474, %v3988_v58  }
 0x270   : > { %2501 = vperm.xlu0 %3473, %v3973_v54  }
 0x273   : > { %3475 = vset.pattern.permute.xlu1 %v3530_v61 }
 0x274   : > { %2537 = vperm.xlu1 %3475, %v3915_v28   ;;  %3476 = vset.pattern.permute.xlu0 %v3530_v61  ;;  %v3339_v61 = vpack.c.bf16 %v1062_v45, %v1053_v41  ;;  %v1090_v41 = vld [vmem:[#allocation2 + $0x300] sm:$0xff]  ;;  %v1107_v45 = vld [vmem:[#allocation2 + $0x388] sm:$0xff] }
 0x275   : > { %2541 = vperm.xlu0 %3476, %v3946_v44  }
 0x278   : > { %2545 = vperm.xlu1 %3475, %v3904_v15   ;;  %v1044_v15 = vld [vmem:[#allocation2 + $0x190] sm:$0xff] }
 0x279   : > { %2553 = vperm.xlu0 %3476, %v3954_v49   ;;  %v3335_v36 = vpack.c.bf16 %v1044_v15, %v1035_v21  ;;  %v1098_v21 = vld [vmem:[#allocation2 + $0x340] sm:$0xff]  ;;  %v1091_v15 = vld [vmem:[#allocation2 + $0x308] sm:$0xff] }
 0x27a   : > { %v3347_v39 = vpack.c.bf16 %v1098_v21, %v1089_v18  ;;  %v3379_v40 = vpack.c.bf16 %v1100_v22, %v1091_v15  ;;  %v1133_v21 = vld [vmem:[#allocation2 + $0x458] sm:$0xff]  ;;  %v1126_v15 = vld [vmem:[#allocation2 + $0x420] sm:$0xff]  ;;  %v1135_v22 = vld [vmem:[#allocation2 + $0x468] sm:$0xff] }
 0x27c   : > { %2549 = vperm.xlu1 %3475, %v3908_v20  }
 0x27d   : > { %2561 = vperm.xlu0 %3476, %v3962_v51  }
 0x280   : > { %2557 = vperm.xlu1 %3475, %v3912_v24  }
 0x281   : > { %2569 = vperm.xlu0 %3476, %v3970_v53  }
 0x284   : > { %2565 = vperm.xlu1 %3475, %v3920_v37  }
 0x285   : > { %2577 = vperm.xlu0 %3476, %v3978_v55  }
 0x288   : > { %2573 = vperm.xlu1 %3475, %v3950_v35  }
 0x289   : > { %2585 = vperm.xlu0 %3476, %v3983_v57  }
 0x28c   : > { %2581 = vperm.xlu1 %3475, %v3958_v50  }
 0x28d   : > { %2593 = vperm.xlu0 %3476, %v3988_v58  }
 0x290   : > { %2589 = vperm.xlu1 %3475, %v3966_v52  }
 0x294   : > { %2597 = vperm.xlu1 %3475, %v3973_v54  }
 0x2bb   : > { %v3117_v5 = vpop.f32.mrb[32].mxu0 }
 0x2bc   : > { %v915_v9 = vpop.f32.mrb[33].mxu0  ;;  %v4052_v25 = vadd.f32 %v3117_v5, %v4042_v3  ;;  %v1073_v5 = vld [vmem:[#allocation2 + $0x278] sm:$0xff] }
 0x2bd   : > { %v4046_v12 = vadd.f32 %v4042_v3, %v915_v9  ;;  %v3373_v9 = vpack.c.bf16 %v1063_v1, %v1054_v63  ;;  %v3375_v14 = vpack.c.bf16 %v1082_v6, %v1073_v5  ;;  %v3351_v63 = vpack.c.bf16 %v1116_v46, %v1107_v45  ;;  %v1125_v5 = vld [vmem:[#allocation2 + $0x418] sm:$0xff] }
 0x2bf   : > { %1252 = vmatmul.mubr.f32.vlgmr.msra.gmra.mrb[32].mxu1 %v4046_v12  ;;  %1413 = vmatmul.mubr.f32.vlgmr.msra.gmra.mrb[48].mxu0 %v4046_v12 }
 0x2c0   : > { %3330 = vmatpush1.bf16.msra.mxu1 %v3329_v10  ;;  %3362 = vmatpush1.bf16.msra.mxu0 %v3361_v11  ;;  %v1070_v10 = vld [vmem:[#allocation2 + $0x260] sm:$0xff]  ;;  %v1079_v11 = vld [vmem:[#allocation2 + $0x2a8] sm:$0xff] }
 0x2c1   : > { %1257 = vmatprep.mubr.f32.mxu1 %v3525_v0  ;;  %1418 = vmatprep.mubr.f32.mxu0 %v3525_v0  ;;  %v3345_v29 = vpack.c.bf16 %v1079_v11, %v1070_v10  ;;  %v1136_v10 = vld [vmem:[#allocation2 + $0x470] sm:$0xff] }
 0x2c2   : > { %3332 = vmatprep.subr.bf16.mxu1 %v3331_v16  ;;  %3364 = vmatprep.subr.bf16.mxu0 %v3363_v17  ;;  %v1072_v16 = vld [vmem:[#allocation2 + $0x270] sm:$0xff]  ;;  %v1081_v17 = vld [vmem:[#allocation2 + $0x2b8] sm:$0xff] }
 0x2c3   : > { %v3120_v42 = vpop.f32.mrb[34].mxu0  ;;  %1258 = vmatmul.mubr.f32.gmra.mrb[34].mxu1 %v4052_v25  ;;  %1419 = vmatmul.mubr.f32.gmra.mrb[50].mxu0 %v4052_v25  ;;  %v3377_v32 = vpack.c.bf16 %v1081_v17, %v1072_v16  ;;  %v3385_v16 = vpack.c.bf16 %v1117_v4, %v1108_v2  ;;  %v1124_v17 = vld [vmem:[#allocation2 + $0x410] sm:$0xff] }
 0x2c4   : > { %v925_v43 = vpop.f32.mrb[35].mxu0  ;;  %1263 = vmatprep.mubr.f32.mxu1 %v3525_v0  ;;  %1424 = vmatprep.mubr.f32.mxu0 %v3525_v0  ;;  %v4068_v7 = vadd.f32 %v3120_v42, %v4042_v3  ;;  %v1099_v42 = vld [vmem:[#allocation2 + $0x348] sm:$0xff] }
 0x2c5   : > { %v4061_v47 = vadd.f32 %v4042_v3, %v925_v43  ;;  %3334 = vmatpush1.bf16.msra.mxu1 %v3333_v26  ;;  %3366 = vmatpush1.bf16.msra.mxu0 %v3365_v27  ;;  %v1118_v43 = vld [vmem:[#allocation2 + $0x3e0] sm:$0xff]  ;;  %v3381_v59 = vpack.c.bf16 %v1099_v42, %v1090_v41 }
 0x2c6   : > { %3336 = vmatprep.subr.bf16.mxu1 %v3335_v36  ;;  %3368 = vmatprep.subr.bf16.mxu0 %v3367_v38  ;;  %v1088_v36 = vld [vmem:[#allocation2 + $0x2f0] sm:$0xff]  ;;  %v1097_v38 = vld [vmem:[#allocation2 + $0x338] sm:$0xff]  ;;  %v3383_v1 = vpack.c.bf16 %v1118_v43, %v1109_v34 }
 0x2c7   : > { %1264 = vmatmul.mubr.f32.gmra.mrb[36].mxu1 %v4061_v47  ;;  %1425 = vmatmul.mubr.f32.gmra.mrb[52].mxu0 %v4061_v47 }
 0x2c8   : > { %1269 = vmatprep.mubr.f32.mxu1 %v3525_v0  ;;  %1430 = vmatprep.mubr.f32.mxu0 %v3525_v0 }
 0x2c9   : > { %3338 = vmatpush1.bf16.msra.mxu1 %v3337_v48  ;;  %3370 = vmatpush1.bf16.msra.mxu0 %v3369_v56  ;;  %v3349_v56 = vpack.c.bf16 %v1097_v38, %v1088_v36  ;;  %v3357_v38 = vpack.c.bf16 %v1133_v21, %v1124_v17 }
 0x2ca   : > { %3340 = vmatprep.subr.bf16.mxu1 %v3339_v61  ;;  %3372 = vmatprep.subr.bf16.mxu0 %v3371_v62  ;;  %v1115_v61 = vld [vmem:[#allocation2 + $0x3c8] sm:$0xff]  ;;  %v4086_v62 = vpop.permute.xlu1 %2153 }
 0x2cb   : > { %v3123_v19 = vpop.f32.mrb[36].mxu0  ;;  %1270 = vmatmul.mubr.f32.gmra.mrb[38].mxu1 %v4068_v7  ;;  %1431 = vmatmul.mubr.f32.gmra.mrb[54].mxu0 %v4068_v7 }
 0x2cc   : > { %v935_v26 = vpop.f32.mrb[37].mxu0  ;;  %1275 = vmatprep.mubr.f32.mxu1 %v3525_v0  ;;  %1436 = vmatprep.mubr.f32.mxu0 %v3525_v0  ;;  %v4084_v48 = vadd.f32 %v3123_v19, %v4042_v3 }
 0x2cd   : > { %v4077_v27 = vadd.f32 %v4042_v3, %v935_v26  ;;  %3342 = vmatpush1.bf16.msra.mxu1 %v3341_v8  ;;  %3374 = vmatpush1.bf16.msra.mxu0 %v3373_v9  ;;  %v1134_v8 = vld [vmem:[#allocation2 + $0x460] sm:$0xff]  ;;  %v1127_v9 = vld [vmem:[#allocation2 + $0x428] sm:$0xff] }
 0x2ce   : > { %3344 = vmatprep.subr.bf16.mxu1 %v3343_v13  ;;  %3376 = vmatprep.subr.bf16.mxu0 %v3375_v14  ;;  %v3353_v14 = vpack.c.bf16 %v1115_v61, %v1106_v60  ;;  %v3355_v18 = vpack.c.bf16 %v1134_v8, %v1125_v5  ;;  %v3387_v19 = vpack.c.bf16 %v1136_v10, %v1127_v9  ;;  %v1002_v26 = vld [vmem:[#allocation2 + $0x40] sm:$0xff]  ;;  %v4135_v61 = vpop.permute.xlu0 %2138 }
 0x2cf   : > { %1276 = vmatmul.mubr.f32.gmra.mrb[40].mxu1 %v4077_v27  ;;  %1437 = vmatmul.mubr.f32.gmra.mrb[56].mxu0 %v4077_v27 }
 0x2d0   : > { %1281 = vmatprep.mubr.f32.mxu1 %v3525_v0  ;;  %1442 = vmatprep.mubr.f32.mxu0 %v3525_v0 }
 0x2d1   : > { %3346 = vmatpush1.bf16.msra.mxu1 %v3345_v29  ;;  %3378 = vmatpush1.bf16.msra.mxu0 %v3377_v32  ;;  %v1011_v29 = vld [vmem:[#allocation2 + $0x88] sm:$0xff]  ;;  %v4097_v32 = vpop.permute.xlu1 %2163 }
 0x2d2   : > { %3348 = vmatprep.subr.bf16.mxu1 %v3347_v39  ;;  %3380 = vmatprep.subr.bf16.mxu0 %v3379_v40  ;;  %5159 = vst [vmem:[#allocation5_spill] sm:$0xff] %v4097_v32  ;;  %v3389_v39 = vpack.c.bf16 %v1135_v22, %v1126_v15  ;;  %v4104_v40 = vpack.c.bf16 %v1011_v29, %v1002_v26  ;;  %v4152_v2 = vpop.permute.xlu0 %2143  ;;  %v3479_v22 = vld [vmem:[%s3901_s25 + $0x28] sm:$0xff] }
 0x2d3   : > { %v3126_v6 = vpop.f32.mrb[38].mxu0  ;;  %1282 = vmatmul.mubr.f32.gmra.mrb[42].mxu1 %v4084_v48  ;;  %1443 = vmatmul.mubr.f32.gmra.mrb[58].mxu0 %v4084_v48  ;;  %v1047_v26 = vld [vmem:[#allocation2 + $0x1a8] sm:$0xff] }
 0x2d4   : > { %v945_v11 = vpop.f32.mrb[39].mxu0  ;;  %1287 = vmatprep.mubr.f32.mxu1 %v3525_v0  ;;  %1448 = vmatprep.mubr.f32.mxu0 %v3525_v0  ;;  %v4102_v36 = vadd.f32 %v3126_v6, %v4042_v3 }
 0x2d5   : > { %v4093_v13 = vadd.f32 %v4042_v3, %v945_v11  ;;  %3350 = vmatpush1.bf16.msra.mxu1 %v3349_v56  ;;  %3382 = vmatpush1.bf16.msra.mxu0 %v3381_v59  ;;  %v4113_v46 = vpop.permute.xlu1 %2173 }
 0x2d6   : > { %3352 = vmatprep.subr.bf16.mxu1 %v3351_v63  ;;  %3384 = vmatprep.subr.bf16.mxu0 %v3383_v1  ;;  %5160 = vst [vmem:[#allocation6_spill] sm:$0xff] %v4113_v46  ;;  %v4170_v8 = vpop.permute.xlu0 %2158  ;;  %v1164_v46 = vsub.s32 5, %v3843_v30 }
 0x2d7   : > { %1288 = vmatmul.mubr.f32.gmra.mrb[44].mxu1 %v4093_v13  ;;  %1449 = vmatmul.mubr.f32.gmra.mrb[60].mxu0 %v4093_v13 }
 0x2d8   : > { %1293 = vmatprep.mubr.f32.mxu1 %v3525_v0  ;;  %1454 = vmatprep.mubr.f32.mxu0 %v3525_v0 }
 0x2d9   : > { %3354 = vmatpush1.bf16.msra.mxu1 %v3353_v14  ;;  %3386 = vmatpush1.bf16.msra.mxu0 %v3385_v16  ;;  %v4128_v56 = vpop.permute.xlu1 %2183  ;;  %v3531_v16 = vmov 5  }
 0x2da   : > { %3356 = vmatprep.subr.bf16.mxu1 %v3355_v18  ;;  %3388 = vmatprep.subr.bf16.mxu0 %v3387_v19  ;;  %5161 = vst [vmem:[#allocation7_spill] sm:$0xff] %v4128_v56  ;;  %v4187_v17 = vpop.permute.xlu0 %2168  ;;  %v1029_v19 = vld [vmem:[#allocation2 + $0x118] sm:$0xff] }
 0x2db   : > { %v3129_v41 = vpop.f32.mrb[40].mxu0  ;;  %1294 = vmatmul.mubr.f32.gmra.mrb[46].mxu1 %v4102_v36  ;;  %1455 = vmatmul.mubr.f32.gmra.mrb[62].mxu0 %v4102_v36  ;;  %5165 = vst [vmem:[#allocation11_spill] sm:$0xff] %v4187_v17 }
 0x2dc   : > { %v955_v42 = vpop.f32.mrb[41].mxu0  ;;  %1299 = vmatprep.mubr.f32.mxu1 %v3525_v0  ;;  %1460 = vmatprep.mubr.f32.mxu0 %v3525_v0  ;;  %v4122_v34 = vadd.f32 %v3129_v41, %v4042_v3 }
 0x2dd   : > { %v4111_v45 = vadd.f32 %v4042_v3, %v955_v42  ;;  %3358 = vmatpush1.bf16.msra.mxu1 %v3357_v38  ;;  %3390 = vmatpush1.bf16.msra.mxu0 %v3389_v39  ;;  %v4146_v1 = vpop.permute.xlu1 %2193  ;;  %v1056_v38 = vld [vmem:[#allocation2 + $0x1f0] sm:$0xff]  ;;  %v1065_v39 = vld [vmem:[#allocation2 + $0x238] sm:$0xff]  ;;  %v1074_v42 = vld [vmem:[#allocation2 + $0x280] sm:$0xff] }
 0x2de   : > { %3392 = vmatprep.subr.bf16.mxu0 %v4104_v40  ;;  %3423 = vmatprep.subr.bf16.mxu1 %v4104_v40  ;;  %5162 = vst [vmem:[#allocation8_spill] sm:$0xff] %v4146_v1  ;;  %v4202_v15 = vpop.permute.xlu0 %2178 }
 0x2df   : > { %1300 = vmatmul.mubr.f32.gmra.mrb[48].mxu1 %v4111_v45  ;;  %1461 = vmatmul.mubr.f32.gmra.mrb[64].mxu0 %v4111_v45  ;;  %5166 = vst [vmem:[#allocation12_spill] sm:$0xff] %v4202_v15 }
 0x2e0   : > { %1305 = vmatprep.mubr.f32.mxu1 %v3525_v0  ;;  %1466 = vmatprep.mubr.f32.mxu0 %v3525_v0 }
 0x2e1   : > { %v4163_v37 = vpop.permute.xlu1 %2203  ;;  %3477 = vset.pattern.permute.xlu0 %v3531_v16  ;;  %3478 = vset.pattern.permute.xlu1 %v3531_v16 }
 0x2e2   : > { %5163 = vst [vmem:[#allocation9_spill] sm:$0xff] %v4163_v37  ;;  %2633 = vperm.xlu0 %3477, %v3915_v28   ;;  %v1020_v28 = vld [vmem:[#allocation2 + $0xd0] sm:$0xff]  ;;  %2637 = vperm.xlu1 %3478, %v3946_v44   ;;  %v4216_v41 = vpop.permute.xlu0 %2188 }
 0x2e3   : > { %v3132_v43 = vpop.f32.mrb[42].mxu0  ;;  %1306 = vmatmul.mubr.f32.gmra.mrb[50].mxu1 %v4122_v34  ;;  %1467 = vmatmul.mubr.f32.gmra.mrb[66].mxu0 %v4122_v34  ;;  %5167 = vst [vmem:[#allocation13_spill] sm:$0xff] %v4216_v41  ;;  %v5206_v41 = vsub.s32 1, %v3843_v30 }
 0x2e4   : > { %v965_v59 = vpop.f32.mrb[43].mxu0  ;;  %1311 = vmatprep.mubr.f32.mxu1 %v3525_v0  ;;  %1472 = vmatprep.mubr.f32.mxu0 %v3525_v0  ;;  %v4144_v63 = vadd.f32 %v3132_v43, %v4042_v3  ;;  %v1083_v43 = vld [vmem:[#allocation2 + $0x2c8] sm:$0xff] }
 0x2e5   : > { %v4133_v60 = vadd.f32 %v4042_v3, %v965_v59  ;;  %v4181_v14 = vpop.permute.xlu1 %2213 }
 0x2e6   : > { %5164 = vst [vmem:[#allocation10_spill] sm:$0xff] %v4181_v14  ;;  %2645 = vperm.xlu0 %3477, %v3908_v20   ;;  %v1038_v20 = vld [vmem:[#allocation2 + $0x160] sm:$0xff] }
 0x2e7   : > { %1312 = vmatmul.mubr.f32.gmra.mrb[52].mxu1 %v4133_v60  ;;  %1473 = vmatmul.mubr.f32.gmra.mrb[68].mxu0 %v4133_v60  ;;  %v3399_v44 = vpack.c.bf16 %v1047_v26, %v1038_v20  ;;  %v1128_v26 = vld [vmem:[#allocation2 + $0x430] sm:$0xff] }
 0x2e8   : > { %1317 = vmatprep.mubr.f32.mxu1 %v3525_v0  ;;  %1478 = vmatprep.mubr.f32.mxu0 %v3525_v0 }
 0x2e9   : > { %v4198_v21 = vpop.permute.xlu1 %2253 }
 0x2ea   : > { %2653 = vperm.xlu0 %3477, %v3479_v22  }
 0x2eb   : > { %v3135_v24 = vpop.f32.mrb[44].mxu0  ;;  %1318 = vmatmul.mubr.f32.gmra.mrb[54].mxu1 %v4144_v63  ;;  %1479 = vmatmul.mubr.f32.gmra.mrb[70].mxu0 %v4144_v63 }
 0x2ec   : > { %v975_v4 = vpop.f32.mrb[45].mxu0  ;;  %1323 = vmatprep.mubr.f32.mxu1 %v3525_v0  ;;  %1484 = vmatprep.mubr.f32.mxu0 %v3525_v0  ;;  %v4168_v6 = vadd.f32 %v3135_v24, %v4042_v3  ;;  %v4226_v24 = vpop.permute.xlu0 %2198 }
 0x2ed   : > { %v4157_v5 = vadd.f32 %v4042_v3, %v975_v4  ;;  %v4212_v29 = vpop.permute.xlu1 %2257  ;;  %5168 = vst [vmem:[#allocation14_spill] sm:$0xff] %v4226_v24  ;;  %v3407_v4 = vpack.c.bf16 %v1083_v43, %v1074_v42 }
 0x2ef   : > { %1324 = vmatmul.mubr.f32.gmra.mrb[56].mxu1 %v4157_v5  ;;  %1485 = vmatmul.mubr.f32.gmra.mrb[72].mxu0 %v4157_v5 }
 0x2f0   : > { %1329 = vmatprep.mubr.f32.mxu1 %v3525_v0  ;;  %1490 = vmatprep.mubr.f32.mxu0 %v3525_v0  ;;  %v4236_v22 = vpop.permute.xlu0 %2208 }
 0x2f1   : > { %v4222_v59 = vpop.permute.xlu1 %2265  ;;  %5170 = vst [vmem:[#allocation16_spill] sm:$0xff] %v4236_v22 }
 0x2f3   : > { %v3138_v9 = vpop.f32.mrb[46].mxu0  ;;  %1330 = vmatmul.mubr.f32.gmra.mrb[58].mxu1 %v4168_v6  ;;  %1491 = vmatmul.mubr.f32.gmra.mrb[74].mxu0 %v4168_v6 }
 0x2f4   : > { %v985_v10 = vpop.f32.mrb[47].mxu0  ;;  %1335 = vmatprep.mubr.f32.mxu1 %v3525_v0  ;;  %1496 = vmatprep.mubr.f32.mxu0 %v3525_v0  ;;  %v4192_v18 = vadd.f32 %v3138_v9, %v4042_v3  ;;  %v1092_v9 = vld [vmem:[#allocation2 + $0x310] sm:$0xff] }
 0x2f5   : > { %v4179_v11 = vadd.f32 %v4042_v3, %v985_v10  ;;  %v3395_v3 = vpack.c.bf16 %v1029_v19, %v1020_v28  ;;  %v1101_v10 = vld [vmem:[#allocation2 + $0x358] sm:$0xff]  ;;  %v4232_v16 = vpop.permute.xlu1 %2273  ;;  %v1110_v19 = vld [vmem:[#allocation2 + $0x3a0] sm:$0xff] }
 0x2f6   : > { %5169 = vst [vmem:[#allocation15_spill] sm:$0xff] %v4232_v16  ;;  %v3411_v28 = vpack.c.bf16 %v1101_v10, %v1092_v9  ;;  %v3481_v9 = vld [vmem:[%s3901_s25 + $0x38] sm:$0xff] }
 0x2f7   : > { %1336 = vmatmul.mubr.f32.gmra.mrb[60].mxu1 %v4179_v11  ;;  %1497 = vmatmul.mubr.f32.gmra.mrb[76].mxu0 %v4179_v11 }
 0x2f8   : > { %1341 = vmatprep.mubr.f32.mxu1 %v3525_v0  ;;  %1502 = vmatprep.mubr.f32.mxu0 %v3525_v0 }
 0x2f9   : > { %2661 = vperm.xlu0 %3477, %v3481_v9  }
 0x2fb   : > { %1342 = vmatmul.mubr.f32.gmra.mrb[62].mxu1 %v4192_v18  ;;  %1503 = vmatmul.mubr.f32.gmra.mrb[78].mxu0 %v4192_v18 }
 0x2fc   : > { %1573 = vmatprep.mubr.f32.mxu1 %v3525_v0  ;;  %1734 = vmatprep.mubr.f32.mxu0 %v3525_v0 }
 0x2fd   : > { %2669 = vperm.xlu0 %3477, %v3950_v35  }
 0x2ff   : > { %1574 = vmatmul.mubr.f32.vlgmr.msra.gmra.mrb[64].mxu1 %v4046_v12  ;;  %1735 = vmatmul.mubr.f32.vlgmr.msra.gmra.mrb[80].mxu0 %v4046_v12 }
 0x300   : > { %3394 = vmatpush3.bf16.msra.mxu0 %v4104_v40  ;;  %3431 = vmatpush3.bf16.msra.mxu1 %v4104_v40  ;;  %v3403_v40 = vpack.c.bf16 %v1065_v39, %v1056_v38  ;;  %v4242_v38 = vpop.permute.xlu1 %2281  ;;  %v4246_v39 = vpop.permute.xlu0 %2249 }
 0x301   : > { %1579 = vmatprep.mubr.f32.mxu1 %v3525_v0  ;;  %1740 = vmatprep.mubr.f32.mxu0 %v3525_v0  ;;  %5171 = vst [vmem:[#allocation17_spill] sm:$0xff] %v4242_v38 }
 0x302   : > { %3396 = vmatprep.subr.bf16.mxu0 %v3395_v3  ;;  %3424 = vmatprep.subr.bf16.mxu1 %v3395_v3 }
 0x303   : > { %1580 = vmatmul.mubr.f32.gmra.mrb[66].mxu1 %v4052_v25  ;;  %1741 = vmatmul.mubr.f32.gmra.mrb[82].mxu0 %v4052_v25 }
 0x304   : > { %1585 = vmatprep.mubr.f32.mxu1 %v3525_v0  ;;  %1746 = vmatprep.mubr.f32.mxu0 %v3525_v0  ;;  %v4252_v42 = vpop.permute.xlu1 %2289  ;;  %v4256_v43 = vpop.permute.xlu0 %2261 }
 0x305   : > { %3398 = vmatpush3.bf16.msra.mxu0 %v3395_v3  ;;  %3432 = vmatpush3.bf16.msra.mxu1 %v3395_v3  ;;  %v1119_v3 = vld [vmem:[#allocation2 + $0x3e8] sm:$0xff]  ;;  %5172 = vst [vmem:[#allocation18_spill] sm:$0xff] %v4252_v42 }
 0x306   : > { %3400 = vmatprep.subr.bf16.mxu0 %v3399_v44  ;;  %3425 = vmatprep.subr.bf16.mxu1 %v3399_v44  ;;  %v3415_v20 = vpack.c.bf16 %v1119_v3, %v1110_v19 }
 0x307   : > { %1586 = vmatmul.mubr.f32.gmra.mrb[68].mxu1 %v4061_v47  ;;  %1747 = vmatmul.mubr.f32.gmra.mrb[84].mxu0 %v4061_v47 }
 0x308   : > { %1591 = vmatprep.mubr.f32.mxu1 %v3525_v0  ;;  %1752 = vmatprep.mubr.f32.mxu0 %v3525_v0  ;;  %v4264_v10 = vpop.permute.xlu1 %2297 }
 0x309   : > { %3402 = vmatpush3.bf16.msra.mxu0 %v3399_v44  ;;  %3433 = vmatpush3.bf16.msra.mxu1 %v3399_v44  ;;  %v1137_v44 = vld [vmem:[#allocation2 + $0x478] sm:$0xff]  ;;  %5173 = vst [vmem:[#allocation19_spill] sm:$0xff] %v4264_v10 }
 0x30a   : > { %3404 = vmatprep.subr.bf16.mxu0 %v3403_v40  ;;  %3426 = vmatprep.subr.bf16.mxu1 %v3403_v40 }
 0x30b   : > { %1592 = vmatmul.mubr.f32.gmra.mrb[70].mxu1 %v4068_v7  ;;  %1753 = vmatmul.mubr.f32.gmra.mrb[86].mxu0 %v4068_v7 }
 0x30c   : > { %1597 = vmatprep.mubr.f32.mxu1 %v3525_v0  ;;  %1758 = vmatprep.mubr.f32.mxu0 %v3525_v0  ;;  %v4276_v19 = vpop.permute.xlu1 %2305 }
 0x30d   : > { %3406 = vmatpush3.bf16.msra.mxu0 %v3403_v40  ;;  %3434 = vmatpush3.bf16.msra.mxu1 %v3403_v40  ;;  %v3419_v40 = vpack.c.bf16 %v1137_v44, %v1128_v26  ;;  %5175 = vst [vmem:[#allocation21_spill] sm:$0xff] %v4276_v19 }
 0x30e   : > { %3408 = vmatprep.subr.bf16.mxu0 %v3407_v4  ;;  %3427 = vmatprep.subr.bf16.mxu1 %v3407_v4 }
 0x30f   : > { %1598 = vmatmul.mubr.f32.gmra.mrb[72].mxu1 %v4077_v27  ;;  %1759 = vmatmul.mubr.f32.gmra.mrb[88].mxu0 %v4077_v27 }
 0x310   : > { %1603 = vmatprep.mubr.f32.mxu1 %v3525_v0  ;;  %1764 = vmatprep.mubr.f32.mxu0 %v3525_v0  ;;  %v4290_v35 = vpop.permute.xlu1 %2345 }
 0x311   : > { %3410 = vmatpush3.bf16.msra.mxu0 %v3407_v4  ;;  %3435 = vmatpush3.bf16.msra.mxu1 %v3407_v4  ;;  %v3480_v4 = vld [vmem:[%s3901_s25 + $0x10] sm:$0xff] }
 0x312   : > { %3412 = vmatprep.subr.bf16.mxu0 %v3411_v28  ;;  %3428 = vmatprep.subr.bf16.mxu1 %v3411_v28 }
 0x313   : > { %1604 = vmatmul.mubr.f32.gmra.mrb[74].mxu1 %v4084_v48  ;;  %1765 = vmatmul.mubr.f32.gmra.mrb[90].mxu0 %v4084_v48 }
 0x314   : > { %1609 = vmatprep.mubr.f32.mxu1 %v3525_v0  ;;  %1770 = vmatprep.mubr.f32.mxu0 %v3525_v0 }
 0x315   : > { %3414 = vmatpush3.bf16.msra.mxu0 %v3411_v28  ;;  %3436 = vmatpush3.bf16.msra.mxu1 %v3411_v28  ;;  %v4268_v28 = vpop.permute.xlu0 %2269 }
 0x316   : > { %3416 = vmatprep.subr.bf16.mxu0 %v3415_v20  ;;  %3429 = vmatprep.subr.bf16.mxu1 %v3415_v20  ;;  %5174 = vst [vmem:[#allocation20_spill] sm:$0xff] %v4268_v28 }
 0x317   : > { %1610 = vmatmul.mubr.f32.gmra.mrb[76].mxu1 %v4093_v13  ;;  %1771 = vmatmul.mubr.f32.gmra.mrb[92].mxu0 %v4093_v13 }
 0x318   : > { %1615 = vmatprep.mubr.f32.mxu1 %v3525_v0  ;;  %1776 = vmatprep.mubr.f32.mxu0 %v3525_v0 }
 0x319   : > { %3418 = vmatpush3.bf16.msra.mxu0 %v3415_v20  ;;  %3437 = vmatpush3.bf16.msra.mxu1 %v3415_v20 }
 0x31a   : > { %3420 = vmatprep.subr.bf16.mxu0 %v3419_v40  ;;  %3430 = vmatprep.subr.bf16.mxu1 %v3419_v40 }
 0x31b   : > { %1616 = vmatmul.mubr.f32.gmra.mrb[78].mxu1 %v4102_v36  ;;  %1777 = vmatmul.mubr.f32.gmra.mrb[94].mxu0 %v4102_v36 }
 0x31c   : > { %1621 = vmatprep.mubr.f32.mxu1 %v3525_v0  ;;  %1782 = vmatprep.mubr.f32.mxu0 %v3525_v0 }
 0x31d   : > { %3422 = vmatpush3.bf16.msra.mxu0 %v3419_v40  ;;  %3438 = vmatpush3.bf16.msra.mxu1 %v3419_v40 }
 0x31e   : > { %2641 = vperm.xlu1 %3478, %v3480_v4   ;;  %2677 = vperm.xlu0 %3477, %v3958_v50  }
 0x31f   : > { %1622 = vmatmul.mubr.f32.gmra.mrb[80].mxu1 %v4111_v45  ;;  %1783 = vmatmul.mubr.f32.gmra.mrb[96].mxu0 %v4111_v45 }
 0x320   : > { %1627 = vmatprep.mubr.f32.mxu1 %v3525_v0  ;;  %1788 = vmatprep.mubr.f32.mxu0 %v3525_v0 }
 0x322   : > { %2649 = vperm.xlu1 %3478, %v3954_v49   ;;  %v4282_v49 = vpop.permute.xlu0 %2277  ;;  %2685 = vperm.xlu0 %3477, %v3966_v52  }
 0x323   : > { %1628 = vmatmul.mubr.f32.gmra.mrb[82].mxu1 %v4122_v34  ;;  %1789 = vmatmul.mubr.f32.gmra.mrb[98].mxu0 %v4122_v34  ;;  %5176 = vst [vmem:[#allocation22_spill] sm:$0xff] %v4282_v49 }
 0x324   : > { %1633 = vmatprep.mubr.f32.mxu1 %v3525_v0  ;;  %1794 = vmatprep.mubr.f32.mxu0 %v3525_v0 }
 0x326   : > { %2657 = vperm.xlu1 %3478, %v3962_v51   ;;  %v4294_v50 = vpop.permute.xlu0 %2285  ;;  %2693 = vperm.xlu0 %3477, %v3973_v54   ;;  %v4302_v51 = vpop.permute.xlu1 %2353 }
 0x327   : > { %1634 = vmatmul.mubr.f32.gmra.mrb[84].mxu1 %v4133_v60  ;;  %1795 = vmatmul.mubr.f32.gmra.mrb[100].mxu0 %v4133_v60  ;;  %5177 = vst [vmem:[#allocation23_spill] sm:$0xff] %v4294_v50 }
 0x328   : > { %1639 = vmatprep.mubr.f32.mxu1 %v3525_v0  ;;  %1800 = vmatprep.mubr.f32.mxu0 %v3525_v0 }
 0x32a   : > { %2665 = vperm.xlu1 %3478, %v3970_v53   ;;  %v4307_v52 = vpop.permute.xlu0 %2293  ;;  %v4314_v53 = vpop.permute.xlu1 %2357 }
 0x32b   : > { %1640 = vmatmul.mubr.f32.gmra.mrb[86].mxu1 %v4144_v63  ;;  %1801 = vmatmul.mubr.f32.gmra.mrb[102].mxu0 %v4144_v63  ;;  %5178 = vst [vmem:[#allocation24_spill] sm:$0xff] %v4307_v52  ;;  %v1156_v52 = vsub.s32 3, %v3843_v30 }
 0x32c   : > { %1645 = vmatprep.mubr.f32.mxu1 %v3525_v0  ;;  %1806 = vmatprep.mubr.f32.mxu0 %v3525_v0 }
 0x32e   : > { %2673 = vperm.xlu1 %3478, %v3978_v55   ;;  %v4318_v54 = vpop.permute.xlu0 %2301  ;;  %v4324_v55 = vpop.permute.xlu1 %2365 }
 0x32f   : > { %1646 = vmatmul.mubr.f32.gmra.mrb[88].mxu1 %v4157_v5  ;;  %1807 = vmatmul.mubr.f32.gmra.mrb[104].mxu0 %v4157_v5  ;;  %5179 = vst [vmem:[#allocation25_spill] sm:$0xff] %v4318_v54  ;;  %5180 = vst [vmem:[#allocation26_spill] sm:$0xff] %v4324_v55 }
 0x330   : > { %1651 = vmatprep.mubr.f32.mxu1 %v3525_v0  ;;  %1812 = vmatprep.mubr.f32.mxu0 %v3525_v0 }
 0x332   : > { %2681 = vperm.xlu1 %3478, %v3983_v57   ;;  %v4328_v57 = vpop.permute.xlu0 %2309 }
 0x333   : > { %1652 = vmatmul.mubr.f32.gmra.mrb[90].mxu1 %v4168_v6  ;;  %1813 = vmatmul.mubr.f32.gmra.mrb[106].mxu0 %v4168_v6  ;;  %5181 = vst [vmem:[#allocation27_spill] sm:$0xff] %v4328_v57 }
 0x334   : > { %1657 = vmatprep.mubr.f32.mxu1 %v3525_v0  ;;  %1818 = vmatprep.mubr.f32.mxu0 %v3525_v0 }
 0x336   : > { %2689 = vperm.xlu1 %3478, %v3988_v58   ;;  %v4338_v58 = vpop.permute.xlu0 %2349 }
 0x337   : > { %1658 = vmatmul.mubr.f32.gmra.mrb[92].mxu1 %v4179_v11  ;;  %1819 = vmatmul.mubr.f32.gmra.mrb[108].mxu0 %v4179_v11 }
 0x338   : > { %1663 = vmatprep.mubr.f32.mxu1 %v3525_v0  ;;  %1824 = vmatprep.mubr.f32.mxu0 %v3525_v0  ;;  %v4334_v0 = vpop.permute.xlu1 %2373 }
 0x339   : > { %5182 = vst [vmem:[#allocation28_spill] sm:$0xff] %v4334_v0 }
 0x33b   : > { %1664 = vmatmul.mubr.f32.gmra.mrb[94].mxu1 %v4192_v18  ;;  %1825 = vmatmul.mubr.f32.gmra.mrb[110].mxu0 %v4192_v18 }
 0x33c   : > { %3171 = vmatprep.mubr.f32.mxu0 %v4046_v12  ;;  %3180 = vmatprep.mubr.f32.mxu1 %v4093_v13  ;;  %v4343_v12 = vpop.permute.xlu1 %2381 }
 0x33d   : > { %5183 = vst [vmem:[#allocation29_spill] sm:$0xff] %v4343_v12 }
 0x33f   : > { %3172 = vmatmul.mubr.f32.vlgmr.msra.gmra.mrb[112].mxu0 %v4052_v25  ;;  %3181 = vmatmul.mubr.f32.vlgmr.msra.gmra.mrb[96].mxu1 %v4102_v36  ;;  %v4346_v25 = vpop.permute.xlu0 %2361 }
 0x340   : > { %3174 = vmatprep.mubr.f32.mxu0 %v4061_v47  ;;  %3183 = vmatprep.mubr.f32.mxu1 %v4111_v45  ;;  %v4350_v47 = vpop.permute.xlu1 %2389 }
 0x341   : > { %5184 = vst [vmem:[#allocation30_spill] sm:$0xff] %v4350_v47  ;;  %v5205_v47 = vsub.s32 0, %v3843_v30 }
 0x343   : > { %3175 = vmatmul.mubr.f32.gmra.mrb[114].mxu0 %v4068_v7  ;;  %3184 = vmatmul.mubr.f32.gmra.mrb[98].mxu1 %v4122_v34  ;;  %v4352_v7 = vpop.permute.xlu0 %2369 }
 0x344   : > { %3177 = vmatprep.mubr.f32.mxu0 %v4077_v27  ;;  %3186 = vmatprep.mubr.f32.mxu1 %v4133_v60  ;;  %5185 = vst [vmem:[#allocation31_spill] sm:$0xff] %v4352_v7  ;;  %v4354_v27 = vpop.permute.xlu1 %2397 }
 0x345   : > { %5186 = vst [vmem:[#allocation32_spill] sm:$0xff] %v4354_v27 }
 0x347   : > { %3178 = vmatmul.mubr.f32.gmra.mrb[116].mxu0 %v4084_v48  ;;  %3187 = vmatmul.mubr.f32.gmra.mrb[100].mxu1 %v4144_v63  ;;  %v4356_v48 = vpop.permute.xlu0 %2377 }
 0x348   : > { %3189 = vmatprep.mubr.f32.mxu1 %v4157_v5  ;;  %5187 = vst [vmem:[#allocation33_spill] sm:$0xff] %v4356_v48  ;;  %v4358_v13 = vpop.permute.xlu1 %2405 }
 0x349   : > { %5188 = vst [vmem:[#allocation34_spill] sm:$0xff] %v4358_v13 }
 0x34b   : > { %3190 = vmatmul.mubr.f32.gmra.mrb[102].mxu1 %v4168_v6  ;;  %v4360_v36 = vpop.permute.xlu0 %2385 }
 0x34c   : > { %3192 = vmatprep.mubr.f32.mxu1 %v4179_v11  ;;  %5189 = vst [vmem:[#allocation35_spill] sm:$0xff] %v4360_v36  ;;  %v4362_v45 = vpop.permute.xlu1 %2445 }
 0x34f   : > { %3193 = vmatmul.mubr.f32.gmra.mrb[104].mxu1 %v4192_v18  ;;  %v4364_v34 = vpop.permute.xlu0 %2393 }
 0x350   : > { %5190 = vst [vmem:[#allocation36_spill] sm:$0xff] %v4364_v34  ;;  %v4366_v60 = vpop.permute.xlu1 %2449 }
 0x353   : > { %v4368_v63 = vpop.permute.xlu0 %2401 }
 0x354   : > { %5191 = vst [vmem:[#allocation37_spill] sm:$0xff] %v4368_v63  ;;  %v4370_v5 = vpop.permute.xlu1 %2457 }
 0x355   : > { %5192 = vst [vmem:[#allocation38_spill] sm:$0xff] %v4370_v5 }
 0x357   : > { %v4372_v6 = vpop.permute.xlu0 %2441 }
 0x358   : > { %v4376_v18 = vpop.permute.xlu1 %2465 }
 0x35b   : > { %v4374_v11 = vpop.permute.xlu0 %2453 }
 0x35c   : > { %v4380_v20 = vpop.permute.xlu1 %2473 }
 0x35d   : > { %5194 = vst [vmem:[#allocation40_spill] sm:$0xff] %v4380_v20 }
 0x35f   : > { %v4378_v3 = vpop.permute.xlu0 %2461 }
 0x360   : > { %5193 = vst [vmem:[#allocation39_spill] sm:$0xff] %v4378_v3  ;;  %v4384_v44 = vpop.permute.xlu1 %2481 }
 0x361   : > { %5196 = vst [vmem:[#allocation42_spill] sm:$0xff] %v4384_v44 }
 0x363   : > { %v4382_v26 = vpop.permute.xlu0 %2469 }
 0x364   : > { %5195 = vst [vmem:[#allocation41_spill] sm:$0xff] %v4382_v26  ;;  %v4388_v4 = vpop.permute.xlu1 %2489 }
 0x365   : > { %5198 = vst [vmem:[#allocation44_spill] sm:$0xff] %v4388_v4 }
 0x367   : > { %v4386_v40 = vpop.permute.xlu0 %2477 }
 0x368   : > { %5197 = vst [vmem:[#allocation43_spill] sm:$0xff] %v4386_v40  ;;  %v4392_v31 = vpop.permute.xlu1 %2497 }
 0x369   : > { %5200 = vst [vmem:[#allocation46_spill] sm:$0xff] %v4392_v31  ;;  %v1138_v31 = vld [vmem:[%s5144_s9] sm:$0xff] }
 0x36a   : > { %v4409_v1 = vrot.slane %v1138_v31, %v5205_v47  ;;  %v4415_v50 = vrot.slane %v1138_v31, %v5206_v41  ;;  %v4417_v12 = vrot.slane %v1138_v31, %v1156_v52  ;;  %v1160_v52 = vsub.s32 4, %v3843_v30 }
 0x36b   : > { %v4390_v9 = vpop.permute.xlu0 %2485 }
 0x36c   : > { %5199 = vst [vmem:[#allocation45_spill] sm:$0xff] %v4390_v9  ;;  %v4396_v57 = vpop.permute.xlu1 %2537  ;;  %v4450_v32 = vrot.slane %v1138_v31, %v1160_v52 }
 0x36d   : > { %5202 = vst [vmem:[#allocation48_spill] sm:$0xff] %v4396_v57  ;;  %v1152_v57 = vsub.s32 2, %v3843_v30 }
 0x36f   : > { %v4394_v33 = vpop.permute.xlu0 %2493  ;;  %v4411_v42 = vrot.slane %v1138_v31, %v1152_v57 }
 0x370   : > { %5201 = vst [vmem:[#allocation47_spill] sm:$0xff] %v4394_v33  ;;  %v4400_v34 = vpop.permute.xlu1 %2545 }
 0x371   : > { %5204 = vst [vmem:[#allocation50_spill] sm:$0xff] %v4400_v34 }
 0x373   : > { %v4398_v10 = vpop.permute.xlu0 %2501 }
 0x374   : > { %5203 = vst [vmem:[#allocation49_spill] sm:$0xff] %v4398_v10  ;;  %v4421_v20 = vpop.permute.xlu1 %2549 }
 0x375   : > { %5208 = vst [vmem:[#allocation52_spill] sm:$0xff] %v4421_v20 }
 0x377   : > { %v4419_v56 = vpop.permute.xlu0 %2541 }
 0x378   : > { %5207 = vst [vmem:[#allocation51_spill] sm:$0xff] %v4419_v56  ;;  %v1168_v56 = vsub.s32 6, %v3843_v30  ;;  %v4448_v55 = vpop.permute.xlu1 %2557 }
 0x379   : > { %5210 = vst [vmem:[#allocation54_spill] sm:$0xff] %v4448_v55 }
 0x37b   : > { %v4446_v40 = vpop.permute.xlu0 %2553 }
 0x37c   : > { %5209 = vst [vmem:[#allocation53_spill] sm:$0xff] %v4446_v40 }
 0x392   : > { %v1253_v13 = vpop.f32.mrb[32].mxu1  ;;  %v1414_v14 = vpop.f32.mrb[48].mxu0 }
 0x393   : > { %v1255_v19 = vpop.f32.mrb[33].mxu1  ;;  %v1416_v63 = vpop.f32.mrb[49].mxu0  ;;  %v1254_v38 = vadd.f32 %v1253_v13, %v4409_v1  ;;  %v1415_v57 = vadd.f32 %v1414_v14, %v4411_v42  ;;  %v1172_v14 = vsub.s32 7, %v3843_v30  ;;  %v4452_v30 = vrot.slane %v1138_v31, %v1168_v56 }
 0x394   : > { %v1256_v49 = vadd.f32 %v1255_v19, %v4415_v50  ;;  %v1417_v41 = vadd.f32 %v1416_v63, %v4417_v12 }
 0x395   : > { %v1976_v0 = vmax.f32 %v1254_v38, 0.0  ;;  %v1978_v16 = vmax.f32 %v1415_v57, 0.0 }
 0x396   : > { %v1259_v22 = vpop.f32.mrb[34].mxu1  ;;  %v1420_v54 = vpop.f32.mrb[50].mxu0  ;;  %v1977_v63 = vmax.f32 %v1256_v49, 0.0  ;;  %v1979_v28 = vmax.f32 %v1417_v41, 0.0 }
 0x397   : > { %v1261_v27 = vpop.f32.mrb[35].mxu1  ;;  %v1422_v37 = vpop.f32.mrb[51].mxu0  ;;  %v1260_v7 = vadd.f32 %v1259_v22, %v4409_v1  ;;  %v1421_v3 = vadd.f32 %v1420_v54, %v4411_v42  ;;  %v4455_v22 = vmul.f32 %v4135_v61, %v1976_v0  ;;  %v4462_v54 = vrot.slane %v1138_v31, %v1164_v46 }
 0x398   : > { %v1262_v38 = vadd.f32 %v1261_v27, %v4415_v50  ;;  %v1423_v57 = vadd.f32 %v1422_v37, %v4417_v12  ;;  %v4464_v27 = vrot.slane %v1138_v31, %v1172_v14  ;;  %v4467_v41 = vmul.f32 %v4290_v35, %v1978_v16 }
 0x399   : > { %v1985_v52 = vmax.f32 %v1260_v7, 0.0  ;;  %v4474_v37 = vmul.f32 %v4246_v39, %v1977_v63  ;;  %v1987_v40 = vmax.f32 %v1421_v3, 0.0  ;;  %v4479_v14 = vmul.f32 %v4372_v6, %v1979_v28 }
 0x39a   : > { %v1265_v4 = vpop.f32.mrb[36].mxu1  ;;  %v1426_v24 = vpop.f32.mrb[52].mxu0  ;;  %5211 = vst [vmem:[#allocation55_spill] sm:$0xff] %v4467_v41  ;;  %v1986_v16 = vmax.f32 %v1262_v38, 0.0 }
 0x39b   : > { %v1267_v33 = vpop.f32.mrb[37].mxu1  ;;  %v1428_v9 = vpop.f32.mrb[53].mxu0  ;;  %v1266_v56 = vadd.f32 %v1265_v4, %v4409_v1  ;;  %v1427_v55 = vadd.f32 %v1426_v24, %v4411_v42  ;;  %5212 = vst [vmem:[#allocation56_spill] sm:$0xff] %v4474_v37  ;;  %v1988_v24 = vmax.f32 %v1423_v57, 0.0 }
 0x39c   : > { %v1268_v46 = vadd.f32 %v1267_v33, %v4415_v50  ;;  %v1429_v35 = vadd.f32 %v1428_v9, %v4417_v12  ;;  %v4486_v33 = vmul.f32 %v4152_v2, %v1985_v52  ;;  %v4503_v52 = vpop.permute.xlu0 %2561 }
 0x39d   : > { %v1996_v37 = vmax.f32 %v1427_v55, 0.0 }
 0x39e   : > { %v1271_v44 = vpop.f32.mrb[38].mxu1  ;;  %v1432_v10 = vpop.f32.mrb[54].mxu0  ;;  %v1997_v57 = vmax.f32 %v1429_v35, 0.0 }
 0x39f   : > { %v1273_v34 = vpop.f32.mrb[39].mxu1  ;;  %v1434_v36 = vpop.f32.mrb[55].mxu0  ;;  %v1272_v7 = vadd.f32 %v1271_v44, %v4409_v1  ;;  %v1433_v4 = vadd.f32 %v1432_v10, %v4411_v42  ;;  %v4494_v44 = vmul.f32 %v4338_v58, %v1987_v40  ;;  %v1995_v10 = vmax.f32 %v1268_v46, 0.0 }
 0x3a0   : > { %v1274_v41 = vadd.f32 %v1273_v34, %v4415_v50  ;;  %v1435_v28 = vadd.f32 %v1434_v36, %v4417_v12  ;;  %v4508_v58 = vmul.f32 %v4198_v21, %v1986_v16  ;;  %v4511_v40 = vmul.f32 %v4362_v45, %v1988_v24 }
 0x3a1   : > { %v2003_v2 = vmax.f32 %v1272_v7, 0.0  ;;  %v4522_v16 = vmul.f32 %v4212_v29, %v1995_v10  ;;  %v4529_v24 = vmul.f32 %v4366_v60, %v1997_v57 }
 0x3a2   : > { %v1277_v47 = vpop.f32.mrb[40].mxu1  ;;  %v4424_v48 = vpop.f32.mrb[56].mxu0 }
 0x3a3   : > { %v1279_v15 = vpop.f32.mrb[41].mxu1  ;;  %v4427_v26 = vpop.f32.mrb[57].mxu0  ;;  %v1278_v34 = vadd.f32 %v1277_v47, %v4409_v1  ;;  %v1439_v55 = vadd.f32 %v4424_v48, %v4411_v42  ;;  %v2005_v47 = vmax.f32 %v1433_v4, 0.0  ;;  %v4517_v48 = vmul.f32 %v4302_v51, %v1996_v37 }
 0x3a4   : > { %v1280_v36 = vadd.f32 %v1279_v15, %v4415_v50  ;;  %v2006_v15 = vmax.f32 %v1435_v28, 0.0  ;;  %v1441_v7 = vadd.f32 %v4427_v26, %v4417_v12  ;;  %v4532_v51 = vmul.f32 %v4086_v62, %v2003_v2 }
 0x3a5   : > { %v2012_v45 = vmax.f32 %v1278_v34, 0.0  ;;  %v2014_v37 = vmax.f32 %v1439_v55, 0.0  ;;  %v4535_v4 = vmul.f32 %v4314_v53, %v2005_v47 }
 0x3a6   : > { %v4433_v20 = vpop.f32.mrb[42].mxu1  ;;  %v4435_v13 = vpop.f32.mrb[58].mxu0  ;;  %v2013_v26 = vmax.f32 %v1280_v36, 0.0  ;;  %v4545_v28 = vmul.f32 %v4374_v11, %v2006_v15  ;;  %v2015_v62 = vmax.f32 %v1441_v7, 0.0 }
 0x3a7   : > { %v4440_v17 = vpop.f32.mrb[43].mxu1  ;;  %v4442_v19 = vpop.f32.mrb[59].mxu0  ;;  %v4552_v57 = vmul.f32 %v4170_v8, %v2012_v45  ;;  %v4556_v55 = vmul.f32 %v4346_v25, %v2014_v37 }
 0x3a8   : > { %v4559_v11 = vmul.f32 %v4222_v59, %v2013_v26  ;;  %v4564_v36 = vpop.permute.xlu0 %2569 }
 0x3a9   : > { %5215 = vst [vmem:[#allocation59_spill] sm:$0xff] %v4564_v36 }
 0x3aa   : > { %v4458_v5 = vpop.f32.mrb[44].mxu1  ;;  %v4460_v49 = vpop.f32.mrb[60].mxu0 }
 0x3ab   : > { %v4471_v61 = vpop.f32.mrb[45].mxu1  ;;  %v1452_v0 = vpop.f32.mrb[61].mxu0  ;;  %v1290_v10 = vadd.f32 %v4458_v5, %v4409_v1  ;;  %v1451_v53 = vadd.f32 %v4460_v49, %v4411_v42 }
 0x3ac   : > { %v1453_v31 = vadd.f32 %v1452_v0, %v4417_v12  ;;  %v1994_v0 = vmax.f32 %v1266_v56, 0.0  ;;  %v4505_v56 = vpop.permute.xlu1 %2565  ;;  %v1292_v5 = vadd.f32 %v4471_v61, %v4415_v50 }
 0x3ad   : > { %5214 = vst [vmem:[#allocation58_spill] sm:$0xff] %v4505_v56  ;;  %v2030_v59 = vmax.f32 %v1290_v10, 0.0  ;;  %v2032_v37 = vmax.f32 %v1451_v53, 0.0 }
 0x3ae   : > { %v2033_v39 = vmax.f32 %v1453_v31, 0.0  ;;  %v1295_v63 = vpop.f32.mrb[46].mxu1  ;;  %v1456_v3 = vpop.f32.mrb[62].mxu0  ;;  %v4514_v35 = vmul.f32 %v4072_v23, %v1994_v0  ;;  %v1445_v23 = vadd.f32 %v4435_v13, %v4411_v42  ;;  %v1447_v13 = vadd.f32 %v4442_v19, %v4417_v12 }
 0x3af   : > { %v4489_v6 = vpop.f32.mrb[47].mxu1  ;;  %v4491_v9 = vpop.f32.mrb[63].mxu0  ;;  %v1296_v49 = vadd.f32 %v1295_v63, %v4409_v1  ;;  %v1457_v15 = vadd.f32 %v1456_v3, %v4411_v42 }
 0x3b0   : > { %v4498_v38 = vmul.f32 %v4376_v18, %v2033_v39  ;;  %v2004_v18 = vmax.f32 %v1274_v41, 0.0  ;;  %v1284_v41 = vadd.f32 %v4433_v20, %v4409_v1  ;;  %v1286_v20 = vadd.f32 %v4440_v17, %v4415_v50  ;;  %v4566_v47 = vpop.permute.xlu1 %2573 }
 0x3b1   : > { %v2023_v2 = vmax.f32 %v1445_v23, 0.0  ;;  %5216 = vst [vmem:[#allocation60_spill] sm:$0xff] %v4566_v47  ;;  %v1298_v61 = vadd.f32 %v4489_v6, %v4415_v50  ;;  %v1459_v3 = vadd.f32 %v4491_v9, %v4417_v12  ;;  %v2039_v10 = vmax.f32 %v1296_v49, 0.0 }
 0x3b2   : > { %5213 = vst [vmem:[#allocation57_spill] sm:$0xff] %v4498_v38  ;;  %v1301_v46 = vpop.f32.mrb[48].mxu1  ;;  %v1462_v31 = vpop.f32.mrb[64].mxu0  ;;  %v4538_v29 = vmul.f32 %v4256_v43, %v2004_v18  ;;  %v2021_v17 = vmax.f32 %v1284_v41, 0.0  ;;  %v2022_v8 = vmax.f32 %v1286_v20, 0.0  ;;  %v2024_v18 = vmax.f32 %v1447_v13, 0.0 }
 0x3b3   : > { %v1303_v39 = vpop.f32.mrb[49].mxu1  ;;  %v1464_v21 = vpop.f32.mrb[65].mxu0  ;;  %v5217_v41 = vld [vmem:[#allocation38_spill] sm:$0xff]  ;;  %v1302_v53 = vadd.f32 %v1301_v46, %v4409_v1  ;;  %v1463_v6 = vadd.f32 %v1462_v31, %v4411_v42  ;;  %v2040_v46 = vmax.f32 %v1298_v61, 0.0 }
 0x3b4   : > { %v4570_v23 = vmul.f32 %v5217_v41, %v2015_v62  ;;  %v5219_v20 = vld [vmem:[#allocation26_spill] sm:$0xff]  ;;  %v2031_v62 = vmax.f32 %v1292_v5, 0.0  ;;  %v5223_v41 = vld [vmem:[#allocation20_spill] sm:$0xff]  ;;  %v5228_v5 = vld [vmem:[#allocation31_spill] sm:$0xff]  ;;  %v1465_v31 = vadd.f32 %v1464_v21, %v4417_v12  ;;  %v4610_v61 = vpop.permute.xlu0 %2577  ;;  %v4612_v21 = vpop.permute.xlu1 %2581 }
 0x3b5   : > { %v4578_v13 = vmul.f32 %v5219_v20, %v2023_v2  ;;  %v4588_v38 = vmul.f32 %v5223_v41, %v2022_v8  ;;  %v2041_v2 = vmax.f32 %v1457_v15, 0.0  ;;  %v1304_v20 = vadd.f32 %v1303_v39, %v4415_v50  ;;  %5234 = vst [vmem:[#allocation31_spill] sm:$0xff] %v4610_v61  ;;  %v5240_v61 = vld [vmem:[#allocation41_spill] sm:$0xff] }
 0x3b6   : > { %v1307_v0 = vpop.f32.mrb[50].mxu1  ;;  %v1468_v60 = vpop.f32.mrb[66].mxu0  ;;  %v4598_v49 = vmul.f32 %v5228_v5, %v2032_v37  ;;  %v2042_v41 = vmax.f32 %v1459_v3, 0.0  ;;  %v2048_v37 = vmax.f32 %v1302_v53, 0.0  ;;  %v2050_v5 = vmax.f32 %v1463_v6, 0.0 }
 0x3b7   : > { %v1309_v43 = vpop.f32.mrb[51].mxu1  ;;  %v1470_v34 = vpop.f32.mrb[67].mxu0  ;;  %5220 = vst [vmem:[#allocation38_spill] sm:$0xff] %v4578_v13  ;;  %v5226_v13 = vld [vmem:[#allocation11_spill] sm:$0xff]  ;;  %v1469_v15 = vadd.f32 %v1468_v60, %v4411_v42 }
 0x3b8   : > { %v1471_v19 = vadd.f32 %v1470_v34, %v4417_v12  ;;  %v5218_v34 = vld [vmem:[#allocation5_spill] sm:$0xff]  ;;  %5229 = vst [vmem:[#allocation20_spill] sm:$0xff] %v4598_v49  ;;  %v1310_v39 = vadd.f32 %v1309_v43, %v4415_v50  ;;  %v5236_v49 = vld [vmem:[#allocation28_spill] sm:$0xff] }
 0x3b9   : > { %v4575_v36 = vmul.f32 %v5218_v34, %v2021_v17  ;;  %v5224_v17 = vld [vmem:[#allocation39_spill] sm:$0xff]  ;;  %v4615_v3 = vmul.f32 %v5236_v49, %v2041_v2  ;;  %v4625_v2 = vmul.f32 %v5240_v61, %v2042_v41  ;;  %v2059_v49 = vmax.f32 %v1469_v15, 0.0 }
 0x3ba   : > { %v2060_v7 = vmax.f32 %v1471_v19, 0.0  ;;  %v1313_v45 = vpop.f32.mrb[52].mxu1  ;;  %v1474_v25 = vpop.f32.mrb[68].mxu0  ;;  %v5221_v19 = vld [vmem:[#allocation43_spill] sm:$0xff]  ;;  %v4591_v34 = vmul.f32 %v5224_v17, %v2024_v18  ;;  %v1308_v18 = vadd.f32 %v1307_v0, %v4409_v1  ;;  %v2049_v0 = vmax.f32 %v1304_v20, 0.0 }
 0x3bb   : > { %v1315_v63 = vpop.f32.mrb[53].mxu1  ;;  %v1476_v26 = vpop.f32.mrb[69].mxu0  ;;  %v5230_v17 = vld [vmem:[#allocation15_spill] sm:$0xff]  ;;  %v1314_v60 = vadd.f32 %v1313_v45, %v4409_v1  ;;  %v1475_v43 = vadd.f32 %v1474_v25, %v4411_v42  ;;  %v2058_v45 = vmax.f32 %v1310_v39, 0.0  ;;  %v5246_v39 = vld [vmem:[#allocation40_spill] sm:$0xff] }
 0x3bc   : > { %v4583_v47 = vmul.f32 %v5221_v19, %v2060_v7  ;;  %5225 = vst [vmem:[#allocation26_spill] sm:$0xff] %v4591_v34  ;;  %v4595_v7 = vmul.f32 %v5226_v13, %v2030_v59  ;;  %v5232_v59 = vld [vmem:[#allocation6_spill] sm:$0xff]  ;;  %5235 = vst [vmem:[#allocation15_spill] sm:$0xff] %v4612_v21  ;;  %v1316_v53 = vadd.f32 %v1315_v63, %v4415_v50  ;;  %v2057_v20 = vmax.f32 %v1308_v18, 0.0 }
 0x3bd   : > { %v4608_v13 = vmul.f32 %v5232_v59, %v2039_v10  ;;  %5237 = vst [vmem:[#allocation6_spill] sm:$0xff] %v4615_v3  ;;  %v2051_v10 = vmax.f32 %v1465_v31, 0.0  ;;  %v1477_v6 = vadd.f32 %v1476_v26, %v4417_v12  ;;  %v5241_v3 = vld [vmem:[#allocation12_spill] sm:$0xff]  ;;  %v5244_v31 = vld [vmem:[#allocation17_spill] sm:$0xff] }
 0x3be   : > { %5222 = vst [vmem:[#allocation5_spill] sm:$0xff] %v4583_v47  ;;  %v1319_v56 = vpop.f32.mrb[54].mxu1  ;;  %v1480_v9 = vpop.f32.mrb[70].mxu0  ;;  %5227 = vst [vmem:[#allocation43_spill] sm:$0xff] %v4595_v7  ;;  %v4605_v47 = vmul.f32 %v5230_v17, %v2031_v62  ;;  %v5238_v17 = vld [vmem:[#allocation22_spill] sm:$0xff]  ;;  %v4628_v25 = vmul.f32 %v5241_v3, %v2048_v37  ;;  %v4636_v26 = vmul.f32 %v5244_v31, %v2049_v0  ;;  %v2067_v37 = vmax.f32 %v1316_v53, 0.0 }
 0x3bf   : > { %v1321_v19 = vpop.f32.mrb[55].mxu1  ;;  %v1482_v8 = vpop.f32.mrb[71].mxu0  ;;  %5233 = vst [vmem:[#allocation11_spill] sm:$0xff] %v4608_v13  ;;  %v5242_v13 = vld [vmem:[#allocation33_spill] sm:$0xff]  ;;  %v1481_v63 = vadd.f32 %v1480_v9, %v4411_v42  ;;  %v4640_v61 = vmul.f32 %v5246_v39, %v2051_v10  ;;  %v2069_v3 = vmax.f32 %v1477_v6, 0.0 }
 0x3c0   : > { %5231 = vst [vmem:[#allocation39_spill] sm:$0xff] %v4605_v47  ;;  %v4620_v47 = vmul.f32 %v5238_v17, %v2040_v46  ;;  %v4631_v7 = vmul.f32 %v5242_v13, %v2050_v5  ;;  %v1320_v46 = vadd.f32 %v1319_v56, %v4409_v1  ;;  %5245 = vst [vmem:[#allocation41_spill] sm:$0xff] %v4636_v26  ;;  %v2066_v17 = vmax.f32 %v1314_v60, 0.0  ;;  %v5248_v0 = vld [vmem:[#allocation29_spill] sm:$0xff]  ;;  %v5250_v60 = vld [vmem:[#allocation23_spill] sm:$0xff]  ;;  %v4657_v39 = vpop.permute.xlu1 %2589 }
 0x3c1   : > { %v1322_v41 = vadd.f32 %v1321_v19, %v4415_v50  ;;  %v1483_v13 = vadd.f32 %v1482_v8, %v4417_v12  ;;  %v4647_v31 = vmul.f32 %v5248_v0, %v2059_v49  ;;  %v2077_v10 = vmax.f32 %v1481_v63, 0.0  ;;  %v4655_v8 = vpop.permute.xlu0 %2585  ;;  %5253 = vst [vmem:[#allocation40_spill] sm:$0xff] %v4657_v39  ;;  %v5256_v49 = vld [vmem:[#allocation35_spill] sm:$0xff]  ;;  %v5258_v63 = vld [vmem:[#allocation18_spill] sm:$0xff] }
 0x3c2   : > { %v1325_v34 = vpop.f32.mrb[56].mxu1  ;;  %v1486_v62 = vpop.f32.mrb[72].mxu0  ;;  %5239 = vst [vmem:[#allocation28_spill] sm:$0xff] %v4620_v47  ;;  %5243 = vst [vmem:[#allocation22_spill] sm:$0xff] %v4631_v7  ;;  %v2068_v47 = vmax.f32 %v1475_v43, 0.0  ;;  %v5247_v7 = vld [vmem:[#allocation7_spill] sm:$0xff]  ;;  %v4650_v43 = vmul.f32 %v5250_v60, %v2058_v45 }
 0x3c3   : > { %v1327_v59 = vpop.f32.mrb[57].mxu1  ;;  %v1488_v21 = vpop.f32.mrb[73].mxu0  ;;  %v4644_v9 = vmul.f32 %v5247_v7, %v2057_v20  ;;  %5249 = vst [vmem:[#allocation12_spill] sm:$0xff] %v4647_v31  ;;  %v1326_v19 = vadd.f32 %v1325_v34, %v4409_v1  ;;  %v2075_v26 = vmax.f32 %v1320_v46, 0.0  ;;  %v1487_v53 = vadd.f32 %v1486_v62, %v4411_v42  ;;  %5252 = vst [vmem:[#allocation17_spill] sm:$0xff] %v4655_v8  ;;  %v5254_v7 = vld [vmem:[#allocation13_spill] sm:$0xff] }
 0x3c4   : > { %5251 = vst [vmem:[#allocation33_spill] sm:$0xff] %v4650_v43  ;;  %v1328_v6 = vadd.f32 %v1327_v59, %v4415_v50  ;;  %v4660_v20 = vmul.f32 %v5254_v7, %v2066_v17  ;;  %v4663_v0 = vmul.f32 %v5256_v49, %v2068_v47  ;;  %v2076_v45 = vmax.f32 %v1322_v41, 0.0  ;;  %v5260_v62 = vld [vmem:[#allocation42_spill] sm:$0xff]  ;;  %v5262_v49 = vld [vmem:[#allocation8_spill] sm:$0xff] }
 0x3c5   : > { %v1489_v60 = vadd.f32 %v1488_v21, %v4417_v12  ;;  %v4667_v31 = vmul.f32 %v5258_v63, %v2067_v37  ;;  %v4670_v59 = vmul.f32 %v5260_v62, %v2069_v3  ;;  %v2078_v8 = vmax.f32 %v1483_v13, 0.0  ;;  %v5264_v37 = vld [vmem:[#allocation30_spill] sm:$0xff]  ;;  %v5266_v13 = vld [vmem:[#allocation24_spill] sm:$0xff] }
 0x3c6   : > { %v1331_v18 = vpop.f32.mrb[58].mxu1  ;;  %v1492_v15 = vpop.f32.mrb[74].mxu0  ;;  %5255 = vst [vmem:[#allocation7_spill] sm:$0xff] %v4660_v20  ;;  %5257 = vst [vmem:[#allocation29_spill] sm:$0xff] %v4663_v0  ;;  %v2084_v7 = vmax.f32 %v1326_v19, 0.0  ;;  %v4677_v0 = vmul.f32 %v5262_v49, %v2075_v26  ;;  %v4680_v63 = vmul.f32 %v5264_v37, %v2077_v10  ;;  %v2086_v3 = vmax.f32 %v1487_v53, 0.0 }
 0x3c7   : > { %v1333_v5 = vpop.f32.mrb[59].mxu1  ;;  %v1494_v56 = vpop.f32.mrb[75].mxu0  ;;  %5259 = vst [vmem:[#allocation23_spill] sm:$0xff] %v4667_v31  ;;  %5261 = vst [vmem:[#allocation13_spill] sm:$0xff] %v4670_v59  ;;  %v1332_v39 = vadd.f32 %v1331_v18, %v4409_v1  ;;  %v1493_v47 = vadd.f32 %v1492_v15, %v4411_v42  ;;  %v2085_v62 = vmax.f32 %v1328_v6, 0.0  ;;  %v4683_v59 = vmul.f32 %v5266_v13, %v2076_v45  ;;  %v5268_v20 = vld [vmem:[#allocation45_spill] sm:$0xff] }
 0x3c8   : > { %v1334_v41 = vadd.f32 %v1333_v5, %v4415_v50  ;;  %v1495_v21 = vadd.f32 %v1494_v56, %v4417_v12  ;;  %5263 = vst [vmem:[#allocation35_spill] sm:$0xff] %v4677_v0  ;;  %5265 = vst [vmem:[#allocation18_spill] sm:$0xff] %v4680_v63  ;;  %v2087_v18 = vmax.f32 %v1489_v60, 0.0  ;;  %v4688_v56 = vmul.f32 %v5268_v20, %v2078_v8  ;;  %v5269_v37 = vld [vmem:[#allocation14_spill] sm:$0xff]  ;;  %v5270_v63 = vld [vmem:[#allocation36_spill] sm:$0xff]  ;;  %v4705_v20 = vpop.permute.xlu1 %2597 }
 0x3c9   : > { %5267 = vst [vmem:[#allocation42_spill] sm:$0xff] %v4683_v59  ;;  %v2093_v26 = vmax.f32 %v1332_v39, 0.0  ;;  %v4693_v45 = vmul.f32 %v5269_v37, %v2084_v7  ;;  %v2095_v60 = vmax.f32 %v1493_v47, 0.0  ;;  %v5271_v59 = vld [vmem:[#allocation19_spill] sm:$0xff]  ;;  %v4703_v39 = vpop.permute.xlu0 %2593  ;;  %5273 = vst [vmem:[#allocation30_spill] sm:$0xff] %v4705_v20  ;;  %v5275_v37 = vld [vmem:[#allocation9_spill] sm:$0xff] }
 0x3ca   : > { %v1337_v34 = vpop.f32.mrb[60].mxu1  ;;  %v1498_v46 = vpop.f32.mrb[76].mxu0  ;;  %v2094_v13 = vmax.f32 %v1334_v41, 0.0  ;;  %v4699_v0 = vmul.f32 %v5271_v59, %v2085_v62  ;;  %5272 = vst [vmem:[#allocation8_spill] sm:$0xff] %v4703_v39  ;;  %v5276_v39 = vld [vmem:[#allocation32_spill] sm:$0xff] }
 0x3cb   : > { %v1339_v43 = vpop.f32.mrb[61].mxu1  ;;  %v1500_v17 = vpop.f32.mrb[77].mxu0  ;;  %v1338_v19 = vadd.f32 %v1337_v34, %v4409_v1  ;;  %v1499_v15 = vadd.f32 %v1498_v46, %v4411_v42  ;;  %v2096_v34 = vmax.f32 %v1495_v21, 0.0  ;;  %v4696_v46 = vmul.f32 %v5270_v63, %v2086_v3 }
 0x3cc   : > { %v1340_v49 = vadd.f32 %v1339_v43, %v4415_v50  ;;  %v1501_v10 = vadd.f32 %v1500_v17, %v4417_v12  ;;  %v5274_v17 = vld [vmem:[#allocation44_spill] sm:$0xff]  ;;  %v4712_v59 = vmul.f32 %v5275_v37, %v2093_v26  ;;  %v4716_v20 = vmul.f32 %v5276_v39, %v2095_v60  ;;  %v5282_v37 = vld [vmem:[#allocation37_spill] sm:$0xff] }
 0x3cd   : > { %v4708_v7 = vmul.f32 %v5274_v17, %v2087_v18  ;;  %v2102_v47 = vmax.f32 %v1338_v19, 0.0  ;;  %v2104_v41 = vmax.f32 %v1499_v15, 0.0  ;;  %v5278_v18 = vld [vmem:[#allocation25_spill] sm:$0xff]  ;;  %v5279_v19 = vld [vmem:[#allocation47_spill] sm:$0xff] }
 0x3ce   : > { %v1343_v31 = vpop.f32.mrb[62].mxu1  ;;  %v1504_v5 = vpop.f32.mrb[78].mxu0  ;;  %v2103_v62 = vmax.f32 %v1340_v49, 0.0  ;;  %5277 = vst [vmem:[#allocation24_spill] sm:$0xff] %v4716_v20  ;;  %v4719_v17 = vmul.f32 %v5278_v18, %v2094_v13  ;;  %v4722_v15 = vmul.f32 %v5279_v19, %v2096_v34  ;;  %v5284_v34 = vld [vmem:[#allocation21_spill] sm:$0xff] }
 0x3cf   : > { %v1345_v53 = vpop.f32.mrb[63].mxu1  ;;  %v1506_v6 = vpop.f32.mrb[79].mxu0  ;;  %v1344_v8 = vadd.f32 %v1343_v31, %v4409_v1  ;;  %v1505_v43 = vadd.f32 %v1504_v5, %v4411_v42  ;;  %v2105_v1 = vmax.f32 %v1501_v10, 0.0  ;;  %v4731_v60 = vmul.f32 %v5282_v37, %v2104_v41  ;;  %v5290_v37 = vld [vmem:[#allocation34_spill] sm:$0xff] }
 0x3d0   : > { %v1346_v21 = vadd.f32 %v1345_v53, %v4415_v50  ;;  %v1507_v42 = vadd.f32 %v1506_v6, %v4417_v12  ;;  %5280 = vst [vmem:[#allocation45_spill] sm:$0xff] %v4722_v15  ;;  %v5281_v12 = vld [vmem:[#allocation16_spill] sm:$0xff]  ;;  %v4734_v19 = vmul.f32 %v5284_v34, %v2103_v62 }
 0x3d1   : > { %v2111_v53 = vmax.f32 %v1344_v8, 0.0  ;;  %v2113_v26 = vmax.f32 %v1505_v43, 0.0  ;;  %v4728_v6 = vmul.f32 %v5281_v12, %v2102_v47  ;;  %5283 = vst [vmem:[#allocation14_spill] sm:$0xff] %v4731_v60  ;;  %v5288_v12 = vld [vmem:[#allocation10_spill] sm:$0xff] }
 0x3d2   : > { %v1575_v63 = vpop.f32.mrb[64].mxu1  ;;  %v1736_v3 = vpop.f32.mrb[80].mxu0  ;;  %v2112_v39 = vmax.f32 %v1346_v21, 0.0  ;;  %5285 = vst [vmem:[#allocation36_spill] sm:$0xff] %v4734_v19  ;;  %v2114_v43 = vmax.f32 %v1507_v42, 0.0 }
 0x3d3   : > { %v1577_v31 = vpop.f32.mrb[65].mxu1  ;;  %v1738_v5 = vpop.f32.mrb[81].mxu0  ;;  %v1576_v49 = vadd.f32 %v1575_v63, %v4450_v32  ;;  %v4741_v47 = vadd.f32 %v1736_v3, %v4452_v30  ;;  %v4747_v62 = vmul.f32 %v5288_v12, %v2111_v53  ;;  %v5294_v3 = vld [vmem:[#allocation56_spill] sm:$0xff]  ;;  %v5295_v53 = vld [vmem:[#allocation49_spill] sm:$0xff] }
 0x3d4   : > { %v1739_v50 = vadd.f32 %v1738_v5, %v4464_v27  ;;  %v1578_v10 = vadd.f32 %v1577_v31, %v4462_v54  ;;  %v5286_v5 = vld [vmem:[#allocation46_spill] sm:$0xff]  ;;  %v4760_v12 = vmul.f32 %v5295_v53, %v2114_v43 }
 0x3d5   : > { %v4737_v8 = vmul.f32 %v5286_v5, %v2105_v1  ;;  %5289 = vst [vmem:[#allocation44_spill] sm:$0xff] %v4747_v62  ;;  %v4750_v1 = vmul.f32 %v5290_v37, %v2113_v26  ;;  %v1980_v42 = vmax.f32 %v1576_v49, 0.0  ;;  %v2638_v5 = vpop.permute.xlu1 %2637 }
 0x3d6   : > { %v1983_v13 = vmax.f32 %v1739_v50, 0.0  ;;  %v1581_v18 = vpop.f32.mrb[66].mxu1  ;;  %v1742_v20 = vpop.f32.mrb[82].mxu0  ;;  %v1981_v34 = vmax.f32 %v1578_v10, 0.0  ;;  %5296 = vst [vmem:[#allocation25_spill] sm:$0xff] %v4760_v12 }
 0x3d7   : > { %5287 = vst [vmem:[#allocation19_spill] sm:$0xff] %v4737_v8  ;;  %v1582_v63 = vadd.f32 %v1581_v18, %v4450_v32  ;;  %v1583_v31 = vpop.f32.mrb[67].mxu1  ;;  %v1744_v15 = vpop.f32.mrb[83].mxu0  ;;  %5291 = vst [vmem:[#allocation9_spill] sm:$0xff] %v4750_v1  ;;  %v5292_v8 = vld [vmem:[#allocation27_spill] sm:$0xff] }
 0x3d8   : > { %v2232_v41 = vadd.f32 %v4455_v22, %v1983_v13  ;;  %v1584_v21 = vadd.f32 %v1583_v31, %v4462_v54  ;;  %v1745_v50 = vadd.f32 %v1744_v15, %v4464_v27  ;;  %v2634_v18 = vpop.permute.xlu0 %2633  ;;  %v4753_v60 = vmul.f32 %v5292_v8, %v2112_v39  ;;  %v5297_v8 = vld [vmem:[#allocation55_spill] sm:$0xff] }
 0x3d9   : > { %v4757_v22 = vadd.f32 %v1742_v20, %v4452_v30  ;;  %v1989_v26 = vmax.f32 %v1582_v63, 0.0  ;;  %v1982_v39 = vmax.f32 %v4741_v47, 0.0  ;;  %v2696_v62 = vmul.f32 %v2634_v18, %v1981_v34 }
 0x3da   : > { %5293 = vst [vmem:[#allocation32_spill] sm:$0xff] %v4753_v60  ;;  %v2328_v19 = vadd.f32 %v5294_v3, %v2232_v41  ;;  %v1992_v13 = vmax.f32 %v1745_v50, 0.0  ;;  %v1587_v15 = vpop.f32.mrb[68].mxu1  ;;  %v1748_v31 = vpop.f32.mrb[84].mxu0  ;;  %v1990_v37 = vmax.f32 %v1584_v21, 0.0  ;;  %v5298_v50 = vld [vmem:[#allocation48_spill] sm:$0xff] }
 0x3db   : > { %v1588_v49 = vadd.f32 %v1587_v15, %v4450_v32  ;;  %v1589_v10 = vpop.f32.mrb[69].mxu1  ;;  %v1750_v1 = vpop.f32.mrb[85].mxu0  ;;  %v2600_v3 = vmul.f32 %v5298_v50, %v1980_v42  ;;  %v4769_v43 = vadd.f32 %v1748_v31, %v4452_v30 }
 0x3dc   : > { %v2424_v60 = vadd.f32 %v5297_v8, %v2328_v19  ;;  %v2233_v41 = vadd.f32 %v4486_v33, %v1992_v13  ;;  %v1590_v20 = vadd.f32 %v1589_v10, %v4462_v54  ;;  %v1751_v63 = vadd.f32 %v1750_v1, %v4464_v27  ;;  %v5300_v33 = vld [vmem:[#allocation51_spill] sm:$0xff] }
 0x3dd   : > { %5299 = vst [vmem:[#allocation47_spill] sm:$0xff] %v4769_v43  ;;  %v1998_v53 = vmax.f32 %v1588_v49, 0.0  ;;  %v2601_v13 = vmul.f32 %v5300_v33, %v1989_v26  ;;  %v2697_v10 = vmul.f32 %v2638_v5, %v1990_v37  ;;  %v2642_v26 = vpop.permute.xlu1 %2641  ;;  %v5301_v49 = vld [vmem:[#allocation50_spill] sm:$0xff] }
 0x3de   : > { %v2520_v15 = vadd.f32 %v4479_v14, %v2424_v60  ;;  %v2329_v47 = vadd.f32 %v4508_v58, %v2233_v41  ;;  %v1593_v19 = vpop.f32.mrb[70].mxu1  ;;  %v1754_v8 = vpop.f32.mrb[86].mxu0  ;;  %v2001_v12 = vmax.f32 %v1751_v63, 0.0  ;;  %v1999_v50 = vmax.f32 %v1590_v20, 0.0 }
 0x3df   : > { %v1594_v42 = vadd.f32 %v1593_v19, %v4450_v32  ;;  %v1595_v34 = vpop.f32.mrb[71].mxu1  ;;  %v1756_v18 = vpop.f32.mrb[87].mxu0  ;;  %v4782_v60 = vadd.f32 %v1754_v8, %v4452_v30  ;;  %v2602_v41 = vmul.f32 %v5301_v49, %v1998_v53 }
 0x3e0   : > { %v2616_v31 = vadd.f32 %v2600_v3, %v2520_v15  ;;  %v2425_v1 = vadd.f32 %v4494_v44, %v2329_v47  ;;  %v1596_v21 = vadd.f32 %v1595_v34, %v4462_v54  ;;  %v2234_v58 = vadd.f32 %v4514_v35, %v2001_v12  ;;  %v2646_v53 = vpop.permute.xlu0 %2645 }
 0x3e1   : > { %v1757_v5 = vadd.f32 %v1756_v18, %v4464_v27  ;;  %v2007_v63 = vmax.f32 %v1594_v42, 0.0  ;;  %v2698_v14 = vmul.f32 %v2642_v26, %v1999_v50  ;;  %v5302_v26 = vld [vmem:[#allocation52_spill] sm:$0xff] }
 0x3e2   : > { %v2712_v37 = vadd.f32 %v2696_v62, %v2616_v31  ;;  %v2521_v3 = vadd.f32 %v4511_v40, %v2425_v1  ;;  %v1599_v44 = vpop.f32.mrb[72].mxu1  ;;  %v1760_v20 = vpop.f32.mrb[88].mxu0  ;;  %v2330_v15 = vadd.f32 %v4522_v16, %v2234_v58  ;;  %v2008_v47 = vmax.f32 %v1596_v21, 0.0 }
 0x3e3   : > { %v2010_v19 = vmax.f32 %v1757_v5, 0.0  ;;  %v1600_v35 = vadd.f32 %v1599_v44, %v4450_v32  ;;  %v1601_v12 = vpop.f32.mrb[73].mxu1  ;;  %v1762_v8 = vpop.f32.mrb[89].mxu0  ;;  %v4790_v62 = vadd.f32 %v1760_v20, %v4452_v30  ;;  %v2603_v5 = vmul.f32 %v5302_v26, %v2007_v63  ;;  %v5312_v44 = vld [vmem:[#allocation11_spill] sm:$0xff] }
 0x3e4   : > { %v2728_v33 = vmax.f32 %v2712_v37, 0.0  ;;  %v2617_v34 = vadd.f32 %v2601_v13, %v2521_v3  ;;  %v2426_v40 = vadd.f32 %v4517_v48, %v2330_v15  ;;  %v1602_v16 = vadd.f32 %v1601_v12, %v4462_v54  ;;  %v2650_v63 = vpop.permute.xlu1 %2649  ;;  %v5303_v12 = vld [vmem:[#allocation53_spill] sm:$0xff] }
 0x3e5   : > { %v2235_v18 = vadd.f32 %v4532_v51, %v2010_v19  ;;  %v2016_v31 = vmax.f32 %v1600_v35, 0.0  ;;  %v1763_v1 = vadd.f32 %v1762_v8, %v4464_v27  ;;  %v2699_v49 = vmul.f32 %v2646_v53, %v2008_v47 }
 0x3e6   : > { %v4796_v21 = vadd.f32 %v2697_v10, %v2617_v34  ;;  %v1605_v58 = vpop.f32.mrb[74].mxu1  ;;  %v1766_v13 = vpop.f32.mrb[90].mxu0  ;;  %v4799_v50 = vmul.f32 %v2728_v33, %v1982_v39  ;;  %v2522_v37 = vadd.f32 %v4529_v24, %v2426_v40  ;;  %v2017_v10 = vmax.f32 %v1602_v16, 0.0 }
 0x3e7   : > { %v2331_v48 = vadd.f32 %v4538_v29, %v2235_v18  ;;  %v1607_v3 = vpop.f32.mrb[75].mxu1  ;;  %v1768_v51 = vpop.f32.mrb[91].mxu0  ;;  %v2019_v20 = vmax.f32 %v1763_v1, 0.0  ;;  %v1606_v15 = vadd.f32 %v1605_v58, %v4450_v32  ;;  %v4808_v39 = vadd.f32 %v1766_v13, %v4452_v30 }
 0x3e8   : > { %v2618_v19 = vadd.f32 %v2602_v41, %v2522_v37  ;;  %v1608_v24 = vadd.f32 %v1607_v3, %v4462_v54  ;;  %v2604_v29 = vmul.f32 %v5303_v12, %v2016_v31  ;;  %v1769_v33 = vadd.f32 %v1768_v51, %v4464_v27 }
 0x3e9   : > { %v2427_v35 = vadd.f32 %v4535_v4, %v2331_v48  ;;  %v2236_v47 = vadd.f32 %v4552_v57, %v2019_v20  ;;  %v2025_v8 = vmax.f32 %v1606_v15, 0.0  ;;  %v2700_v31 = vmul.f32 %v2650_v63, %v2017_v10 }
 0x3ea   : > { %v1611_v34 = vpop.f32.mrb[76].mxu1  ;;  %v1772_v53 = vpop.f32.mrb[92].mxu0  ;;  %v4815_v41 = vadd.f32 %v2698_v14, %v2618_v19  ;;  %v2026_v13 = vmax.f32 %v1608_v24, 0.0  ;;  %v2028_v57 = vmax.f32 %v1769_v33, 0.0 }
 0x3eb   : > { %v2523_v4 = vadd.f32 %v4545_v28, %v2427_v35  ;;  %v1612_v18 = vadd.f32 %v1611_v34, %v4450_v32  ;;  %v1613_v16 = vpop.f32.mrb[77].mxu1  ;;  %v1774_v1 = vpop.f32.mrb[93].mxu0  ;;  %v2332_v58 = vadd.f32 %v4559_v11, %v2236_v47  ;;  %v4822_v3 = vadd.f32 %v1772_v53, %v4452_v30  ;;  %v5305_v28 = vld [vmem:[#allocation54_spill] sm:$0xff] }
 0x3ec   : > { %5304 = vst [vmem:[#allocation16_spill] sm:$0xff] %v4815_v41  ;;  %v2654_v14 = vpop.permute.xlu0 %2653  ;;  %v2605_v20 = vmul.f32 %v5305_v28, %v2025_v8  ;;  %v2237_v15 = vadd.f32 %v4575_v36, %v2028_v57  ;;  %v1614_v19 = vadd.f32 %v1613_v16, %v4462_v54  ;;  %v1775_v63 = vadd.f32 %v1774_v1, %v4464_v27  ;;  %v5306_v1 = vld [vmem:[#allocation38_spill] sm:$0xff] }
 0x3ed   : > { %v2619_v26 = vadd.f32 %v2603_v5, %v2523_v4  ;;  %v2034_v48 = vmax.f32 %v1612_v18, 0.0  ;;  %v2428_v51 = vadd.f32 %v4556_v55, %v2332_v58  ;;  %v2701_v33 = vmul.f32 %v2654_v14, %v2026_v13  ;;  %v2658_v4 = vpop.permute.xlu1 %2657  ;;  %v5307_v13 = vld [vmem:[#allocation43_spill] sm:$0xff]  ;;  %v5331_v41 = vld [vmem:[#allocation42_spill] sm:$0xff] }
 0x3ee   : > { %v1617_v11 = vpop.f32.mrb[78].mxu1  ;;  %v1778_v10 = vpop.f32.mrb[94].mxu0  ;;  %v2333_v8 = vadd.f32 %v4588_v38, %v2237_v15  ;;  %v2035_v57 = vmax.f32 %v1614_v19, 0.0 }
 0x3ef   : > { %v4829_v5 = vadd.f32 %v2699_v49, %v2619_v26  ;;  %v1618_v24 = vadd.f32 %v1617_v11, %v4450_v32  ;;  %v1619_v12 = vpop.f32.mrb[79].mxu1  ;;  %v1780_v47 = vpop.f32.mrb[95].mxu0  ;;  %v2524_v55 = vadd.f32 %v4570_v23, %v2428_v51  ;;  %v4836_v36 = vadd.f32 %v1778_v10, %v4452_v30  ;;  %v5308_v10 = vld [vmem:[#allocation26_spill] sm:$0xff] }
 0x3f0   : > { %v2606_v34 = vmul.f32 %v4503_v52, %v2034_v48  ;;  %v2037_v49 = vmax.f32 %v1775_v63, 0.0  ;;  %v1620_v18 = vadd.f32 %v1619_v12, %v4462_v54  ;;  %v2429_v58 = vadd.f32 %v5306_v1, %v2333_v8  ;;  %v2662_v12 = vpop.permute.xlu0 %2661 }
 0x3f1   : > { %v2620_v16 = vadd.f32 %v2604_v29, %v2524_v55  ;;  %v2043_v26 = vmax.f32 %v1618_v24, 0.0  ;;  %v1781_v52 = vadd.f32 %v1780_v47, %v4464_v27  ;;  %v5309_v24 = vld [vmem:[#allocation39_spill] sm:$0xff] }
 0x3f2   : > { %v1623_v23 = vpop.f32.mrb[80].mxu1  ;;  %v1784_v51 = vpop.f32.mrb[96].mxu0  ;;  %v2238_v14 = vadd.f32 %v5307_v13, %v2037_v49  ;;  %v2044_v28 = vmax.f32 %v1620_v18, 0.0  ;;  %v2525_v63 = vadd.f32 %v5308_v10, %v2429_v58  ;;  %v5310_v18 = vld [vmem:[#allocation58_spill] sm:$0xff]  ;;  %v5311_v10 = vld [vmem:[#allocation20_spill] sm:$0xff] }
 0x3f3   : > { %v1625_v48 = vpop.f32.mrb[81].mxu1  ;;  %v1786_v15 = vpop.f32.mrb[97].mxu0  ;;  %v4845_v11 = vadd.f32 %v2700_v31, %v2620_v16  ;;  %v1624_v19 = vadd.f32 %v1623_v23, %v4450_v32  ;;  %v2046_v8 = vmax.f32 %v1781_v52, 0.0  ;;  %v4852_v1 = vadd.f32 %v1784_v51, %v4452_v30 }
 0x3f4   : > { %v2334_v55 = vadd.f32 %v5309_v24, %v2238_v14  ;;  %v1626_v49 = vadd.f32 %v1625_v48, %v4462_v54  ;;  %v2621_v47 = vadd.f32 %v2605_v20, %v2525_v63  ;;  %v2607_v13 = vmul.f32 %v5310_v18, %v2043_v26  ;;  %v5314_v48 = vld [vmem:[#allocation28_spill] sm:$0xff] }
 0x3f5   : > { %v2702_v31 = vmul.f32 %v2658_v4, %v2035_v57  ;;  %v2052_v16 = vmax.f32 %v1624_v19, 0.0  ;;  %v2239_v37 = vadd.f32 %v5312_v44, %v2046_v8  ;;  %v2703_v23 = vmul.f32 %v2662_v12, %v2044_v28  ;;  %v5313_v4 = vld [vmem:[#allocation57_spill] sm:$0xff]  ;;  %v2666_v44 = vpop.permute.xlu1 %2665  ;;  %v5315_v28 = vld [vmem:[#allocation59_spill] sm:$0xff] }
 0x3f6   : > { %v1629_v35 = vpop.f32.mrb[82].mxu1  ;;  %v1790_v58 = vpop.f32.mrb[98].mxu0  ;;  %v2430_v53 = vadd.f32 %v5311_v10, %v2334_v55  ;;  %v1787_v14 = vadd.f32 %v1786_v15, %v4464_v27  ;;  %v4860_v40 = vadd.f32 %v2701_v33, %v2621_v47  ;;  %v2053_v20 = vmax.f32 %v1626_v49, 0.0 }
 0x3f7   : > { %v1631_v52 = vpop.f32.mrb[83].mxu1  ;;  %v1792_v24 = vpop.f32.mrb[99].mxu0  ;;  %v1630_v26 = vadd.f32 %v1629_v35, %v4450_v32  ;;  %v2335_v63 = vadd.f32 %v5314_v48, %v2239_v37  ;;  %v2608_v12 = vmul.f32 %v5315_v28, %v2052_v16  ;;  %v4868_v8 = vadd.f32 %v1790_v58, %v4452_v30  ;;  %v5316_v35 = vld [vmem:[#allocation6_spill] sm:$0xff] }
 0x3f8   : > { %v2526_v57 = vadd.f32 %v5313_v4, %v2430_v53  ;;  %v2055_v55 = vmax.f32 %v1787_v14, 0.0  ;;  %v1632_v33 = vadd.f32 %v1631_v52, %v4462_v54  ;;  %v1793_v37 = vadd.f32 %v1792_v24, %v4464_v27 }
 0x3f9   : > { %v2061_v15 = vmax.f32 %v1630_v26, 0.0  ;;  %v2431_v10 = vadd.f32 %v5316_v35, %v2335_v63  ;;  %v2704_v48 = vmul.f32 %v2666_v44, %v2053_v20  ;;  %v2670_v63 = vpop.permute.xlu0 %2669 }
 0x3fa   : > { %v1635_v47 = vpop.f32.mrb[84].mxu1  ;;  %v1796_v49 = vpop.f32.mrb[100].mxu0  ;;  %v2622_v18 = vadd.f32 %v2606_v34, %v2526_v57  ;;  %v2240_v53 = vadd.f32 %v4628_v25, %v2055_v55  ;;  %v2062_v51 = vmax.f32 %v1632_v33, 0.0  ;;  %v5317_v34 = vld [vmem:[#allocation41_spill] sm:$0xff]  ;;  %v2064_v28 = vmax.f32 %v1793_v37, 0.0 }
 0x3fb   : > { %v1637_v4 = vpop.f32.mrb[85].mxu1  ;;  %v1798_v14 = vpop.f32.mrb[101].mxu0  ;;  %v1636_v16 = vadd.f32 %v1635_v47, %v4450_v32  ;;  %v4876_v58 = vadd.f32 %v1796_v49, %v4452_v30  ;;  %v2527_v52 = vadd.f32 %v4625_v2, %v2431_v10  ;;  %v5318_v49 = vld [vmem:[#allocation22_spill] sm:$0xff] }
 0x3fc   : > { %v4878_v26 = vadd.f32 %v2702_v31, %v2622_v18  ;;  %v2336_v57 = vadd.f32 %v5317_v34, %v2240_v53  ;;  %v1638_v20 = vadd.f32 %v1637_v4, %v4462_v54  ;;  %v5319_v31 = vld [vmem:[#allocation60_spill] sm:$0xff]  ;;  %v2241_v2 = vadd.f32 %v4644_v9, %v2064_v28  ;;  %v5321_v28 = vld [vmem:[#allocation31_spill] sm:$0xff] }
 0x3fd   : > { %v2070_v55 = vmax.f32 %v1636_v16, 0.0  ;;  %v2623_v47 = vadd.f32 %v2607_v13, %v2527_v52  ;;  %v4887_v18 = vmul.f32 %v5319_v31, %v2061_v15  ;;  %v4890_v37 = vmul.f32 %v2670_v63, %v2062_v51  ;;  %v5320_v52 = vld [vmem:[#allocation33_spill] sm:$0xff] }
 0x3fe   : > { %v1641_v44 = vpop.f32.mrb[86].mxu1  ;;  %v1802_v33 = vpop.f32.mrb[102].mxu0  ;;  %v2432_v35 = vadd.f32 %v5318_v49, %v2336_v57  ;;  %v2071_v34 = vmax.f32 %v1638_v20, 0.0  ;;  %v1799_v24 = vadd.f32 %v1798_v14, %v4464_v27  ;;  %v2337_v57 = vadd.f32 %v5320_v52, %v2241_v2  ;;  %v5324_v52 = vld [vmem:[#allocation7_spill] sm:$0xff] }
 0x3ff   : > { %v1643_v10 = vpop.f32.mrb[87].mxu1  ;;  %v1804_v53 = vpop.f32.mrb[103].mxu0  ;;  %v1642_v16 = vadd.f32 %v1641_v44, %v4450_v32  ;;  %v4894_v4 = vadd.f32 %v2703_v23, %v2623_v47  ;;  %v2610_v31 = vmul.f32 %v5321_v28, %v2070_v55  ;;  %v5322_v44 = vld [vmem:[#allocation12_spill] sm:$0xff]  ;;  %v5325_v28 = vld [vmem:[#allocation5_spill] sm:$0xff] }
 0x400   : > { %v2528_v13 = vadd.f32 %v4640_v61, %v2432_v35  ;;  %v2674_v49 = vpop.permute.xlu1 %2673  ;;  %v2073_v51 = vmax.f32 %v1799_v24, 0.0  ;;  %v1644_v63 = vadd.f32 %v1643_v10, %v4462_v54  ;;  %v2433_v23 = vadd.f32 %v5322_v44, %v2337_v57 }
 0x401   : > { %v2079_v47 = vmax.f32 %v1642_v16, 0.0  ;;  %v4904_v61 = vadd.f32 %v1802_v33, %v4452_v30  ;;  %v2706_v19 = vmul.f32 %v2674_v49, %v2071_v34  ;;  %v1805_v55 = vadd.f32 %v1804_v53, %v4464_v27  ;;  %v5326_v33 = vld [vmem:[#allocation23_spill] sm:$0xff] }
 0x402   : > { %v1647_v20 = vpop.f32.mrb[88].mxu1  ;;  %v1808_v14 = vpop.f32.mrb[104].mxu0  ;;  %v2624_v25 = vadd.f32 %v2608_v12, %v2528_v13  ;;  %v2242_v15 = vadd.f32 %v5324_v52, %v2073_v51  ;;  %v2080_v9 = vmax.f32 %v1644_v63, 0.0  ;;  %v4912_v12 = vadd.f32 %v5325_v28, %v2433_v23  ;;  %v5327_v51 = vld [vmem:[#allocation15_spill] sm:$0xff]  ;;  %v5328_v28 = vld [vmem:[#allocation29_spill] sm:$0xff] }
 0x403   : > { %5323 = vst [vmem:[#allocation37_spill] sm:$0xff] %v4904_v61  ;;  %v1649_v35 = vpop.f32.mrb[89].mxu1  ;;  %v1810_v2 = vpop.f32.mrb[105].mxu0  ;;  %v1648_v16 = vadd.f32 %v1647_v20, %v4450_v32  ;;  %v2082_v44 = vmax.f32 %v1805_v55, 0.0  ;;  %v4917_v38 = vadd.f32 %v1808_v14, %v4452_v30  ;;  %v4921_v63 = vmul.f32 %v5327_v51, %v2079_v47  ;;  %v5329_v14 = vld [vmem:[#allocation35_spill] sm:$0xff]  ;;  %v5330_v51 = vld [vmem:[#allocation13_spill] sm:$0xff] }
 0x404   : > { %v4909_v10 = vadd.f32 %v2704_v48, %v2624_v25  ;;  %v2678_v13 = vpop.permute.xlu0 %2677  ;;  %v2338_v57 = vadd.f32 %v5326_v33, %v2242_v15  ;;  %v1650_v34 = vadd.f32 %v1649_v35, %v4462_v54  ;;  %v1811_v23 = vadd.f32 %v1810_v2, %v4464_v27  ;;  %v2682_v42 = vpop.permute.xlu1 %2681  ;;  %v5333_v2 = vld [vmem:[#allocation18_spill] sm:$0xff] }
 0x405   : > { %v2088_v25 = vmax.f32 %v1648_v16, 0.0  ;;  %v4926_v55 = vmul.f32 %v2678_v13, %v2080_v9  ;;  %v2243_v33 = vadd.f32 %v5329_v14, %v2082_v44 }
 0x406   : > { %v1653_v49 = vpop.f32.mrb[90].mxu1  ;;  %v1814_v53 = vpop.f32.mrb[106].mxu0  ;;  %v2434_v15 = vadd.f32 %v5328_v28, %v2338_v57  ;;  %v2089_v24 = vmax.f32 %v1650_v34, 0.0  ;;  %v2091_v29 = vmax.f32 %v1811_v23, 0.0  ;;  %v5332_v28 = vld [vmem:[#allocation17_spill] sm:$0xff] }
 0x407   : > { %v1655_v52 = vpop.f32.mrb[91].mxu1  ;;  %v1816_v20 = vpop.f32.mrb[107].mxu0  ;;  %v1654_v35 = vadd.f32 %v1653_v49, %v4450_v32  ;;  %v4931_v47 = vadd.f32 %v1814_v53, %v4452_v30  ;;  %v2339_v57 = vadd.f32 %v5331_v41, %v2243_v33  ;;  %v4939_v49 = vmul.f32 %v5332_v28, %v2088_v25 }
 0x408   : > { %v1656_v16 = vadd.f32 %v1655_v52, %v4462_v54  ;;  %v2530_v48 = vadd.f32 %v5330_v51, %v2434_v15  ;;  %v2244_v34 = vadd.f32 %v4693_v45, %v2091_v29  ;;  %v1817_v53 = vadd.f32 %v1816_v20, %v4464_v27  ;;  %v2686_v33 = vpop.permute.xlu0 %2685 }
 0x409   : > { %v2097_v23 = vmax.f32 %v1654_v35, 0.0  ;;  %v2435_v61 = vadd.f32 %v5333_v2, %v2339_v57  ;;  %v4945_v51 = vmul.f32 %v2682_v42, %v2089_v24  ;;  %v2099_v25 = vmax.f32 %v4931_v47, 0.0  ;;  %v5334_v2 = vld [vmem:[#allocation40_spill] sm:$0xff] }
 0x40a   : > { %v1659_v13 = vpop.f32.mrb[92].mxu1  ;;  %v1820_v44 = vpop.f32.mrb[108].mxu0  ;;  %v2626_v43 = vadd.f32 %v2610_v31, %v2530_v48  ;;  %v2098_v15 = vmax.f32 %v1656_v16, 0.0  ;;  %v2340_v9 = vadd.f32 %v4699_v0, %v2244_v34  ;;  %v2100_v28 = vmax.f32 %v1817_v53, 0.0 }
 0x40b   : > { %v1661_v14 = vpop.f32.mrb[93].mxu1  ;;  %v1822_v52 = vpop.f32.mrb[109].mxu0  ;;  %v1660_v41 = vadd.f32 %v1659_v13, %v4450_v32  ;;  %v4952_v29 = vadd.f32 %v4688_v56, %v2435_v61  ;;  %v4957_v42 = vmul.f32 %v5334_v2, %v2097_v23  ;;  %v4964_v56 = vadd.f32 %v1820_v44, %v4452_v30 }
 0x40c   : > { %v4949_v45 = vadd.f32 %v2706_v19, %v2626_v43  ;;  %v1662_v31 = vadd.f32 %v1661_v14, %v4462_v54  ;;  %v2436_v16 = vadd.f32 %v4696_v46, %v2340_v9  ;;  %v2245_v0 = vadd.f32 %v4712_v59, %v2100_v28  ;;  %v4970_v46 = vld [vmem:[%s5144_s9 + $0x8] ss:$0 sm:$0xff]  ;;  %v2690_v34 = vpop.permute.xlu1 %2689  ;;  %v5335_v14 = vld [vmem:[#allocation8_spill] sm:$0xff] }
 0x40d   : > { %v2106_v20 = vmax.f32 %v1660_v41, 0.0  ;;  %v1823_v24 = vadd.f32 %v1822_v52, %v4464_v27  ;;  %v4961_v19 = vmul.f32 %v2686_v33, %v2098_v15  ;;  %v5336_v28 = vld [vmem:[#allocation24_spill] sm:$0xff] }
 0x40e   : > { %v1665_v48 = vpop.f32.mrb[94].mxu1  ;;  %v1826_v35 = vpop.f32.mrb[110].mxu0  ;;  %v2107_v61 = vmax.f32 %v1662_v31, 0.0  ;;  %v2738_v9 = vmax.f32 %v4949_v45, 0.0  ;;  %v4974_v59 = vadd.f32 %v4708_v7, %v2436_v16  ;;  %v2341_v23 = vadd.f32 %v4719_v17, %v2245_v0  ;;  %v5337_v0 = vld [vmem:[#allocation30_spill] sm:$0xff] }
 0x40f   : > { %v1667_v57 = vpop.f32.mrb[95].mxu1  ;;  %v1828_v43 = vpop.f32.mrb[111].mxu0  ;;  %v1666_v13 = vadd.f32 %v1665_v48, %v4450_v32  ;;  %v2109_v53 = vmax.f32 %v1823_v24, 0.0  ;;  %v4978_v44 = vmul.f32 %v5335_v14, %v2106_v20  ;;  %v4987_v48 = vadd.f32 %v1826_v35, %v4452_v30 }
 0x410   : > { %v4981_v32 = vadd.f32 %v1667_v57, %v4462_v54  ;;  %v1829_v15 = vadd.f32 %v1828_v43, %v4464_v27  ;;  %v2437_v31 = vadd.f32 %v5336_v28, %v2341_v23  ;;  %v4990_v2 = vmul.f32 %v2690_v34, %v2107_v61  ;;  %v5338_v57 = vld [vmem:[#allocation45_spill] sm:$0xff]  ;;  %v5342_v61 = vld [vmem:[#allocation44_spill] sm:$0xff]  ;;  %v5343_v28 = vld [vmem:[#allocation14_spill] sm:$0xff] }
 0x411   : > { %v2115_v52 = vmax.f32 %v1666_v13, 0.0  ;;  %v2246_v7 = vadd.f32 %v4728_v6, %v2109_v53  ;;  %v5339_v13 = vld [vmem:[#allocation36_spill] sm:$0xff]  ;;  %v5340_v35 = vmax.f32 %v4836_v36, 0.0  ;;  %v5341_v23 = vmax.f32 %v4894_v4, 0.0 }
 0x412   : > { %v3173_v41 = vpop.f32.mrb[112].mxu0  ;;  %v3182_v33 = vpop.f32.mrb[96].mxu1  ;;  %v2118_v24 = vmax.f32 %v1829_v15, 0.0  ;;  %v4997_v43 = vadd.f32 %v5338_v57, %v2437_v31  ;;  %v2116_v30 = vmax.f32 %v4981_v32, 0.0  ;;  %v5344_v36 = vmax.f32 %v4782_v60, 0.0 }
 0x413   : > { %v1903_v17 = vadd.f32 %v3173_v41, %v4970_v46  ;;  %v1897_v16 = vpop.f32.mrb[113].mxu0  ;;  %v1927_v20 = vpop.f32.mrb[97].mxu1  ;;  %v4993_v54 = vmul.f32 %v5337_v0, %v2115_v52  ;;  %v1933_v27 = vadd.f32 %v3182_v33, %v4970_v46  ;;  %v2342_v6 = vadd.f32 %v5339_v13, %v2246_v7 }
 0x414   : > { %v2751_v53 = vmul.f32 %v5341_v23, %v5340_v35  ;;  %v2247_v34 = vadd.f32 %v5342_v61, %v2118_v24  ;;  %v1898_v15 = vadd.f32 %v4970_v46, %v1897_v16  ;;  %v5009_v0 = vadd.f32 %v4970_v46, %v1927_v20  ;;  %v5347_v61 = vld [vmem:[#allocation19_spill] sm:$0xff] }
 0x415   : > { %v1993_v14 = vmax.f32 %v1903_v17, 0.0  ;;  %v2047_v52 = vmax.f32 %v1933_v27, 0.0  ;;  %v2438_v31 = vadd.f32 %v5343_v28, %v2342_v6  ;;  %v5345_v4 = vmax.f32 %v4829_v5, 0.0  ;;  %v5346_v17 = vld [vmem:[#allocation32_spill] sm:$0xff] }
 0x416   : > { %v3176_v41 = vpop.f32.mrb[114].mxu0  ;;  %v3185_v33 = vpop.f32.mrb[98].mxu1  ;;  %v2343_v27 = vadd.f32 %v5346_v17, %v2247_v34  ;;  %v1984_v16 = vmax.f32 %v1898_v15, 0.0  ;;  %v2038_v20 = vmax.f32 %v5009_v0, 0.0  ;;  %v2625_v60 = vadd.f32 %v4887_v18, %v4912_v12 }
 0x417   : > { %v1913_v7 = vadd.f32 %v3176_v41, %v4970_v46  ;;  %v2747_v57 = vmul.f32 %v5345_v4, %v5344_v36  ;;  %v1907_v13 = vpop.f32.mrb[115].mxu0  ;;  %v1937_v24 = vpop.f32.mrb[99].mxu1  ;;  %v2767_v35 = vadd.f32 %v2751_v53, %v2047_v52  ;;  %v1943_v23 = vadd.f32 %v3185_v33, %v4970_v46  ;;  %v5348_v41 = vld [vmem:[#allocation9_spill] sm:$0xff] }
 0x418   : > { %v5019_v6 = vadd.f32 %v5347_v61, %v2438_v31  ;;  %v2439_v5 = vadd.f32 %v5348_v41, %v2343_v27  ;;  %v2760_v36 = vadd.f32 %v4799_v50, %v1984_v16  ;;  %v5027_v34 = vadd.f32 %v4970_v46, %v1907_v13  ;;  %v5351_v50 = vld [vmem:[#allocation25_spill] sm:$0xff] }
 0x419   : > { %v2011_v28 = vmax.f32 %v1913_v7, 0.0  ;;  %v2065_v4 = vmax.f32 %v1943_v23, 0.0  ;;  %2790 = vadd.xlane.f32.xlu1 %v2767_v35  ;;  %v2721_v33 = vadd.f32 %v4890_v37, %v2625_v60  ;;  %v1938_v31 = vadd.f32 %v4970_v46, %v1937_v24 }
 0x41a   : > { %v3179_v53 = vpop.f32.mrb[116].mxu0  ;;  %v3188_v52 = vpop.f32.mrb[100].mxu1  ;;  %v5349_v0 = vmax.f32 %v4852_v1, 0.0  ;;  %v5350_v18 = vmax.f32 %v4909_v10, 0.0  ;;  %v2535_v27 = vadd.f32 %v5351_v50, %v2439_v5  ;;  %v2002_v13 = vmax.f32 %v5027_v34, 0.0 }
 0x41b   : > { %v2763_v15 = vadd.f32 %v2747_v57, %v2011_v28  ;;  %v1917_v7 = vpop.f32.mrb[117].mxu0  ;;  %v1947_v17 = vpop.f32.mrb[101].mxu1  ;;  %v5352_v35 = vmax.f32 %v4757_v22, 0.0  ;;  %v5353_v16 = vmax.f32 %v4796_v21, 0.0  ;;  %v1923_v37 = vadd.f32 %v3179_v53, %v4970_v46 }
 0x41c   : > { %v2752_v12 = vmul.f32 %v5350_v18, %v5349_v0  ;;  %v2737_v23 = vmax.f32 %v2721_v33, 0.0  ;;  %v2056_v24 = vmax.f32 %v1938_v31, 0.0  ;;  %v5354_v1 = vmax.f32 %v4808_v39, 0.0 }
 0x41d   : > { %v2745_v57 = vmul.f32 %v5353_v16, %v5352_v35  ;;  %v5355_v10 = vmax.f32 %v4860_v40, 0.0  ;;  %v1953_v28 = vadd.f32 %v3188_v52, %v4970_v46  ;;  %v2029_v41 = vmax.f32 %v1923_v37, 0.0  ;;  %2776 = vadd.xlane.f32.xlu1 %v2760_v36  ;;  %v2694_v35 = vpop.permute.xlu0 %2693  ;;  %v5362_v37 = vld [vmem:[#allocation37_spill] sm:$0xff] }
 0x41e   : > { %v2627_v5 = vadd.f32 %v4921_v63, %v4952_v29  ;;  %v1918_v22 = vadd.f32 %v4970_v46, %v1917_v7  ;;  %v3191_v21 = vpop.f32.mrb[102].mxu1  ;;  %v5356_v34 = vmax.f32 %v4868_v8, 0.0  ;;  %v2768_v33 = vadd.f32 %v2752_v12, %v2056_v24 }
 0x41f   : > { %v2749_v61 = vmul.f32 %v5355_v10, %v5354_v1  ;;  %v2761_v60 = vadd.f32 %v2745_v57, %v1993_v14  ;;  %v2083_v31 = vmax.f32 %v1953_v28, 0.0  ;;  %v5357_v39 = vmax.f32 %v4790_v62, 0.0  ;;  %v1957_v52 = vpop.f32.mrb[103].mxu1 }
 0x420   : > { %v2753_v53 = vmul.f32 %v2737_v23, %v5356_v34  ;;  %v5358_v40 = vmax.f32 %v4845_v11, 0.0  ;;  %v2723_v18 = vadd.f32 %v4926_v55, %v2627_v5  ;;  %v2020_v63 = vmax.f32 %v1918_v22, 0.0 }
 0x421   : > { %2778 = vadd.xlane.f32.xlu0 %v2761_v60  ;;  %v2765_v14 = vadd.f32 %v2749_v61, %v2029_v41  ;;  %v1948_v29 = vadd.f32 %v4970_v46, %v1947_v17  ;;  %v5359_v7 = vmax.f32 %v4876_v58, 0.0  ;;  %v5360_v12 = vmax.f32 %v4822_v3, 0.0  ;;  %2782 = vadd.xlane.f32.xlu1 %v2763_v15  ;;  %v5364_v61 = vld [vmem:[#allocation47_spill] sm:$0xff] }
 0x422   : > { %v2748_v0 = vmul.f32 %v5358_v40, %v5357_v39  ;;  %v2769_v36 = vadd.f32 %v2753_v53, %v2065_v4  ;;  %v5361_v62 = vmax.f32 %v4878_v26, 0.0  ;;  %v1963_v50 = vadd.f32 %v3191_v21, %v4970_v46  ;;  %v3194_v4 = vpop.f32.mrb[104].mxu1 }
 0x423   : > { %v2754_v8 = vmul.f32 %v2738_v9, %v5359_v7  ;;  %v2739_v16 = vmax.f32 %v2723_v18, 0.0  ;;  %v2074_v55 = vmax.f32 %v1948_v29, 0.0  ;;  %v2629_v17 = vadd.f32 %v4957_v42, %v4997_v43  ;;  %v1967_v9 = vpop.f32.mrb[105].mxu1  ;;  %v5366_v43 = vld [vmem:[#allocation16_spill] sm:$0xff] }
 0x424   : > { %v2750_v11 = vmul.f32 %v5361_v62, %v5360_v12  ;;  %v2764_v57 = vadd.f32 %v2748_v0, %v2020_v63  ;;  %v2711_v58 = vmul.f32 %v2694_v35, %v2116_v30  ;;  %v1958_v3 = vadd.f32 %v4970_v46, %v1957_v52 }
 0x425   : > { %v2628_v26 = vadd.f32 %v4939_v49, %v4974_v59  ;;  %v5363_v23 = vmax.f32 %v5362_v37, 0.0  ;;  %v2770_v1 = vadd.f32 %v2754_v8, %v2074_v55  ;;  %v2725_v10 = vadd.f32 %v4961_v19, %v2629_v17  ;;  %2794 = vadd.xlane.f32.xlu1 %v2769_v36 }
 0x426   : > { %v2766_v45 = vadd.f32 %v2750_v11, %v2038_v20  ;;  %v5365_v42 = vmax.f32 %v5364_v61, 0.0  ;;  %v5367_v15 = vmax.f32 %v5366_v43, 0.0  ;;  %v2101_v32 = vmax.f32 %v1963_v50, 0.0 }
 0x427   : > { %v2755_v24 = vmul.f32 %v2739_v16, %v5363_v23  ;;  %v2724_v30 = vadd.f32 %v4945_v51, %v2628_v26  ;;  %v1973_v20 = vadd.f32 %v3194_v4, %v4970_v46  ;;  %v2631_v49 = vadd.f32 %v4993_v54, %v2535_v27 }
 0x428   : > { %v2746_v28 = vmul.f32 %v5367_v15, %v5365_v42  ;;  %2788 = vadd.xlane.f32.xlu0 %v2766_v45  ;;  %v2741_v60 = vmax.f32 %v2725_v10, 0.0  ;;  %v2092_v41 = vmax.f32 %v1958_v3, 0.0  ;;  %v1968_v21 = vadd.f32 %v4970_v46, %v1967_v9 }
 0x429   : > { %v2771_v59 = vadd.f32 %v2755_v24, %v2083_v31  ;;  %v2740_v22 = vmax.f32 %v2724_v30, 0.0  ;;  %v2727_v19 = vadd.f32 %v2711_v58, %v2631_v49  ;;  %v2630_v34 = vadd.f32 %v4978_v44, %v5019_v6  ;;  %2786 = vadd.xlane.f32.xlu1 %v2765_v14 }
 0x42a   : > { %v2762_v5 = vadd.f32 %v2746_v28, %v2002_v13  ;;  %v2117_v53 = vmax.f32 %v4987_v48, 0.0  ;;  %v2757_v51 = vmul.f32 %v2741_v60, %v2099_v25  ;;  %v5368_v39 = vmax.f32 %v4917_v38, 0.0 }
 0x42b   : > { %v2119_v27 = vmax.f32 %v1973_v20, 0.0  ;;  %v2743_v31 = vmax.f32 %v2727_v19, 0.0  ;;  %v2726_v13 = vadd.f32 %v4990_v2, %v2630_v34  ;;  %v2108_v40 = vmax.f32 %v4964_v56, 0.0 }
 0x42c   : > { %v2756_v54 = vmul.f32 %v2740_v22, %v5368_v39  ;;  %2780 = vadd.xlane.f32.xlu0 %v2762_v5  ;;  %v2773_v0 = vadd.f32 %v2757_v51, %v2101_v32  ;;  %v2110_v6 = vmax.f32 %v1968_v21, 0.0 }
 0x42d   : > { %v2759_v44 = vmul.f32 %v2743_v31, %v2117_v53  ;;  %v2742_v48 = vmax.f32 %v2726_v13, 0.0  ;;  %2798 = vadd.xlane.f32.xlu1 %v2771_v59 }
 0x42e   : > { %v2772_v46 = vadd.f32 %v2756_v54, %v2092_v41 }
 0x42f   : > { %v2775_v52 = vadd.f32 %v2759_v44, %v2119_v27  ;;  %v2758_v47 = vmul.f32 %v2742_v48, %v2108_v40 }
 0x430   : > { %2792 = vadd.xlane.f32.xlu0 %v2768_v33 }
 0x431   : > { %v2774_v38 = vadd.f32 %v2758_v47, %v2110_v6  ;;  %2802 = vadd.xlane.f32.xlu1 %v2773_v0 }
 0x434   : > { %2784 = vadd.xlane.f32.xlu0 %v2764_v57 }
 0x435   : > { %2806 = vadd.xlane.f32.xlu1 %v2775_v52 }
 0x438   : > { %2796 = vadd.xlane.f32.xlu0 %v2770_v1 }
 0x43c   : > { %2800 = vadd.xlane.f32.xlu0 %v2772_v46 }
 0x440   : > { %2804 = vadd.xlane.f32.xlu0 %v2774_v38 }
 0x4a6   : > { %v2791_v25 = vpop.xlane.xlu1 %2790 }
 0x4a7   : > { %2816 = vst.msk [vmem:[%s5098_s12 + $0x38] sm:$0xff] %vm2808_vm1, %v2791_v25 }
 0x4aa   : > { %v2777_v56 = vpop.xlane.xlu1 %2776 }
 0x4ab   : > { %2809 = vst.msk [vmem:[%s5098_s12] sm:$0xff] %vm2808_vm1, %v2777_v56 }
 0x4ae   : > { %v2779_v2 = vpop.xlane.xlu0 %2778  ;;  %v2783_v33 = vpop.xlane.xlu1 %2782 }
 0x4af   : > { %2810 = vst.msk [vmem:[%s5098_s12 + $0x8] sm:$0xff] %vm2808_vm1, %v2779_v2  ;;  %2812 = vst.msk [vmem:[%s5098_s12 + $0x18] sm:$0xff] %vm2808_vm1, %v2783_v33 }
 0x4b2   : > { %v2795_v18 = vpop.xlane.xlu1 %2794 }
 0x4b3   : > { %2818 = vst.msk [vmem:[%s5098_s12 + $0x48] sm:$0xff] %vm2808_vm1, %v2795_v18 }
 0x4b5   : > { %v2789_v14 = vpop.xlane.xlu0 %2788 }
 0x4b6   : > { %2815 = vst.msk [vmem:[%s5098_s12 + $0x30] sm:$0xff] %vm2808_vm1, %v2789_v14  ;;  %v2787_v29 = vpop.xlane.xlu1 %2786 }
 0x4b7   : > { %2814 = vst.msk [vmem:[%s5098_s12 + $0x28] sm:$0xff] %vm2808_vm1, %v2787_v29 }
 0x4b9   : > { %v2781_v63 = vpop.xlane.xlu0 %2780 }
 0x4ba   : > { %2811 = vst.msk [vmem:[%s5098_s12 + $0x10] sm:$0xff] %vm2808_vm1, %v2781_v63  ;;  %v2799_v7 = vpop.xlane.xlu1 %2798 }
 0x4bb   : > { %2820 = vst.msk [vmem:[%s5098_s12 + $0x58] sm:$0xff] %vm2808_vm1, %v2799_v7 }
 0x4bd   : > { %v2793_v36 = vpop.xlane.xlu0 %2792 }
 0x4be   : > { %2817 = vst.msk [vmem:[%s5098_s12 + $0x40] sm:$0xff] %vm2808_vm1, %v2793_v36  ;;  %v2803_v12 = vpop.xlane.xlu1 %2802 }
 0x4bf   : > { %2822 = vst.msk [vmem:[%s5098_s12 + $0x68] sm:$0xff] %vm2808_vm1, %v2803_v12 }
 0x4c1   : > { %v2785_v8 = vpop.xlane.xlu0 %2784 }
 0x4c2   : > { %2813 = vst.msk [vmem:[%s5098_s12 + $0x20] sm:$0xff] %vm2808_vm1, %v2785_v8  ;;  %v2807_v11 = vpop.xlane.xlu1 %2806 }
 0x4c3   : > { %2824 = vst.msk [vmem:[%s5098_s12 + $0x78] sm:$0xff] %vm2808_vm1, %v2807_v11 }
 0x4c5   : > { %v2797_v62 = vpop.xlane.xlu0 %2796 }
 0x4c6   : > { %2819 = vst.msk [vmem:[%s5098_s12 + $0x50] sm:$0xff] %vm2808_vm1, %v2797_v62 }
 0x4c9   : > { %v2801_v50 = vpop.xlane.xlu0 %2800 }
 0x4ca   : > { %2821 = vst.msk [vmem:[%s5098_s12 + $0x60] sm:$0xff] %vm2808_vm1, %v2801_v50 }
 0x4cd   : > { %v2805_v35 = vpop.xlane.xlu0 %2804 }
 0x4ce   : > { %2823 = vst.msk [vmem:[%s5098_s12 + $0x70] sm:$0xff] %vm2808_vm1, %v2805_v35 }
 0x4cf PF: > { %s21_s13 = sadd.s32 1, %s3520_s13  }
 0x4d0   : > { %p18_p3 = scmp.ge.s32.totalorder %s21_s13, 4  }
 0x4d2   :  { %20 = sbr.rel (!%p18_p3) target bundleno = 1 (0x1), region = 98 }
 0x4d9   :  { %2847 = vsyncpa [#allocation3], 1 }
 0x4da   :  { %2849 = vsyncpa [#allocation3 + $0x1], 1 }

</bundles_post_ra>
